<compile_context>
chip_gen: v7x
topology: tpu7x:2x2x1
jax: 0.10.0
libtpu: 0.0.40
codegen_flags: <defaults>
</compile_context>

<pallas_src>
import math
import functools

import jax
import jax.numpy as jnp
from jax.experimental import pallas as pl
from jax.experimental.pallas import tpu as pltpu


# ------------------------------------------------------------------ helpers --

def _gelu_tanh(x):
    # tanh-approximate GELU (EUP tanh); <= ~1e-3 abs deviation from erf GELU.
    c = math.sqrt(2.0 / math.pi)
    return 0.5 * x * (1.0 + jnp.tanh(c * (x + 0.044715 * x * x * x)))


PARAM_ORDER = ["wq", "bq", "wkv", "bkv", "win", "bin", "wout", "bout",
               "w1", "b1", "w2", "b2", "gamma", "beta"]
WEIGHT_KEYS = {"wq", "wkv", "win", "wout", "w1", "w2"}   # shipped as bf16


# ------------------------------------------------------------------- kernel --

def cmc_kernel(vis_ref, inf_ref,
               wq_ref, bq_ref, wkv_ref, bkv_ref,
               win_ref, bin_ref, wout_ref, bout_ref,
               w1_ref, b1_ref, w2_ref, b2_ref,
               gamma_ref, beta_ref,
               out_ref, *, num_heads):
    f32 = jnp.float32
    bf16 = jnp.bfloat16
    S0, TB, D = vis_ref.shape          # seq-first block: (seq, batch-block, dim)
    H = num_heads
    hd = D // H
    M = S0 * TB
    scale = 1.0 / math.sqrt(hd)

    # Seq-first rows (row index = (s, b)); every linear below is row-order
    # agnostic, so no transpose is needed for the matmul-heavy path.
    vis = vis_ref[...].reshape(M, D)
    infr = inf_ref[...].reshape(M, D)

    def mm(a, b):                      # bf16 MXU operands, f32 accumulation
        return jnp.dot(a.astype(bf16), b.astype(bf16), preferred_element_type=f32)

    # query_proj / key_value_proj  (weights pre-transposed to (in, out))
    q1 = mm(infr, wq_ref[...]) + bq_ref[...]              # (M, D)
    kv0 = mm(vis, wkv_ref[...]) + bkv_ref[...]            # (M, D)

    # nn.MultiheadAttention packed in-projection.  K and V share the same LHS
    # -> fuse into a single (D, 2D) matmul.
    q = mm(q1, win_ref[:, :D]) + bin_ref[:, :D]           # (M, D)
    kvp = mm(kv0, win_ref[:, D:]) + bin_ref[:, D:]        # (M, 2D)

    # Fold heads into the einsum batch dim: (M, D) -> (TB*H, S0, hd), in bf16
    # (halves the relayout traffic).  The transpose only permutes major dims
    # (the minor dim stays put), so it is a row shuffle, not a lane transpose.
    def to_heads(x_bf16):
        x4 = x_bf16.reshape(S0, TB, H, hd)
        x4 = jnp.transpose(x4, (1, 2, 0, 3))              # (TB, H, S0, hd)
        return x4.reshape(TB * H, S0, hd)

    qh = to_heads((q * scale).astype(bf16))
    kh = to_heads(kvp[:, :D].astype(bf16))
    vh = to_heads(kvp[:, D:].astype(bf16))

    # Scaled dot-product attention: one batched einsum pair over all TB*H
    # (batch, head) pairs.  No per-head loop, no masked sub-128-lane stores.
    s = jnp.einsum("bqd,bkd->bqk", qh, kh, preferred_element_type=f32)
    s = s - jnp.max(s, axis=-1, keepdims=True)
    e = jnp.exp(s)
    p = e * pl.reciprocal(jnp.sum(e, axis=-1, keepdims=True), approx=True)
    o = jnp.einsum("bqk,bkd->bqd", p.astype(bf16), vh, preferred_element_type=f32)

    # Back to seq-first rows with heads concatenated along lanes: (M, D).
    o = o.astype(bf16).reshape(TB, H, S0, hd)
    o = jnp.transpose(o, (2, 0, 1, 3)).reshape(M, D)      # (S0, TB, H, hd) -> (M, D)

    # MHA out-projection: a single K=D matmul over the concatenated heads.
    attn_o = mm(o, wout_ref[...]) + bout_ref[...]         # (M, D)

    # feed_forward: Linear -> GELU -> Linear (f32 GELU; see TODO in header)
    h1 = mm(attn_o, w1_ref[...]) + b1_ref[...]            # (M, 4D)
    g = _gelu_tanh(h1)
    ff = mm(g, w2_ref[...]) + b2_ref[...]                 # (M, D)

    # residual (against visible_features) + LayerNorm, all in f32
    y = vis + ff
    mu = jnp.mean(y, axis=-1, keepdims=True)
    d = y - mu
    var = jnp.mean(d * d, axis=-1, keepdims=True)
    yn = d * jax.lax.rsqrt(var + 1e-5)
    out_ref[...] = (yn * gamma_ref[...] + beta_ref[...]).reshape(S0, TB, D)


# ------------------------------------------------------------------ wrapper --

def _weights_pipeline_mode():
    """Return pl.Buffered(1) if this jax accepts per-operand pipeline_mode, else None.

    The probe only constructs objects (narrow TypeError/ValueError catch); it
    never wraps the actual pallas_call, so real compile errors are not masked.
    """
    if not hasattr(pl, "Buffered"):
        return None
    for make in (lambda: pl.Buffered(buffer_count=1), lambda: pl.Buffered(1)):
        try:
            mode = make()
            pl.BlockSpec((8, 128), lambda i: (0, 0), pipeline_mode=mode)
            return mode
        except (TypeError, ValueError):
            continue
    return None


def _pick_tb(S1, block_batch):
    # Largest divisor of S1 <= block_batch, preferring 8-aligned (or full) ones
    # so the second-minor block dim satisfies the (8, 128) tiling rule.
    divisors = [d for d in range(1, min(block_batch, S1) + 1) if S1 % d == 0]
    aligned = [d for d in divisors if d % 8 == 0 or d == S1]
    return max(aligned) if aligned else max(divisors)


def cmc_block(visible, infrared, params, num_heads, *, block_batch=None):
    """CMCBlock forward.

    visible, infrared: (S0, S1, D) f32, seq-first — the (L, N, E) layout that
    nn.MultiheadAttention (and the PyTorch call site) uses.  No transposes are
    performed in the wrapper; the kernel consumes this layout directly.
    block_batch: attention-batch elements per grid step.  Default: 8 (even
    grid count at S1=144 for v7x 2-TC sharding; also right for v5e), 24 on v6e.
    """
    S0, S1, D = visible.shape

    kind = jax.devices()[0].device_kind.lower()
    if block_batch is None:
        block_batch = 24 if "v6" in kind else 8

    tb = _pick_tb(S1, block_batch)
    grid = (S1 // tb,)

    # Matmul weights in bf16 (f32 accumulate inside the kernel); biases/LN f32.
    param_list = []
    for name in PARAM_ORDER:
        p = params[name]
        if name in WEIGHT_KEYS:
            p = p.astype(jnp.bfloat16)
        param_list.append(p)

    seq_spec = pl.BlockSpec((S0, tb, D), lambda b: (0, b, 0))

    pipe_mode = _weights_pipeline_mode()

    def pspec(p):
        nd = p.ndim
        kw = {} if pipe_mode is None else {"pipeline_mode": pipe_mode}
        # Constant index map -> parameters stay resident across grid steps.
        return pl.BlockSpec(p.shape, lambda b, _nd=nd: (0,) * _nd, **kw)

    # Advisory cost estimate for XLA scheduling around the custom call.
    flops = int(2 * S1 * S0 * 14 * D * D + 4 * S1 * S0 * S0 * D)
    transcendentals = int(S1 * num_heads * S0 * S0 + 4 * S1 * S0 * D)
    weight_bytes = sum(int(p.size) * jnp.dtype(p.dtype).itemsize for p in param_list)
    bytes_accessed = int(3 * S1 * S0 * D * 4 + weight_bytes)
    cost = pl.CostEstimate(flops=flops, transcendentals=transcendentals,
                           bytes_accessed=bytes_accessed)

    # VMEM budget: weights (1x when resident via Buffered(1), 2x otherwise) +
    # double-buffered activation blocks + compiler temporaries + headroom.
    # Cap conservatively on v7x/unknown parts (64 MiB physical per TC).
    weight_factor = 1 if pipe_mode is not None else 2
    block_bytes = S0 * tb * D * 4
    need = (weight_factor * weight_bytes + 3 * 2 * block_bytes
            + 18 * block_bytes + (4 << 20))
    cap = (96 << 20) if ("v5" in kind or "v6" in kind) else (56 << 20)
    vmem_limit = int(min(cap, max(32 << 20, need)))

    return pl.pallas_call(
        functools.partial(cmc_kernel, num_heads=num_heads),
        grid=grid,
        in_specs=[seq_spec, seq_spec] + [pspec(p) for p in param_list],
        out_specs=seq_spec,
        out_shape=jax.ShapeDtypeStruct((S0, S1, D), jnp.float32),
        compiler_params=pltpu.CompilerParams(
            dimension_semantics=("parallel",),
            vmem_limit_bytes=vmem_limit),
        cost_estimate=cost,
    )(visible, infrared, *param_list)


# --------------------------------------------------------- params & reference --

def init_params(key, dim):
    ks = jax.random.split(key, 12)

    def w(k, shape, scale=0.05):
        return (scale * jax.random.normal(k, shape)).astype(jnp.float32)

    return {
        # Linear weights stored pre-transposed to (in, out); biases as (1, out).
        "wq":   w(ks[0], (dim, dim)),        "bq":   w(ks[1], (1, dim)),
        "wkv":  w(ks[2], (dim, dim)),        "bkv":  w(ks[3], (1, dim)),
        "win":  w(ks[4], (dim, 3 * dim)),    "bin":  w(ks[5], (1, 3 * dim)),
        "wout": w(ks[6], (dim, dim)),        "bout": w(ks[7], (1, dim)),
        "w1":   w(ks[8], (dim, 4 * dim)),    "b1":   w(ks[9], (1, 4 * dim)),
        "w2":   w(ks[10], (4 * dim, dim)),   "b2":   w(ks[11], (1, dim)),
        "gamma": jnp.ones((1, dim), jnp.float32),
        "beta":  jnp.zeros((1, dim), jnp.float32),
    }


def cmc_ref(visible, infrared, params, num_heads):
    """Pure-JAX f32 reference mirroring the PyTorch forward (exact GELU)."""
    S0, S1, D = visible.shape
    H, hd = num_heads, D // num_heads
    q1 = infrared @ params["wq"] + params["bq"][0]
    kv = visible @ params["wkv"] + params["bkv"][0]
    win, bin_ = params["win"], params["bin"][0]
    q = q1 @ win[:, :D] + bin_[:D]
    k = kv @ win[:, D:2 * D] + bin_[D:2 * D]
    v = kv @ win[:, 2 * D:] + bin_[2 * D:]
    qh = q.reshape(S0, S1, H, hd).transpose(1, 2, 0, 3)       # (S1, H, S0, hd)
    kh = k.reshape(S0, S1, H, hd).transpose(1, 2, 0, 3)
    vh = v.reshape(S0, S1, H, hd).transpose(1, 2, 0, 3)
    s = jnp.einsum("bhqd,bhkd->bhqk", qh, kh) / math.sqrt(hd)
    p = jax.nn.softmax(s, axis=-1)
    o = jnp.einsum("bhqk,bhkd->bhqd", p, vh).transpose(2, 0, 1, 3).reshape(S0, S1, D)
    attn_o = o @ params["wout"] + params["bout"][0]
    h1 = attn_o @ params["w1"] + params["b1"][0]
    g = jax.nn.gelu(h1, approximate=False)
    ff = g @ params["w2"] + params["b2"][0]
    y = visible + ff
    mu = y.mean(-1, keepdims=True)
    var = ((y - mu) ** 2).mean(-1, keepdims=True)
    return (y - mu) / jnp.sqrt(var + 1e-5) * params["gamma"][0] + params["beta"][0]


# --------------------------------------------------------------------- main --

if __name__ == "__main__":
    # Small analog of the real shapes [32, 144, 768] / 12 heads:
    # S0 (MHA sequence) = 8, S1 (MHA batch) = 16, dim = 32, heads = 4.
    S0, S1, D, H = 8, 16, 32, 4
    key = jax.random.PRNGKey(0)
    kp, kvis, kinf = jax.random.split(key, 3)
    params = init_params(kp, D)
    visible = jax.random.normal(kvis, (S0, S1, D), jnp.float32)
    infrared = jax.random.normal(kinf, (S0, S1, D), jnp.float32)

    out = cmc_block(visible, infrared, params, H)
    out = jax.block_until_ready(out)

    ref = cmc_ref(visible, infrared, params, H)
    assert out.shape == (S0, S1, D)
    # bf16 matmul operands + approx softmax reciprocal + tanh GELU vs. f32/erf
    # reference: expected deviation well below 3e-2 at this scale.
    max_err = float(jnp.max(jnp.abs(out - ref)))
    assert max_err < 3e-2, f"mismatch vs f32 reference: {max_err}"
    print("KERNEL_OK")
</pallas_src>

<mosaic_0001>
module attributes {stable_mosaic.version = 11 : i64} {
  func.func @cmc_kernel(%arg0: i32, %arg1: memref<8x8x32xf32, #tpu.memory_space<vmem>>, %arg2: memref<8x8x32xf32, #tpu.memory_space<vmem>>, %arg3: memref<32x32xbf16, #tpu.memory_space<vmem>>, %arg4: memref<1x32xf32, #tpu.memory_space<vmem>>, %arg5: memref<32x32xbf16, #tpu.memory_space<vmem>>, %arg6: memref<1x32xf32, #tpu.memory_space<vmem>>, %arg7: memref<32x96xbf16, #tpu.memory_space<vmem>>, %arg8: memref<1x96xf32, #tpu.memory_space<vmem>>, %arg9: memref<32x32xbf16, #tpu.memory_space<vmem>>, %arg10: memref<1x32xf32, #tpu.memory_space<vmem>>, %arg11: memref<32x128xbf16, #tpu.memory_space<vmem>>, %arg12: memref<1x128xf32, #tpu.memory_space<vmem>>, %arg13: memref<128x32xbf16, #tpu.memory_space<vmem>>, %arg14: memref<1x32xf32, #tpu.memory_space<vmem>>, %arg15: memref<1x32xf32, #tpu.memory_space<vmem>>, %arg16: memref<1x32xf32, #tpu.memory_space<vmem>>, %arg17: memref<8x8x32xf32, #tpu.memory_space<vmem>>) attributes {dimension_semantics = [#tpu.dimension_semantics<parallel>], iteration_bounds = array<i64: 2>, scalar_prefetch = 0 : i64, scratch_operands = 0 : i64, tpu.core_type = #tpu.core_type<tc>, window_params = [{transform_indices = @transform_0, window_bounds = array<i64: 8, 8, 32>}, {transform_indices = @transform_1, window_bounds = array<i64: 8, 8, 32>}, {pipeline_mode = #tpu.pipeline_mode<synchronous>, transform_indices = @transform_2, window_bounds = array<i64: 32, 32>}, {pipeline_mode = #tpu.pipeline_mode<synchronous>, transform_indices = @transform_3, window_bounds = array<i64: 1, 32>}, {pipeline_mode = #tpu.pipeline_mode<synchronous>, transform_indices = @transform_4, window_bounds = array<i64: 32, 32>}, {pipeline_mode = #tpu.pipeline_mode<synchronous>, transform_indices = @transform_5, window_bounds = array<i64: 1, 32>}, {pipeline_mode = #tpu.pipeline_mode<synchronous>, transform_indices = @transform_6, window_bounds = array<i64: 32, 96>}, {pipeline_mode = #tpu.pipeline_mode<synchronous>, transform_indices = @transform_7, window_bounds = array<i64: 1, 96>}, {pipeline_mode = #tpu.pipeline_mode<synchronous>, transform_indices = @transform_8, window_bounds = array<i64: 32, 32>}, {pipeline_mode = #tpu.pipeline_mode<synchronous>, transform_indices = @transform_9, window_bounds = array<i64: 1, 32>}, {pipeline_mode = #tpu.pipeline_mode<synchronous>, transform_indices = @transform_10, window_bounds = array<i64: 32, 128>}, {pipeline_mode = #tpu.pipeline_mode<synchronous>, transform_indices = @transform_11, window_bounds = array<i64: 1, 128>}, {pipeline_mode = #tpu.pipeline_mode<synchronous>, transform_indices = @transform_12, window_bounds = array<i64: 128, 32>}, {pipeline_mode = #tpu.pipeline_mode<synchronous>, transform_indices = @transform_13, window_bounds = array<i64: 1, 32>}, {pipeline_mode = #tpu.pipeline_mode<synchronous>, transform_indices = @transform_14, window_bounds = array<i64: 1, 32>}, {pipeline_mode = #tpu.pipeline_mode<synchronous>, transform_indices = @transform_15, window_bounds = array<i64: 1, 32>}, {transform_indices = @transform_16, window_bounds = array<i64: 8, 8, 32>}]} {
    %c0 = arith.constant 0 : index
    %c0_0 = arith.constant 0 : index
    %c0_1 = arith.constant 0 : index
    %0 = vector.load %arg1[%c0, %c0_0, %c0_1] : memref<8x8x32xf32, #tpu.memory_space<vmem>>, vector<8x8x32xf32>
    %1 = vector.shape_cast %0 : vector<8x8x32xf32> to vector<64x32xf32>
    %c0_2 = arith.constant 0 : index
    %c0_3 = arith.constant 0 : index
    %c0_4 = arith.constant 0 : index
    %2 = vector.load %arg2[%c0_2, %c0_3, %c0_4] : memref<8x8x32xf32, #tpu.memory_space<vmem>>, vector<8x8x32xf32>
    %3 = vector.shape_cast %2 : vector<8x8x32xf32> to vector<64x32xf32>
    %c0_5 = arith.constant 0 : index
    %c0_6 = arith.constant 0 : index
    %4 = vector.load %arg3[%c0_5, %c0_6] : memref<32x32xbf16, #tpu.memory_space<vmem>>, vector<32x32xbf16>
    %5 = arith.truncf %3 : vector<64x32xf32> to vector<64x32xbf16>
    %cst = arith.constant dense<0.000000e+00> : vector<64x32xf32>
    %6 = tpu.matmul %5, %4, %cst {dimension_numbers = #tpu.dot_dimension_numbers<[1], [0], [0], [1], [0, 0, 1, 1], [], []>} : vector<64x32xbf16>, vector<32x32xbf16>, vector<64x32xf32> -> vector<64x32xf32>
    %c0_7 = arith.constant 0 : index
    %c0_8 = arith.constant 0 : index
    %7 = vector.load %arg4[%c0_7, %c0_8] : memref<1x32xf32, #tpu.memory_space<vmem>>, vector<1x32xf32>
    %8 = vector.broadcast %7 : vector<1x32xf32> to vector<64x32xf32>
    %9 = arith.addf %6, %8 : vector<64x32xf32>
    %c0_9 = arith.constant 0 : index
    %c0_10 = arith.constant 0 : index
    %10 = vector.load %arg5[%c0_9, %c0_10] : memref<32x32xbf16, #tpu.memory_space<vmem>>, vector<32x32xbf16>
    %11 = arith.truncf %1 : vector<64x32xf32> to vector<64x32xbf16>
    %cst_11 = arith.constant dense<0.000000e+00> : vector<64x32xf32>
    %12 = tpu.matmul %11, %10, %cst_11 {dimension_numbers = #tpu.dot_dimension_numbers<[1], [0], [0], [1], [0, 0, 1, 1], [], []>} : vector<64x32xbf16>, vector<32x32xbf16>, vector<64x32xf32> -> vector<64x32xf32>
    %c0_12 = arith.constant 0 : index
    %c0_13 = arith.constant 0 : index
    %13 = vector.load %arg6[%c0_12, %c0_13] : memref<1x32xf32, #tpu.memory_space<vmem>>, vector<1x32xf32>
    %14 = vector.broadcast %13 : vector<1x32xf32> to vector<64x32xf32>
    %15 = arith.addf %12, %14 : vector<64x32xf32>
    %c0_14 = arith.constant 0 : index
    %c0_15 = arith.constant 0 : index
    %16 = vector.load %arg7[%c0_14, %c0_15] : memref<32x96xbf16, #tpu.memory_space<vmem>>, vector<32x32xbf16>
    %17 = arith.truncf %9 : vector<64x32xf32> to vector<64x32xbf16>
    %cst_16 = arith.constant dense<0.000000e+00> : vector<64x32xf32>
    %18 = tpu.matmul %17, %16, %cst_16 {dimension_numbers = #tpu.dot_dimension_numbers<[1], [0], [0], [1], [0, 0, 1, 1], [], []>} : vector<64x32xbf16>, vector<32x32xbf16>, vector<64x32xf32> -> vector<64x32xf32>
    %c0_17 = arith.constant 0 : index
    %c0_18 = arith.constant 0 : index
    %19 = vector.load %arg8[%c0_17, %c0_18] : memref<1x96xf32, #tpu.memory_space<vmem>>, vector<1x32xf32>
    %20 = vector.broadcast %19 : vector<1x32xf32> to vector<64x32xf32>
    %21 = arith.addf %18, %20 : vector<64x32xf32>
    %c0_19 = arith.constant 0 : index
    %c32 = arith.constant 32 : index
    %22 = vector.load %arg7[%c0_19, %c32] : memref<32x96xbf16, #tpu.memory_space<vmem>>, vector<32x64xbf16>
    %23 = arith.truncf %15 : vector<64x32xf32> to vector<64x32xbf16>
    %cst_20 = arith.constant dense<0.000000e+00> : vector<64x64xf32>
    %24 = tpu.matmul %23, %22, %cst_20 {dimension_numbers = #tpu.dot_dimension_numbers<[1], [0], [0], [1], [0, 0, 1, 1], [], []>} : vector<64x32xbf16>, vector<32x64xbf16>, vector<64x64xf32> -> vector<64x64xf32>
    %c0_21 = arith.constant 0 : index
    %c32_22 = arith.constant 32 : index
    %25 = vector.load %arg8[%c0_21, %c32_22] : memref<1x96xf32, #tpu.memory_space<vmem>>, vector<1x64xf32>
    %26 = vector.broadcast %25 : vector<1x64xf32> to vector<64x64xf32>
    %27 = arith.addf %24, %26 : vector<64x64xf32>
    %cst_23 = arith.constant 0.353553385 : f32
    %28 = vector.broadcast %cst_23 : f32 to vector<64x32xf32>
    %29 = arith.mulf %21, %28 : vector<64x32xf32>
    %30 = arith.truncf %29 : vector<64x32xf32> to vector<64x32xbf16>
    %31 = vector.shape_cast %30 : vector<64x32xbf16> to vector<8x8x4x8xbf16>
    %32 = tpu.transpose %31, [1, 2, 0, 3] : vector<8x8x4x8xbf16> -> vector<8x4x8x8xbf16>
    %33 = vector.shape_cast %32 : vector<8x4x8x8xbf16> to vector<32x8x8xbf16>
    %34 = vector.extract_strided_slice %27 {offsets = [0, 0], sizes = [64, 32], strides = [1, 1]} : vector<64x64xf32> to vector<64x32xf32>
    %35 = arith.truncf %34 : vector<64x32xf32> to vector<64x32xbf16>
    %36 = vector.shape_cast %35 : vector<64x32xbf16> to vector<8x8x4x8xbf16>
    %37 = tpu.transpose %36, [1, 2, 0, 3] : vector<8x8x4x8xbf16> -> vector<8x4x8x8xbf16>
    %38 = vector.shape_cast %37 : vector<8x4x8x8xbf16> to vector<32x8x8xbf16>
    %39 = vector.extract_strided_slice %27 {offsets = [0, 32], sizes = [64, 32], strides = [1, 1]} : vector<64x64xf32> to vector<64x32xf32>
    %40 = arith.truncf %39 : vector<64x32xf32> to vector<64x32xbf16>
    %41 = vector.shape_cast %40 : vector<64x32xbf16> to vector<8x8x4x8xbf16>
    %42 = tpu.transpose %41, [1, 2, 0, 3] : vector<8x8x4x8xbf16> -> vector<8x4x8x8xbf16>
    %43 = vector.shape_cast %42 : vector<8x4x8x8xbf16> to vector<32x8x8xbf16>
    "tpu.trace_start"() <{level = 10 : i32, message = "bqd,bkd->bqk"}> : () -> ()
    %cst_24 = arith.constant dense<0.000000e+00> : vector<32x8x8xf32>
    %44 = tpu.matmul %33, %38, %cst_24 {dimension_numbers = #tpu.dot_dimension_numbers<[2], [2], [1], [1], [0, 0, 0, 1, 1, 1], [0], [0]>} : vector<32x8x8xbf16>, vector<32x8x8xbf16>, vector<32x8x8xf32> -> vector<32x8x8xf32>
    "tpu.trace_stop"() : () -> ()
    %cst_25 = arith.constant dense<0xFF800000> : vector<32x8xf32>
    %45 = vector.multi_reduction <maximumf>, %44, %cst_25 [2] : vector<32x8x8xf32> to vector<32x8xf32>
    %46 = vector.shape_cast %45 : vector<32x8xf32> to vector<32x8x1xf32>
    %47 = vector.broadcast %46 : vector<32x8x1xf32> to vector<32x8x8xf32>
    %48 = arith.subf %44, %47 : vector<32x8x8xf32>
    %49 = math.exp %48 : vector<32x8x8xf32>
    %cst_26 = arith.constant dense<0.000000e+00> : vector<32x8xf32>
    %50 = vector.multi_reduction <add>, %49, %cst_26 [2] : vector<32x8x8xf32> to vector<32x8xf32>
    %51 = vector.shape_cast %50 : vector<32x8xf32> to vector<32x8x1xf32>
    %52 = tpu.reciprocal %51 {approx = true} : vector<32x8x1xf32> -> vector<32x8x1xf32>
    %53 = vector.broadcast %52 : vector<32x8x1xf32> to vector<32x8x8xf32>
    %54 = arith.mulf %49, %53 : vector<32x8x8xf32>
    %55 = arith.truncf %54 : vector<32x8x8xf32> to vector<32x8x8xbf16>
    "tpu.trace_start"() <{level = 10 : i32, message = "bqk,bkd->bqd"}> : () -> ()
    %cst_27 = arith.constant dense<0.000000e+00> : vector<32x8x8xf32>
    %56 = tpu.matmul %55, %43, %cst_27 {dimension_numbers = #tpu.dot_dimension_numbers<[2], [1], [1], [2], [0, 0, 0, 1, 1, 2], [0], [0]>} : vector<32x8x8xbf16>, vector<32x8x8xbf16>, vector<32x8x8xf32> -> vector<32x8x8xf32>
    "tpu.trace_stop"() : () -> ()
    %57 = arith.truncf %56 : vector<32x8x8xf32> to vector<32x8x8xbf16>
    %58 = vector.shape_cast %57 : vector<32x8x8xbf16> to vector<8x4x8x8xbf16>
    %59 = tpu.transpose %58, [2, 0, 1, 3] : vector<8x4x8x8xbf16> -> vector<8x8x4x8xbf16>
    %60 = vector.shape_cast %59 : vector<8x8x4x8xbf16> to vector<64x32xbf16>
    %c0_28 = arith.constant 0 : index
    %c0_29 = arith.constant 0 : index
    %61 = vector.load %arg9[%c0_28, %c0_29] : memref<32x32xbf16, #tpu.memory_space<vmem>>, vector<32x32xbf16>
    %cst_30 = arith.constant dense<0.000000e+00> : vector<64x32xf32>
    %62 = tpu.matmul %60, %61, %cst_30 {dimension_numbers = #tpu.dot_dimension_numbers<[1], [0], [0], [1], [0, 0, 1, 1], [], []>} : vector<64x32xbf16>, vector<32x32xbf16>, vector<64x32xf32> -> vector<64x32xf32>
    %c0_31 = arith.constant 0 : index
    %c0_32 = arith.constant 0 : index
    %63 = vector.load %arg10[%c0_31, %c0_32] : memref<1x32xf32, #tpu.memory_space<vmem>>, vector<1x32xf32>
    %64 = vector.broadcast %63 : vector<1x32xf32> to vector<64x32xf32>
    %65 = arith.addf %62, %64 : vector<64x32xf32>
    %c0_33 = arith.constant 0 : index
    %c0_34 = arith.constant 0 : index
    %66 = vector.load %arg11[%c0_33, %c0_34] : memref<32x128xbf16, #tpu.memory_space<vmem>>, vector<32x128xbf16>
    %67 = arith.truncf %65 : vector<64x32xf32> to vector<64x32xbf16>
    %cst_35 = arith.constant dense<0.000000e+00> : vector<64x128xf32>
    %68 = tpu.matmul %67, %66, %cst_35 {dimension_numbers = #tpu.dot_dimension_numbers<[1], [0], [0], [1], [0, 0, 1, 1], [], []>} : vector<64x32xbf16>, vector<32x128xbf16>, vector<64x128xf32> -> vector<64x128xf32>
    %c0_36 = arith.constant 0 : index
    %c0_37 = arith.constant 0 : index
    %69 = vector.load %arg12[%c0_36, %c0_37] : memref<1x128xf32, #tpu.memory_space<vmem>>, vector<1x128xf32>
    %70 = vector.broadcast %69 : vector<1x128xf32> to vector<64x128xf32>
    %71 = arith.addf %68, %70 : vector<64x128xf32>
    %cst_38 = arith.constant 5.000000e-01 : f32
    %72 = vector.broadcast %cst_38 : f32 to vector<64x128xf32>
    %73 = arith.mulf %72, %71 : vector<64x128xf32>
    %cst_39 = arith.constant 4.471500e-02 : f32
    %74 = vector.broadcast %cst_39 : f32 to vector<64x128xf32>
    %75 = arith.mulf %74, %71 : vector<64x128xf32>
    %76 = arith.mulf %75, %71 : vector<64x128xf32>
    %77 = arith.mulf %76, %71 : vector<64x128xf32>
    %78 = arith.addf %71, %77 : vector<64x128xf32>
    %cst_40 = arith.constant 0.797884583 : f32
    %79 = vector.broadcast %cst_40 : f32 to vector<64x128xf32>
    %80 = arith.mulf %79, %78 : vector<64x128xf32>
    %81 = math.tanh %80 : vector<64x128xf32>
    %cst_41 = arith.constant 1.000000e+00 : f32
    %82 = vector.broadcast %cst_41 : f32 to vector<64x128xf32>
    %83 = arith.addf %82, %81 : vector<64x128xf32>
    %84 = arith.mulf %73, %83 : vector<64x128xf32>
    %c0_42 = arith.constant 0 : index
    %c0_43 = arith.constant 0 : index
    %85 = vector.load %arg13[%c0_42, %c0_43] : memref<128x32xbf16, #tpu.memory_space<vmem>>, vector<128x32xbf16>
    %86 = arith.truncf %84 : vector<64x128xf32> to vector<64x128xbf16>
    %cst_44 = arith.constant dense<0.000000e+00> : vector<64x32xf32>
    %87 = tpu.matmul %86, %85, %cst_44 {dimension_numbers = #tpu.dot_dimension_numbers<[1], [0], [0], [1], [0, 0, 1, 1], [], []>} : vector<64x128xbf16>, vector<128x32xbf16>, vector<64x32xf32> -> vector<64x32xf32>
    %c0_45 = arith.constant 0 : index
    %c0_46 = arith.constant 0 : index
    %88 = vector.load %arg14[%c0_45, %c0_46] : memref<1x32xf32, #tpu.memory_space<vmem>>, vector<1x32xf32>
    %89 = vector.broadcast %88 : vector<1x32xf32> to vector<64x32xf32>
    %90 = arith.addf %87, %89 : vector<64x32xf32>
    %91 = arith.addf %1, %90 : vector<64x32xf32>
    %cst_47 = arith.constant dense<0.000000e+00> : vector<64xf32>
    %92 = vector.multi_reduction <add>, %91, %cst_47 [1] : vector<64x32xf32> to vector<64xf32>
    %93 = vector.shape_cast %92 : vector<64xf32> to vector<64x1xf32>
    %cst_48 = arith.constant 3.200000e+01 : f32
    %94 = vector.broadcast %cst_48 : f32 to vector<64x1xf32>
    %95 = arith.divf %93, %94 : vector<64x1xf32>
    %96 = vector.broadcast %95 : vector<64x1xf32> to vector<64x32xf32>
    %97 = arith.subf %91, %96 : vector<64x32xf32>
    %98 = arith.mulf %97, %97 : vector<64x32xf32>
    %cst_49 = arith.constant dense<0.000000e+00> : vector<64xf32>
    %99 = vector.multi_reduction <add>, %98, %cst_49 [1] : vector<64x32xf32> to vector<64xf32>
    %100 = vector.shape_cast %99 : vector<64xf32> to vector<64x1xf32>
    %cst_50 = arith.constant 3.200000e+01 : f32
    %101 = vector.broadcast %cst_50 : f32 to vector<64x1xf32>
    %102 = arith.divf %100, %101 : vector<64x1xf32>
    %cst_51 = arith.constant 9.99999974E-6 : f32
    %103 = vector.broadcast %cst_51 : f32 to vector<64x1xf32>
    %104 = arith.addf %102, %103 : vector<64x1xf32>
    %105 = math.rsqrt %104 : vector<64x1xf32>
    %106 = vector.broadcast %105 : vector<64x1xf32> to vector<64x32xf32>
    %107 = arith.mulf %97, %106 : vector<64x32xf32>
    %c0_52 = arith.constant 0 : index
    %c0_53 = arith.constant 0 : index
    %108 = vector.load %arg15[%c0_52, %c0_53] : memref<1x32xf32, #tpu.memory_space<vmem>>, vector<1x32xf32>
    %109 = vector.broadcast %108 : vector<1x32xf32> to vector<64x32xf32>
    %110 = arith.mulf %107, %109 : vector<64x32xf32>
    %c0_54 = arith.constant 0 : index
    %c0_55 = arith.constant 0 : index
    %111 = vector.load %arg16[%c0_54, %c0_55] : memref<1x32xf32, #tpu.memory_space<vmem>>, vector<1x32xf32>
    %112 = vector.broadcast %111 : vector<1x32xf32> to vector<64x32xf32>
    %113 = arith.addf %110, %112 : vector<64x32xf32>
    %114 = vector.shape_cast %113 : vector<64x32xf32> to vector<8x8x32xf32>
    %c0_56 = arith.constant 0 : index
    %c0_57 = arith.constant 0 : index
    %c0_58 = arith.constant 0 : index
    %115 = vector.load %arg17[%c0_56, %c0_57, %c0_58] : memref<8x8x32xf32, #tpu.memory_space<vmem>>, vector<8x8x32xf32>
    tpu.vector_store %arg17[%c0_56, %c0_57, %c0_58], %114 {strides = array<i32>} : memref<8x8x32xf32, #tpu.memory_space<vmem>>, vector<8x8x32xf32>,
    return
  }
  func.func @transform_0(%arg0: i32) -> (i32, i32, i32) {
    %c0_i32 = arith.constant 0 : i32
    %c0_i32_0 = arith.constant 0 : i32
    %c0_i32_1 = arith.constant 0 : i32
    return %c0_i32, %arg0, %c0_i32_0 : i32, i32, i32
  }
  func.func @transform_1(%arg0: i32) -> (i32, i32, i32) {
    %c0_i32 = arith.constant 0 : i32
    %c0_i32_0 = arith.constant 0 : i32
    %c0_i32_1 = arith.constant 0 : i32
    return %c0_i32, %arg0, %c0_i32_0 : i32, i32, i32
  }
  func.func @transform_2(%arg0: i32) -> (i32, i32) {
    %c0_i32 = arith.constant 0 : i32
    %c0_i32_0 = arith.constant 0 : i32
    %c0_i32_1 = arith.constant 0 : i32
    return %c0_i32, %c0_i32_0 : i32, i32
  }
  func.func @transform_3(%arg0: i32) -> (i32, i32) {
    %c0_i32 = arith.constant 0 : i32
    %c0_i32_0 = arith.constant 0 : i32
    %c0_i32_1 = arith.constant 0 : i32
    return %c0_i32, %c0_i32_0 : i32, i32
  }
  func.func @transform_4(%arg0: i32) -> (i32, i32) {
    %c0_i32 = arith.constant 0 : i32
    %c0_i32_0 = arith.constant 0 : i32
    %c0_i32_1 = arith.constant 0 : i32
    return %c0_i32, %c0_i32_0 : i32, i32
  }
  func.func @transform_5(%arg0: i32) -> (i32, i32) {
    %c0_i32 = arith.constant 0 : i32
    %c0_i32_0 = arith.constant 0 : i32
    %c0_i32_1 = arith.constant 0 : i32
    return %c0_i32, %c0_i32_0 : i32, i32
  }
  func.func @transform_6(%arg0: i32) -> (i32, i32) {
    %c0_i32 = arith.constant 0 : i32
    %c0_i32_0 = arith.constant 0 : i32
    %c0_i32_1 = arith.constant 0 : i32
    return %c0_i32, %c0_i32_0 : i32, i32
  }
  func.func @transform_7(%arg0: i32) -> (i32, i32) {
    %c0_i32 = arith.constant 0 : i32
    %c0_i32_0 = arith.constant 0 : i32
    %c0_i32_1 = arith.constant 0 : i32
    return %c0_i32, %c0_i32_0 : i32, i32
  }
  func.func @transform_8(%arg0: i32) -> (i32, i32) {
    %c0_i32 = arith.constant 0 : i32
    %c0_i32_0 = arith.constant 0 : i32
    %c0_i32_1 = arith.constant 0 : i32
    return %c0_i32, %c0_i32_0 : i32, i32
  }
  func.func @transform_9(%arg0: i32) -> (i32, i32) {
    %c0_i32 = arith.constant 0 : i32
    %c0_i32_0 = arith.constant 0 : i32
    %c0_i32_1 = arith.constant 0 : i32
    return %c0_i32, %c0_i32_0 : i32, i32
  }
  func.func @transform_10(%arg0: i32) -> (i32, i32) {
    %c0_i32 = arith.constant 0 : i32
    %c0_i32_0 = arith.constant 0 : i32
    %c0_i32_1 = arith.constant 0 : i32
    return %c0_i32, %c0_i32_0 : i32, i32
  }
  func.func @transform_11(%arg0: i32) -> (i32, i32) {
    %c0_i32 = arith.constant 0 : i32
    %c0_i32_0 = arith.constant 0 : i32
    %c0_i32_1 = arith.constant 0 : i32
    return %c0_i32, %c0_i32_0 : i32, i32
  }
  func.func @transform_12(%arg0: i32) -> (i32, i32) {
    %c0_i32 = arith.constant 0 : i32
    %c0_i32_0 = arith.constant 0 : i32
    %c0_i32_1 = arith.constant 0 : i32
    return %c0_i32, %c0_i32_0 : i32, i32
  }
  func.func @transform_13(%arg0: i32) -> (i32, i32) {
    %c0_i32 = arith.constant 0 : i32
    %c0_i32_0 = arith.constant 0 : i32
    %c0_i32_1 = arith.constant 0 : i32
    return %c0_i32, %c0_i32_0 : i32, i32
  }
  func.func @transform_14(%arg0: i32) -> (i32, i32) {
    %c0_i32 = arith.constant 0 : i32
    %c0_i32_0 = arith.constant 0 : i32
    %c0_i32_1 = arith.constant 0 : i32
    return %c0_i32, %c0_i32_0 : i32, i32
  }
  func.func @transform_15(%arg0: i32) -> (i32, i32) {
    %c0_i32 = arith.constant 0 : i32
    %c0_i32_0 = arith.constant 0 : i32
    %c0_i32_1 = arith.constant 0 : i32
    return %c0_i32, %c0_i32_0 : i32, i32
  }
  func.func @transform_16(%arg0: i32) -> (i32, i32, i32) {
    %c0_i32 = arith.constant 0 : i32
    %c0_i32_0 = arith.constant 0 : i32
    %c0_i32_1 = arith.constant 0 : i32
    return %c0_i32, %arg0, %c0_i32_0 : i32, i32, i32
  }
}

</mosaic_0001>

<bundles_post_ra>
// kernel: tpu_custom_call.1
= control target key start
LH: loop header
LB: loop body
LE: loop exit
PB: predicated region body
PF: predicated region fallthrough
CT: control target
= control target key end

     0   :  { %s14694_s0 = inlined_call_operand.hbm [shape: f32[8,16,32], index: 0, kind: input, shape index: {}]   ;;  %s14695_s1 = inlined_call_operand.hbm [shape: f32[8,16,32], index: 1, kind: input, shape index: {}]   ;;  %s14696_s2 = inlined_call_operand.vmem [shape: bf16[32,32], index: 2, kind: input, shape index: {}]   ;;  %s14697_s3 = inlined_call_operand.vmem [shape: f32[1,32], index: 3, kind: input, shape index: {}]   ;;  %s14698_s4 = inlined_call_operand.vmem [shape: bf16[32,32], index: 4, kind: input, shape index: {}]   ;;  %s14699_s5 = inlined_call_operand.vmem [shape: f32[1,32], index: 5, kind: input, shape index: {}]   ;;  %s14700_s6 = inlined_call_operand.vmem [shape: bf16[32,96], index: 6, kind: input, shape index: {}]   ;;  %s14701_s7 = inlined_call_operand.vmem [shape: f32[1,96], index: 7, kind: input, shape index: {}]   ;;  %s14702_s8 = inlined_call_operand.vmem [shape: bf16[32,32], index: 8, kind: input, shape index: {}]   ;;  %s14703_s9 = inlined_call_operand.vmem [shape: f32[1,32], index: 9, kind: input, shape index: {}]   ;;  %s14704_s10 = inlined_call_operand.vmem [shape: bf16[32,128], index: 10, kind: input, shape index: {}]   ;;  %s14705_s11 = inlined_call_operand.vmem [shape: f32[1,128], index: 11, kind: input, shape index: {}]   ;;  %s14706_s12 = inlined_call_operand.vmem [shape: bf16[128,32], index: 12, kind: input, shape index: {}]   ;;  %s14707_s13 = inlined_call_operand.vmem [shape: f32[1,32], index: 13, kind: input, shape index: {}]   ;;  %s14708_s14 = inlined_call_operand.vmem [shape: f32[1,32], index: 14, kind: input, shape index: {}]   ;;  %s14709_s15 = inlined_call_operand.vmem [shape: f32[1,32], index: 15, kind: input, shape index: {}]   ;;  %s14710_s16 = inlined_call_operand.hbm [shape: f32[8,16,32], index: 16, kind: output, shape index: {}]  }
   0x1   :  { %14821 = sst [smem:[#allocation52_spill]] %s14694_s0 }
   0x2   :  { %14822 = sst [smem:[#allocation53_spill]] %s14707_s13 }
   0x3   :  { %14823 = sst [smem:[#allocation54_spill]] %s14708_s14 }
   0x4   :  { %14824 = sst [smem:[#allocation55_spill]] %s14709_s15 }
   0x5   :  { %14825 = sst [smem:[#allocation56_spill]] %s14710_s16 }
   0x6   :  { %21 = vsyncpa [#allocation3], 0 }
   0x7   :  { %23 = vsyncpa [#allocation3 + $0x1], 0 }
   0x8   :  { %24 = vsyncpa [#allocation6], 0 }
   0x9   :  { %26 = vsyncpa [#allocation6 + $0x1], 0 }
   0xa   :  { %27 = vsyncpa [#allocation4], 0 }
   0xb   :  { %29 = vsyncpa [#allocation4 + $0x1], 0  ;;  %s11000_s21 = smov 0   ;;  %s11002_s22 = smov 0  }
   0xc   :  { %s11004_s23 = smov 0   ;;  %s11006_s24 = smov 0  }
   0xd LB: > { %14826 = sst [smem:[#allocation11_spill]] %s10881_s21  ;;  %s11021_s25 = sadd.s32 4294967295, %s10893_s24   ;;  %s10893_s24 = sphi %s11006_s24, %s15134_s24   ;;  %s10889_s23 = sphi %s11004_s23, %s15136_s23   ;;  %s10885_s22 = sphi %s11002_s22, %s15138_s22   ;;  %s10881_s21 = sphi %s11000_s21, %s15137_s21  }
   0xe   : > { %14827 = sst [smem:[#allocation12_spill]] %s10889_s23  ;;  %s9676_s26 = sadd.s32 4294967294, %s10893_s24  }
   0xf   : > { %14828 = sst [smem:[#allocation13_spill]] %s11021_s25  ;;  %s11025_s27 = sadd.s32 1, %s10893_s24  }
  0x10   : > { %14829 = sst [smem:[#allocation14_spill]] %s11025_s27  ;;  %s42_s28 = sadd.s32 1, %s10889_s23 }
  0x11   : > { %s39_s29 = ssub.s32 %s10893_s24, %s11025_s27  ;;  %p49_p0 = scmp.ne.s32.totalorder %s10889_s23, %s10885_s22 }
  0x12   : > { %p40_p1 = scmp.eq.s32.totalorder %s39_s29, 0  ;;  %p50_p2 = scmp.eq.s32.totalorder %s10893_s24, 0 }
  0x13   : > { %p55_p3 = scmp.ne.s32.totalorder %s10885_s22, %s10881_s21  ;;  %p56_p4 = scmp.eq.s32.totalorder %s11021_s25, 0 }
  0x14   : > { %s11037_s30 = scalar_select %p40_p1, %s10889_s23, %s42_s28  }
  0x15   : > { %p11039_p5 = por %p50_p2, %p49_p0  ;;  %p11043_p6 = por %p56_p4, %p55_p3 }
  0x16   : > { %14830 = sst [smem:[#allocation15_spill]] %s11037_s30  ;;  %p399_p7 = scmp.eq.s32.totalorder %s11021_s25, 1 }
  0x17   : > { %s14832_s17 = scalar_select %p11043_p6, 1, 0 }
  0x18   : > { %p405_p8 = scmp.eq.s32.totalorder %s9676_s26, 1  ;;  %p10526_p10 = scmp.lt.s32.totalorder %s10893_s24, 2 }
  0x19   : > { %p11050_p11 = por %p399_p7, %p49_p0  ;;  %s11059_s20 = sand.u32 1, %s10889_s23  }
  0x1a   : > { %p11054_p12 = por %p405_p8, %p55_p3  ;;  %s14719_s28 = sshll.u32 %s10893_s24, 7 }
  0x1b   : > { %s14833_s18 = scalar_select %p11050_p11, 1, 0 }
  0x1c   : > { %s14835_s19 = scalar_select %p11054_p12, 1, 0 }
  0x1d   : > { %14834 = sst [smem:[#allocation16_spill]] %s14833_s18  ;;  %s14718_s29 = sshll.u32 %s11059_s20, 6 }
  0x1e   : > { %14836 = sst [smem:[#allocation17_spill]] %s14835_s19  ;;  %s14837_s27 = sld [smem:[#allocation52_spill]] }
  0x1f   : > { %s471_s16 = scalar_lea.vmem [#allocation2], %s14718_s29  ;;  %p11074_p13 = pnand %p10526_p10, %p11039_p5 }
  0x20   : > { %s477_s19 = sshll.u32 %s471_s16, 4  ;;  %s11078_s19 = int_to_ptr.vmem [resolvable:$true] %s477_s19 }
  0x21   : > { %p10765_p2 = pneg %p11074_p13 }
  0x24   : > { %s11068_s21 = scalar_lea.hbm %s14837_s27, %s14719_s28  ;;  %s10768_s29 = scalar_lea.hbm %s14837_s27, 2048 }
  0x25   : > { %s10763_s26 = scalar_lea.hbm %s11068_s21, 1024  ;;  %p10769_p5 = scmp.lt.u32.totalorder %s11068_s21, %s14837_s27 }
  0x26   : > { %p10764_p1 = scmp.ne.s32.totalorder %s11068_s21, %s10763_s26  ;;  %p10770_p7 = scmp.lt.u32.totalorder %s10768_s29, %s10763_s26 }
  0x27   : > { %p10772_p10 = scmp.lt.u32.totalorder %s10763_s26, %s11068_s21 }
  0x28   : > { %p10766_p3 = pnand %p10765_p2, %p10764_p1  ;;  %p10771_p8 = por %p10770_p7, %p10769_p5 }
  0x2a   : > { %p10767_p4 = pneg %p10766_p3  ;;  %p10773_p9 = por %p10772_p10, %p10771_p8 }
  0x2c   : > { %p10774_p0 = pnand %p10773_p9, %p10767_p4 }
  0x2e   : > { %10777 = shalt.err (!%p10774_p0)
}
  0x2f   : > { %s10778_s30 = scalar_lea.vmem %s11078_s19, 1024  ;;  %s10895_s16 = smov [#allocation2]  }
  0x30   : > { %p10779_p1 = scmp.ne.s32.totalorder %s11078_s19, %s10778_s30  ;;  %s10783_s0 = sshll.u32 %s10895_s16, 4  ;;  %s10784_s0 = int_to_ptr.vmem [resolvable:$false] %s10783_s0 }
  0x31   : > { %s10785_s18 = scalar_lea.vmem %s10784_s0, 2048  ;;  %p10786_p11 = scmp.lt.s32.totalorder %s11078_s19, %s10784_s0 }
  0x32   : > { %p10781_p3 = pnand %p10779_p1, %p10765_p2  ;;  %p10787_p5 = scmp.lt.s32.totalorder %s10785_s18, %s10778_s30 }
  0x34   : > { %p10782_p12 = pneg %p10781_p3  ;;  %p10788_p7 = por %p10787_p5, %p10786_p11 }
  0x36   : > { %p10789_p8 = pnand %p10788_p7, %p10782_p12 }
  0x38   : > { %10792 = shalt.err (!%p10789_p8)
}
  0x39   : > { %s14725_s28 = smov 256   ;;  %s10897_s29 = smov 128  }
  0x3a   : > { %s10898_s26 = smov 8   ;;  %s14839_s30 = scalar_lea.sflag [#allocation3], %s11059_s20 }
  0x3b   : > { %10518 = dma.hbm_to_vmem [thread:$0]  (!%p11074_p13), %s11068_s21, 1024, %s11078_s19, %s14839_s30, %s14725_s28, %s10897_s29, %s10898_s26  }
  0x3c   : > { %p505_p9 = scmp.lt.s32.totalorder %s10893_s24, 3  ;;  %s14840_s16 = sshll.u32 %s10893_s24, 7 }
  0x3d   : > { %s11118_s27 = scalar_lea.hbm %s14695_s1, %s14840_s16  ;;  %p14841_p11 = scmp.ge.s32.totalorder %s10893_s24, 1 }
  0x3e   : > { %s14843_s15 = sshll.u32 %s11059_s20, 6  ;;  %s488_s21 = scalar_lea.sflag [#allocation6], %s11059_s20 }
  0x3f   : > { %p11122_p12 = pnand %p14841_p11, %p505_p9  ;;  %s491_s14 = scalar_lea.vmem [#allocation5], %s14843_s15 }
  0x40   : > { %s497_s13 = sshll.u32 %s491_s14, 4  ;;  %s10793_s19 = scalar_lea.hbm %s11118_s27, 1024  ;;  %s11128_s13 = int_to_ptr.vmem [resolvable:$true] %s497_s13 }
  0x41   : > { %p10794_p0 = scmp.ne.s32.totalorder %s11118_s27, %s10793_s19  ;;  %s10798_s0 = scalar_lea.hbm %s14695_s1, 2048 }
  0x42   : > { %p10799_p1 = scmp.lt.u32.totalorder %s11118_s27, %s14695_s1  ;;  %p10800_p3 = scmp.lt.u32.totalorder %s10798_s0, %s10793_s19 }
  0x43   : > { %p10796_p4 = pnand %p10794_p0, %p10765_p2  ;;  %p10802_p7 = scmp.lt.u32.totalorder %s10793_s19, %s11118_s27 }
  0x44   : > { %p10801_p5 = por %p10800_p3, %p10799_p1 }
  0x45   : > { %p10797_p10 = pneg %p10796_p4 }
  0x46   : > { %p10803_p8 = por %p10802_p7, %p10801_p5 }
  0x48   : > { %p10804_p9 = pnand %p10803_p8, %p10797_p10 }
  0x4a   : > { %10807 = shalt.err (!%p10804_p9)
}
  0x4b   : > { %s10808_s14 = scalar_lea.vmem %s11128_s13, 1024  ;;  %s10899_s15 = smov [#allocation5]  }
  0x4c   : > { %p10809_p11 = scmp.ne.s32.totalorder %s11128_s13, %s10808_s14  ;;  %s10813_s30 = sshll.u32 %s10899_s15, 4  ;;  %s10814_s30 = int_to_ptr.vmem [resolvable:$false] %s10813_s30 }
  0x4d   : > { %s10815_s28 = scalar_lea.vmem %s10814_s30, 2048  ;;  %p10816_p6 = scmp.lt.s32.totalorder %s11128_s13, %s10814_s30 }
  0x4e   : > { %p10811_p0 = pnand %p10809_p11, %p10765_p2  ;;  %p10817_p1 = scmp.lt.s32.totalorder %s10815_s28, %s10808_s14 }
  0x50   : > { %p10812_p4 = pneg %p10811_p0  ;;  %p10818_p3 = por %p10817_p1, %p10816_p6 }
  0x52   : > { %p10819_p5 = pnand %p10818_p3, %p10812_p4 }
  0x54   : > { %10822 = shalt.err (!%p10819_p5)
}
  0x55   : > { %s14844_s19 = smov 256   ;;  %509 = sbr.rel (%p11122_p12) target bundleno = 2889 (0xb49), region = 84 }
  0x56   : > { %10521 = dma.hbm_to_vmem [thread:$0]  (!%p11074_p13), %s11118_s27, 1024, %s11128_s13, %s488_s21, %s14844_s19, %s10897_s29, %s10898_s26  }
  0x5c   : > { %s11162_s16 = sand.u32 1, %s10885_s22   ;;  %p14845_p6 = scmp.ne.s32.totalorder %s14832_s17, 0 }
  0x5d   : > { %s11165_s0 = sshll.u32 %s11162_s16, 6  ;;  %s512_s23 = scalar_lea.sflag [#allocation3], %s11162_s16 }
  0x5e   : > { %s11169_s18 = scalar_lea.vmem [#allocation2], %s11165_s0 }
  0x5f   : > { %10868 = dma.done.wait (%p14845_p6), %s512_s23, 1024  }
  0x60   : > { %10870 = vsyncadd (%p14845_p6), %s512_s23, 4294966272  ;;  %s521_s13 = scalar_lea.sflag [#allocation6], %s11162_s16  ;;  %s524_s25 = scalar_lea.vmem [#allocation5], %s11165_s0 }
  0x61   : > { %10872 = dma.done.wait (%p14845_p6), %s521_s13, 1024  }
  0x62   : > { %10874 = vsyncadd (%p14845_p6), %s521_s13, 4294966272  ;;  %v10577_v0 = vld [vmem:[%s14696_s2] sm:$0xff]   ;;  %v10578_v1 = vld [vmem:[%s14696_s2 + $0x8] sm:$0xff]   ;;  %vm622_vm0 = vcmask 261120   ;;  %s10900_s13 = smov 96   ;;  %s10901_s21 = smov 120  }
  0x63   : > { %10029 = vmatprep.subr.bf16.mxu1 %v10577_v0  ;;  %v587_v2 = vld [vmem:[%s524_s25] sm:$0xff]  ;;  %v588_v3 = vld [vmem:[%s524_s25 + $0x8] sm:$0xff]  ;;  %v589_v5 = vld [vmem:[%s524_s25 + $0x10] sm:$0xff]  ;;  %s10902_s14 = smov 112   ;;  %s10903_s15 = smov 104   ;;  %vm10905_vm1 = vmmov 0  }
  0x64   : > { %10030 = vmatpush3.bf16.msra.mxu1 %v10577_v0  ;;  %v599_v4 = vpack.c.bf16 %v588_v3, %v587_v2  ;;  %v590_v6 = vld [vmem:[%s524_s25 + $0x18] sm:$0xff]  ;;  %v591_v7 = vld [vmem:[%s524_s25 + $0x20] sm:$0xff]  ;;  %v592_v8 = vld [vmem:[%s524_s25 + $0x28] sm:$0xff]  ;;  %vm4372_vm2 = vcmask 64512   ;;  %vm6232_vm3 = vcmask 1043456   ;;  %s10911_s27 = smov 24  }
  0x65   : > { %10031 = vmatprep.subr.bf16.mxu1 %v10578_v1  ;;  %v10579_v9 = vld [vmem:[%s14698_s4] sm:$0xff]   ;;  %v600_v10 = vpack.c.bf16 %v590_v6, %v589_v5  ;;  %v601_v11 = vpack.c.bf16 %v592_v8, %v591_v7  ;;  %v10580_v12 = vld [vmem:[%s14698_s4 + $0x8] sm:$0xff]   ;;  %v593_v13 = vld [vmem:[%s524_s25 + $0x30] sm:$0xff]  ;;  %vm8986_vm4 = vcmask 130048   ;;  %vm8995_vm5 = vcmask 195584   ;;  %s15123_s20 = sld [smem:[#allocation53_spill]] }
  0x66   : > { %10033 = vmatprep.mubr.msk.bf16.mxu1 %vm622_vm0, %v599_v4  ;;  %v594_v14 = vld [vmem:[%s524_s25 + $0x38] sm:$0xff]  ;;  %v579_v15 = vld [vmem:[%s11169_s18] sm:$0xff]  ;;  %v580_v16 = vld [vmem:[%s11169_s18 + $0x8] sm:$0xff]  ;;  %s10910_s25 = smov 8   ;;  %s15124_s26 = sld [smem:[#allocation54_spill]] }
  0x67   : > { %v10581_v17 = vld [vmem:[%s14700_s6] sm:$0xff]   ;;  %v10582_v18 = vld [vmem:[%s14700_s6 + $0x8] sm:$0xff]   ;;  %v602_v19 = vpack.c.bf16 %v594_v14, %v593_v13  ;;  %v704_v20 = vpack.c.bf16 %v580_v16, %v579_v15  ;;  %v581_v21 = vld [vmem:[%s11169_s18 + $0x10] sm:$0xff]  ;;  %s15127_s30 = sld [smem:[#allocation16_spill]] }
  0x68   : > { %10032 = vmatpush3.bf16.msra.mxu1 %v10578_v1  ;;  %912 = vrot.lane.b32.xlu0 %v10581_v17, %s10900_s13  ;;  %v582_v22 = vld [vmem:[%s11169_s18 + $0x18] sm:$0xff]  ;;  %v583_v23 = vld [vmem:[%s11169_s18 + $0x20] sm:$0xff]  ;;  %v584_v24 = vld [vmem:[%s11169_s18 + $0x28] sm:$0xff] }
  0x69   : > { %10041 = vmatprep.subr.bf16.mxu1 %v10579_v9  ;;  %10053 = vmatprep.subr.bf16.mxu0 %v10581_v17  ;;  %v705_v25 = vpack.c.bf16 %v582_v22, %v581_v21  ;;  %v706_v26 = vpack.c.bf16 %v584_v24, %v583_v23  ;;  %v585_v27 = vld [vmem:[%s11169_s18 + $0x30] sm:$0xff]  ;;  %v586_v28 = vld [vmem:[%s11169_s18 + $0x38] sm:$0xff]  ;;  %v11220_v31 = vld [vmem:[%s14701_s7] ss:$0 sm:$0xff] }
  0x6a   : > { %10054 = vmatpush3.bf16.msra.mxu0 %v10581_v17  ;;  %v707_v29 = vpack.c.bf16 %v586_v28, %v585_v27  ;;  %918 = vrot.lane.b32.xlu1 %v11220_v31, %s10900_s13  ;;  %v9687_v34 = vld [vmem:[%s14697_s3] ss:$0 sm:$0xff] }
  0x6b   : > { %10034 = vmatmul.mubr.msk.bf16.vlgmr.msra.gmra.mrb[0].mxu1 %vm622_vm0, %v600_v10  ;;  %10055 = vmatprep.subr.bf16.mxu0 %v10582_v18  ;;  %v9694_v54 = vld [vmem:[%s14699_s5] ss:$0 sm:$0xff] }
  0x6c   : > { %10037 = vmatprep.mubr.msk.bf16.mxu1 %vm622_vm0, %v601_v11  ;;  %10042 = vmatpush3.bf16.msra.mxu1 %v10579_v9 }
  0x6d   : > { %10043 = vmatprep.subr.bf16.mxu1 %v10580_v12  ;;  %914 = vrot.lane.b32.xlu0 %v10582_v18, %s10900_s13  ;;  %p15129_p2 = scmp.ne.s32.totalorder %s15127_s30, 0 }
  0x6e   : > { %10056 = vmatpush3.bf16.msra.mxu0 %v10582_v18 }
  0x70   : > { %10044 = vmatpush3.bf16.msra.mxu1 %v10580_v12 }
  0x73   : > { %10038 = vmatmul.mubr.msk.bf16.gmra.mrb[4].mxu1 %vm622_vm0, %v602_v19 }
  0x74   : > { %10045 = vmatprep.mubr.msk.bf16.mxu1 %vm622_vm0, %v704_v20 }
  0x7b   : > { %10046 = vmatmul.mubr.msk.bf16.vlgmr.msra.gmra.mrb[8].mxu1 %vm622_vm0, %v705_v25 }
  0x7c   : > { %10049 = vmatprep.mubr.msk.bf16.mxu1 %vm622_vm0, %v706_v26 }
  0x83   : > { %10050 = vmatmul.mubr.msk.bf16.gmra.mrb[12].mxu1 %vm622_vm0, %v707_v29 }
  0xda   : > { %v913_v30 = vpop.permute.xlu0 %912 }
  0xdb   : > { %10065 = vmatprep.subr.bf16.mxu1 %v913_v30 }
  0xdc   : > { %10066 = vmatpush3.bf16.msra.mxu1 %v913_v30 }
  0xdf   : > { %v915_v32 = vpop.permute.xlu0 %914 }
  0xe0   : > { %10067 = vmatprep.subr.bf16.mxu1 %v915_v32 }
  0xe1   : > { %10068 = vmatpush3.bf16.msra.mxu1 %v915_v32 }
 0x13e   : > { %v10035_v33 = vpop.f32.mrb[0].mxu1 }
 0x13f   : > { %v669_v35 = vpop.f32.mrb[1].mxu1  ;;  %v678_v37 = vadd.f32 %v10035_v33, %v9687_v34 }
 0x140   : > { %v10036_v36 = vpop.f32.mrb[2].mxu1  ;;  %v670_v40 = vadd.f32 %v9687_v34, %v669_v35 }
 0x141   : > { %v681_v38 = vadd.f32 %v10036_v36, %v9687_v34  ;;  %v672_v39 = vpop.f32.mrb[3].mxu1 }
 0x142   : > { %v673_v41 = vadd.f32 %v9687_v34, %v672_v39 }
 0x143   : > { %v809_v42 = vpack.c.bf16 %v681_v38, %v678_v37 }
 0x144   : > { %v808_v43 = vpack.c.bf16 %v673_v41, %v670_v40  ;;  %v919_v40 = vpop.permute.xlu1 %918 }
 0x146   : > { %v10039_v44 = vpop.f32.mrb[4].mxu1  ;;  %10057 = vmatprep.mubr.msk.bf16.mxu0 %vm622_vm0, %v808_v43 }
 0x147   : > { %v685_v45 = vpop.f32.mrb[5].mxu1  ;;  %10058 = vmatmul.mubr.msk.bf16.vlgmr.msra.gmra.mrb[0].mxu0 %vm622_vm0, %v809_v42  ;;  %v694_v47 = vadd.f32 %v10039_v44, %v9687_v34 }
 0x148   : > { %v10040_v46 = vpop.f32.mrb[6].mxu1  ;;  %v686_v50 = vadd.f32 %v9687_v34, %v685_v45 }
 0x149   : > { %v697_v48 = vadd.f32 %v10040_v46, %v9687_v34  ;;  %v688_v49 = vpop.f32.mrb[7].mxu1 }
 0x14a   : > { %v689_v51 = vadd.f32 %v9687_v34, %v688_v49 }
 0x14b   : > { %v811_v52 = vpack.c.bf16 %v697_v48, %v694_v47 }
 0x14c   : > { %v810_v53 = vpack.c.bf16 %v689_v51, %v686_v50 }
 0x14e   : > { %v10047_v55 = vpop.f32.mrb[8].mxu1  ;;  %10061 = vmatprep.mubr.msk.bf16.mxu0 %vm622_vm0, %v810_v53 }
 0x14f   : > { %v782_v56 = vadd.f32 %v10047_v55, %v9694_v54  ;;  %v773_v57 = vpop.f32.mrb[9].mxu1  ;;  %10062 = vmatmul.mubr.msk.bf16.gmra.mrb[4].mxu0 %vm622_vm0, %v811_v52 }
 0x150   : > { %v774_v58 = vadd.f32 %v9694_v54, %v773_v57  ;;  %v10048_v59 = vpop.f32.mrb[10].mxu1 }
 0x151   : > { %v785_v60 = vadd.f32 %v10048_v59, %v9694_v54  ;;  %v776_v61 = vpop.f32.mrb[11].mxu1 }
 0x152   : > { %v777_v62 = vadd.f32 %v9694_v54, %v776_v61 }
 0x153   : > { %v909_v63 = vpack.c.bf16 %v785_v60, %v782_v56  ;;  %v14727_v60 = vmov 0.0  }
 0x154   : > { %v908_v0 = vpack.c.bf16 %v777_v62, %v774_v58  ;;  %10077 = vmatprep.subr.bf16.mxu0 %v14727_v60  ;;  %10083 = vmatprep.subr.bf16.mxu1 %v14727_v60 }
 0x155   : > { %10079 = vmatprep.mubr.msk.bf16.mxu0 %vm10905_vm1, %v14727_v60 }
 0x156   : > { %v10051_v1 = vpop.f32.mrb[12].mxu1  ;;  %10069 = vmatprep.mubr.msk.bf16.mxu1 %vm622_vm0, %v908_v0 }
 0x157   : > { %v798_v2 = vadd.f32 %v10051_v1, %v9694_v54  ;;  %v789_v3 = vpop.f32.mrb[13].mxu1  ;;  %10070 = vmatmul.mubr.msk.bf16.vlgmr.msra.gmra.mrb[16].mxu1 %vm622_vm0, %v909_v63 }
 0x158   : > { %v790_v4 = vadd.f32 %v9694_v54, %v789_v3  ;;  %v10052_v5 = vpop.f32.mrb[14].mxu1  ;;  %v10906_v3 = vmov 1983009808  }
 0x159   : > { %v801_v6 = vadd.f32 %v10052_v5, %v9694_v54  ;;  %v792_v7 = vpop.f32.mrb[15].mxu1  ;;  %v1112_v5 = vlaneseq }
 0x15a   : > { %v793_v8 = vadd.f32 %v9694_v54, %v792_v7 }
 0x15b   : > { %v911_v9 = vpack.c.bf16 %v801_v6, %v798_v2 }
 0x15c   : > { %v910_v10 = vpack.c.bf16 %v793_v8, %v790_v4  ;;  %v1110_v4 = vunpack.c.l.s4 %v10906_v3  ;;  %v10907_v8 = vmov 1934713408  }
 0x15e   : > { %10073 = vmatprep.mubr.msk.bf16.mxu1 %vm622_vm0, %v910_v10  ;;  %v1111_v10 = vunpack.c.0.s8 %v1110_v4 }
 0x15f   : > { %10074 = vmatmul.mubr.msk.bf16.gmra.mrb[20].mxu1 %vm622_vm0, %v911_v9  ;;  %v1141_v9 = vunpack.c.l.s4 %v10907_v8 }
 0x160   : > { %10085 = vmatprep.mubr.msk.bf16.mxu1 %vm10905_vm1, %v14727_v60 }
 0x21a   : > { %v10059_v11 = vpop.f32.mrb[0].mxu0 }
 0x21b   : > { %v886_v12 = vadd.f32 %v10059_v11, %v11220_v31  ;;  %v877_v13 = vpop.f32.mrb[1].mxu0  ;;  %v1113_v11 = vshrl.u32 %v1112_v5, 7 }
 0x21c   : > { %v878_v14 = vadd.f32 %v11220_v31, %v877_v13  ;;  %v10060_v15 = vpop.f32.mrb[2].mxu0 }
 0x21d   : > { %v889_v16 = vadd.f32 %v10060_v15, %v11220_v31  ;;  %v880_v17 = vpop.f32.mrb[3].mxu0  ;;  %v1000_v19 = vmul.f32 0.35355338, %v886_v12  ;;  %v14729_v15 = vmov 0  }
 0x21e   : > { %v881_v18 = vadd.f32 %v11220_v31, %v880_v17  ;;  %v998_v21 = vmul.f32 0.35355338, %v878_v14  ;;  %v1142_v14 = vunpack.c.0.s8 %v1141_v9  ;;  %v11333_v17 = vsub.s32 %v1111_v10, %v1113_v11 }
 0x21f   : > { %v1001_v20 = vmul.f32 0.35355338, %v889_v16  ;;  %v11331_v16 = vpack.i.b16 %v14729_v15, %v14729_v15 }
 0x220   : > { %v999_v22 = vmul.f32 0.35355338, %v881_v18  ;;  %14848 = vst [vmem:[#allocation20_spill] sm:$0xff] %v11333_v17 }
 0x221   : > { %v11242_v23 = vpack.c.bf16 %v1001_v20, %v1000_v19  ;;  %14847 = vst [vmem:[#allocation19_spill] sm:$0xff] %v11331_v16 }
 0x222   : > { %v11244_v24 = vpack.c.bf16 %v999_v22, %v998_v21  ;;  %v10063_v25 = vpop.f32.mrb[4].mxu0 }
 0x223   : > { %v902_v26 = vadd.f32 %v10063_v25, %v11220_v31  ;;  %1016 = vrot.lane.b32.xlu0 %v11242_v23, %s10901_s21  ;;  %v893_v27 = vpop.f32.mrb[5].mxu0  ;;  %v1064_v18 = vshrl.u32 %v11242_v23, 16 }
 0x224   : > { %v894_v28 = vadd.f32 %v11220_v31, %v893_v27  ;;  %v10064_v29 = vpop.f32.mrb[6].mxu0  ;;  %1014 = vrot.lane.b32.xlu1 %v11244_v24, %s10901_s21  ;;  %v1042_v22 = vshrl.u32 %v11244_v24, 16 }
 0x225   : > { %v905_v30 = vadd.f32 %v10064_v29, %v11220_v31  ;;  %v896_v32 = vpop.f32.mrb[7].mxu0  ;;  %v1004_v34 = vmul.f32 0.35355338, %v902_v26 }
 0x226   : > { %v897_v33 = vadd.f32 %v11220_v31, %v896_v32  ;;  %v1002_v36 = vmul.f32 0.35355338, %v894_v28 }
 0x227   : > { %v1005_v35 = vmul.f32 0.35355338, %v905_v30  ;;  %1024 = vrot.lane.b32.xlu0 %v11242_v23, %s10902_s14 }
 0x228   : > { %v1003_v37 = vmul.f32 0.35355338, %v897_v33  ;;  %1022 = vrot.lane.b32.xlu1 %v11244_v24, %s10902_s14 }
 0x229   : > { %v11258_v38 = vpack.c.bf16 %v1005_v35, %v1004_v34  ;;  %v11350_v34 = vsub.s32 %v1142_v14, %v1113_v11 }
 0x22a   : > { %v11260_v39 = vpack.c.bf16 %v1003_v37, %v1002_v36  ;;  %v10071_v41 = vpop.f32.mrb[16].mxu1 }
 0x22b   : > { %1020 = vrot.lane.b32.xlu0 %v11258_v38, %s10901_s21  ;;  %v967_v31 = vpop.f32.mrb[17].mxu1  ;;  %v976_v43 = vadd.f32 %v10071_v41, %v919_v40  ;;  %v1096_v26 = vshrl.u32 %v11258_v38, 16 }
 0x22c   : > { %1018 = vrot.lane.b32.xlu1 %v11260_v39, %s10901_s21  ;;  %v10072_v42 = vpop.f32.mrb[18].mxu1  ;;  %v968_v46 = vadd.f32 %v967_v31, %v919_v40  ;;  %v1080_v27 = vshrl.u32 %v11260_v39, 16 }
 0x22d   : > { %v979_v44 = vadd.f32 %v10072_v42, %v919_v40  ;;  %v970_v45 = vpop.f32.mrb[19].mxu1 }
 0x22e   : > { %v971_v47 = vadd.f32 %v970_v45, %v919_v40 }
 0x22f   : > { %v11266_v48 = vpack.c.bf16 %v979_v44, %v976_v43  ;;  %1028 = vrot.lane.b32.xlu0 %v11258_v38, %s10902_s14 }
 0x230   : > { %v11270_v49 = vpack.c.bf16 %v971_v47, %v968_v46  ;;  %1026 = vrot.lane.b32.xlu1 %v11260_v39, %s10902_s14 }
 0x231   : > { %v2184_v32 = vshrl.u32 %v11266_v48, 16 }
 0x232   : > { %v10075_v50 = vpop.f32.mrb[20].mxu1  ;;  %v2168_v33 = vshrl.u32 %v11270_v49, 16 }
 0x233   : > { %2142 = vrot.lane.b32.xlu0 %v11266_v48, %s10901_s21  ;;  %v983_v51 = vpop.f32.mrb[21].mxu1  ;;  %v992_v53 = vadd.f32 %v10075_v50, %v919_v40 }
 0x234   : > { %v10076_v52 = vpop.f32.mrb[22].mxu1  ;;  %2140 = vrot.lane.b32.xlu1 %v11270_v49, %s10901_s21  ;;  %v984_v56 = vadd.f32 %v983_v51, %v919_v40 }
 0x235   : > { %v995_v54 = vadd.f32 %v10076_v52, %v919_v40  ;;  %v986_v55 = vpop.f32.mrb[23].mxu1 }
 0x236   : > { %v987_v57 = vadd.f32 %v986_v55, %v919_v40 }
 0x237   : > { %v11278_v58 = vpack.c.bf16 %v995_v54, %v992_v53  ;;  %2150 = vrot.lane.b32.xlu0 %v11266_v48, %s10902_s14 }
 0x238   : > { %v11282_v59 = vpack.c.bf16 %v987_v57, %v984_v56  ;;  %2148 = vrot.lane.b32.xlu1 %v11270_v49, %s10902_s14 }
 0x23b   : > { %2158 = vrot.lane.b32.xlu0 %v11266_v48, %s10903_s15 }
 0x23c   : > { %2156 = vrot.lane.b32.xlu1 %v11270_v49, %s10903_s15 }
 0x23f   : > { %2146 = vrot.lane.b32.xlu0 %v11278_v58, %s10901_s21 }
 0x240   : > { %2144 = vrot.lane.b32.xlu1 %v11282_v59, %s10901_s21 }
 0x243   : > { %2154 = vrot.lane.b32.xlu0 %v11278_v58, %s10902_s14 }
 0x244   : > { %2152 = vrot.lane.b32.xlu1 %v11282_v59, %s10902_s14  ;;  %s15125_s14 = sld [smem:[#allocation55_spill]] }
 0x247   : > { %2162 = vrot.lane.b32.xlu0 %v11278_v58, %s10903_s15 }
 0x248   : > { %2160 = vrot.lane.b32.xlu1 %v11282_v59, %s10903_s15 }
 0x24b   : > { %1032 = vrot.lane.b32.xlu0 %v11242_v23, %s10903_s15 }
 0x24c   : > { %1030 = vrot.lane.b32.xlu1 %v11244_v24, %s10903_s15 }
 0x24f   : > { %1036 = vrot.lane.b32.xlu0 %v11258_v38, %s10903_s15 }
 0x250   : > { %1034 = vrot.lane.b32.xlu1 %v11260_v39, %s10903_s15  ;;  %s14619_s15 = scalar_lea.vmem [#allocation7], %s11165_s0  ;;  %s15126_s0 = sld [smem:[#allocation13_spill]] }
 0x251   : > { %s9580_s19 = sshll.u32 %s14619_s15, 4  ;;  %s14647_s19 = int_to_ptr.vmem [resolvable:$true] %s9580_s19 }
 0x252   : > { %s10823_s29 = scalar_lea.vmem %s14647_s19, 1024 }
 0x253   : > { %3252 = vrot.lane.b32.xlu0 %v11270_v49, %s10900_s13  ;;  %p10824_p13 = scmp.ne.s32.totalorder %s14647_s19, %s10823_s29 }
 0x254   : > { %3254 = vrot.lane.b32.xlu1 %v11266_v48, %s10900_s13 }
 0x255   : > { %p10825_p12 = pnand %p10824_p13, %p15129_p2 }
 0x256   : > { %s9850_s28 = sshll.u32 %s15126_s0, 7 }
 0x257   : > { %3258 = vrot.lane.b32.xlu0 %v11278_v58, %s10900_s13  ;;  %p10826_p10 = pneg %p10825_p12 }
 0x258   : > { %3256 = vrot.lane.b32.xlu1 %v11282_v59, %s10900_s13 }
 0x295   : > { %v1017_v61 = vpop.permute.xlu0 %1016 }
 0x296   : > { %v1015_v62 = vpop.permute.xlu1 %1014  ;;  %v1065_v19 = vshrl.u32 %v1017_v61, 16  ;;  %v11338_v20 = vpack.i.b16 %v1017_v61, %v11242_v23 }
 0x297   : > { %v11341_v21 = vpack.i.b16 %v1015_v62, %v11244_v24  ;;  %v1043_v25 = vshrl.u32 %v1015_v62, 16  ;;  %v2216_v24 = vshrl.u32 %v11278_v58, 16 }
 0x298   : > { %v11353_v35 = vpack.i.b16 %v1065_v19, %v1064_v18  ;;  %v1240_v41 = vcombine.high %v11338_v20, %v11331_v16  ;;  %v11362_v31 = vrot.slane %v11338_v20, %v11333_v17 }
 0x299   : > { %v11316_v63 = vpop.permute.xlu0 %1024  ;;  %v11364_v42 = vpack.i.b16 %v1043_v25, %v1042_v22  ;;  %v1108_v43 = vcombine.high %v11341_v21, %v11331_v16  ;;  %v11370_v44 = vrot.slane %v11341_v21, %v11333_v17 }
 0x29a   : > { %v11318_v0 = vpop.permute.xlu1 %1022 }
 0x29d   : > { %v11320_v1 = vpop.permute.xlu0 %1020 }
 0x29e   : > { %v11322_v2 = vpop.permute.xlu1 %1018  ;;  %v11374_v45 = vpack.i.b16 %v11320_v1, %v11258_v38  ;;  %v1097_v20 = vshrl.u32 %v11320_v1, 16  ;;  %v11485_v38 = vrot.slane %v1108_v43, %v11333_v17 }
 0x2a1   : > { %v11324_v6 = vpop.permute.xlu0 %1028 }
 0x2a2   : > { %v11326_v7 = vpop.permute.xlu1 %1026 }
 0x2a3   : > { %14846 = vst [vmem:[#allocation18_spill] sm:$0xff] %v11326_v7 }
 0x2a5   : > { %v2143_v12 = vpop.permute.xlu0 %2142 }
 0x2a6   : > { %3262 = vrot.lane.b32.xlu0 %v2143_v12, %s10900_s13  ;;  %v2141_v13 = vpop.permute.xlu1 %2140  ;;  %v2182_v28 = vpack.i.b16 %v2143_v12, %v11266_v48  ;;  %v2185_v29 = vshrl.u32 %v2143_v12, 16 }
 0x2a7   : > { %3260 = vrot.lane.b32.xlu1 %v2141_v13, %s10900_s13  ;;  %v2166_v36 = vpack.i.b16 %v2141_v13, %v11270_v49  ;;  %v2169_v37 = vshrl.u32 %v2141_v13, 16 }
 0x2a8   : > { %v2186_v46 = vpack.i.b16 %v2185_v29, %v2184_v32  ;;  %v2360_v47 = vcombine.high %v2182_v28, %v11331_v16  ;;  %v11378_v49 = vrot.slane %v2182_v28, %v11333_v17  ;;  %v1078_v29 = vpack.i.b16 %v11322_v2, %v11260_v39 }
 0x2a9   : > { %v2151_v30 = vpop.permute.xlu0 %2150  ;;  %v2170_v54 = vpack.i.b16 %v2169_v37, %v2168_v33  ;;  %v2228_v55 = vcombine.high %v2166_v36, %v11331_v16  ;;  %v11383_v56 = vrot.slane %v2166_v36, %v11333_v17  ;;  %v1081_v33 = vshrl.u32 %v11322_v2, 16 }
 0x2aa   : > { %3270 = vrot.lane.b32.xlu0 %v2151_v30, %s10900_s13  ;;  %v2149_v23 = vpop.permute.xlu1 %2148  ;;  %v2192_v50 = vshrl.u32 %v2151_v30, 16  ;;  %v11391_v5 = vrot.slane %v2360_v47, %v11333_v17  ;;  %v2426_v8 = vcombine.high %v2186_v46, %v11331_v16  ;;  %v11409_v22 = vrot.slane %v2186_v46, %v11333_v17 }
 0x2ab   : > { %3268 = vrot.lane.b32.xlu1 %v2149_v23, %s10900_s13  ;;  %v2176_v12 = vshrl.u32 %v2149_v23, 16  ;;  %v11435_v47 = vrot.slane %v1240_v41, %v11333_v17  ;;  %v2294_v2 = vcombine.high %v2170_v54, %v11331_v16  ;;  %v1174_v41 = vcombine.high %v11364_v42, %v11331_v16 }
 0x2ac   : > { %v11489_v39 = vrot.slane %v11364_v42, %v11333_v17 }
 0x2ad   : > { %v2159_v48 = vpop.permute.xlu0 %2158 }
 0x2ae   : > { %v2190_v51 = vpack.i.b16 %v2159_v48, %v2151_v30  ;;  %v2193_v52 = vshrl.u32 %v2159_v48, 16  ;;  %3278 = vrot.lane.b32.xlu0 %v2159_v48, %s10900_s13  ;;  %v2157_v53 = vpop.permute.xlu1 %2156  ;;  %v1306_v48 = vcombine.high %v11353_v35, %v11331_v16 }
 0x2af   : > { %v2174_v57 = vpack.i.b16 %v2157_v53, %v2149_v23  ;;  %3276 = vrot.lane.b32.xlu1 %v2157_v53, %s10900_s13  ;;  %v2177_v4 = vshrl.u32 %v2157_v53, 16  ;;  %v11427_v23 = vrot.slane %v2426_v8, %v11333_v17  ;;  %v1504_v8 = vcombine.high %v11374_v45, %v11331_v16 }
 0x2b0   : > { %v2194_v61 = vpack.i.b16 %v2193_v52, %v2192_v50  ;;  %v2375_v62 = vcombine.high %v2190_v51, %v11331_v16  ;;  %v11388_v3 = vrot.slane %v2190_v51, %v11333_v17  ;;  %v11440_v50 = vrot.slane %v2228_v55, %v11333_v17 }
 0x2b1   : > { %v2243_v9 = vcombine.high %v2174_v57, %v11331_v16  ;;  %v11396_v10 = vrot.slane %v2174_v57, %v11333_v17  ;;  %v2147_v11 = vpop.permute.xlu0 %2146  ;;  %v2178_v32 = vpack.i.b16 %v2177_v4, %v2176_v12  ;;  %v11448_v52 = vrot.slane %v11353_v35, %v11333_v17 }
 0x2b2   : > { %v11399_v13 = vrot.slane %v2375_v62, %v11333_v17  ;;  %v2441_v18 = vcombine.high %v2194_v61, %v11331_v16  ;;  %3266 = vrot.lane.b32.xlu0 %v2147_v11, %s10900_s13  ;;  %v11405_v19 = vpop.permute.xlu1 %2144  ;;  %v11412_v25 = vrot.slane %v2194_v61, %v11333_v17  ;;  %v11458_v55 = vrot.slane %v2170_v54, %v11333_v17 }
 0x2b3   : > { %3264 = vrot.lane.b32.xlu1 %v11405_v19, %s10900_s13  ;;  %v11423_v1 = vrot.slane %v2243_v9, %v11333_v17  ;;  %v2309_v35 = vcombine.high %v2178_v32, %v11331_v16  ;;  %v11464_v62 = vrot.slane %v2178_v32, %v11333_v17  ;;  %v1098_v4 = vpack.i.b16 %v1097_v20, %v1096_v26 }
 0x2b4   : > { %v11430_v36 = vrot.slane %v2441_v18, %v11333_v17  ;;  %v1082_v9 = vpack.i.b16 %v1081_v33, %v1080_v27  ;;  %v1372_v54 = vcombine.high %v1078_v29, %v11331_v16  ;;  %v11474_v12 = vrot.slane %v2294_v2, %v11333_v17 }
 0x2b5   : > { %v2155_v46 = vpop.permute.xlu0 %2154  ;;  %v11477_v18 = vrot.slane %v2309_v35, %v11333_v17  ;;  %v2217_v60 = vshrl.u32 %v2147_v11, 16  ;;  %v2214_v27 = vpack.i.b16 %v2147_v11, %v11278_v58  ;;  %v11494_v20 = vrot.slane %v1306_v48, %v11333_v17 }
 0x2b6   : > { %3274 = vrot.lane.b32.xlu0 %v2155_v46, %s10900_s13  ;;  %v11444_v51 = vpop.permute.xlu1 %2152  ;;  %v11497_v33 = vrot.slane %v1174_v41, %v11333_v17  ;;  %v11501_v2 = vrot.slane %v11374_v45, %v11333_v17  ;;  %v11506_v42 = vrot.slane %v1504_v8, %v11333_v17  ;;  %v1570_v43 = vcombine.high %v1098_v4, %v11331_v16 }
 0x2b7   : > { %3272 = vrot.lane.b32.xlu1 %v11444_v51, %s10900_s13  ;;  %v11510_v11 = vrot.slane %v1078_v29, %v11333_v17  ;;  %v1438_v48 = vcombine.high %v1082_v9, %v11331_v16  ;;  %v11518_v45 = vrot.slane %v1098_v4, %v11333_v17  ;;  %v11521_v15 = vrot.slane %v1372_v54, %v11333_v17 }
 0x2b8   : > { %v2218_v21 = vpack.i.b16 %v2217_v60, %v2216_v24  ;;  %v11527_v29 = vrot.slane %v1082_v9, %v11333_v17  ;;  %v2624_v57 = vcombine.high %v2214_v27, %v11331_v16  ;;  %v2198_v53 = vpack.i.b16 %v11405_v19, %v11282_v59 }
 0x2b9   : > { %14849 = vst [vmem:[#allocation21_spill] sm:$0xff] %v11510_v11  ;;  %v11513_v35 = vpop.permute.xlu0 %2162  ;;  %14852 = vst [vmem:[#allocation24_spill] sm:$0xff] %v11521_v15  ;;  %v2224_v4 = vshrl.u32 %v2155_v46, 16  ;;  %v11538_v58 = vrot.slane %v1570_v43, %v11333_v17  ;;  %v11541_v60 = vrot.slane %v1438_v48, %v11333_v17  ;;  %v2390_v24 = vcombine.low %v11378_v49, %v11388_v3 }
 0x2ba   : > { %14850 = vst [vmem:[#allocation22_spill] sm:$0xff] %v11513_v35  ;;  %v11515_v41 = vpop.permute.xlu1 %2160  ;;  %14853 = vst [vmem:[#allocation25_spill] sm:$0xff] %v11527_v29  ;;  %v2222_v32 = vpack.i.b16 %v11513_v35, %v2155_v46  ;;  %v2225_v54 = vshrl.u32 %v11513_v35, 16  ;;  %v11546_v9 = vrot.slane %v2214_v27, %v11333_v17  ;;  %v2690_v26 = vcombine.high %v2218_v21, %v11331_v16 }
 0x2bb   : > { %14851 = vst [vmem:[#allocation23_spill] sm:$0xff] %v11515_v41  ;;  %v2206_v8 = vpack.i.b16 %v11515_v41, %v11444_v51  ;;  %14854 = vst [vmem:[#allocation26_spill] sm:$0xff] %v11541_v60  ;;  %v11554_v43 = vrot.slane %v2624_v57, %v11333_v17  ;;  %v2201_v48 = vshrl.u32 %v11405_v19, 16  ;;  %v11558_v37 = vrot.slane %v2198_v53, %v11333_v17 }
 0x2bc   : > { %v2226_v46 = vpack.i.b16 %v2225_v54, %v2224_v4  ;;  %v2639_v61 = vcombine.high %v2222_v32, %v11331_v16  ;;  %v11551_v28 = vrot.slane %v2222_v32, %v11333_v17  ;;  %v11564_v27 = vrot.slane %v2218_v21, %v11333_v17 }
 0x2bd   : > { %v11561_v30 = vrot.slane %v2206_v8, %v11333_v17  ;;  %v2209_v19 = vshrl.u32 %v11515_v41, 16  ;;  %v2507_v14 = vcombine.high %v2206_v8, %v11331_v16  ;;  %v11580_v21 = vrot.slane %v2690_v26, %v11333_v17 }
 0x2be   : > { %v11567_v4 = vrot.slane %v2639_v61, %v11333_v17  ;;  %v2655_v32 = vcombine.high %v11546_v9, %v11551_v28  ;;  %v2705_v57 = vcombine.high %v2226_v46, %v11331_v16  ;;  %v11573_v54 = vrot.slane %v2226_v46, %v11333_v17 }
 0x2bf   : > { %v2523_v40 = vcombine.high %v11558_v37, %v11561_v30  ;;  %v2492_v61 = vcombine.high %v2198_v53, %v11331_v16  ;;  %v14856_v46 = vshrl.u32 %v11282_v59, 16  ;;  %v2208_v41 = vshrl.u32 %v11444_v51, 16 }
 0x2c0   : > { %v11584_v35 = vrot.slane %v2655_v32, %v11350_v34  ;;  %v2671_v60 = vcombine.high %v11554_v43, %v11567_v4  ;;  %v11592_v8 = vrot.slane %v2705_v57, %v11333_v17  ;;  %v2721_v26 = vcombine.high %v11564_v27, %v11573_v54  ;;  %v1033_v57 = vpop.permute.xlu0 %1032 }
 0x2c1   : > { %v2202_v29 = vpack.i.b16 %v2201_v48, %v14856_v46  ;;  %v14857_v53 = vcombine.high %v11378_v49, %v11388_v3  ;;  %v14859_v15 = vcombine.high %v11391_v5, %v11399_v13  ;;  %v2258_v51 = vcombine.low %v11383_v56, %v11396_v10 }
 0x2c2   : > { %14855 = vst [vmem:[#allocation27_spill] sm:$0xff] %v11584_v35  ;;  %v11611_v48 = vrot.slane %v2671_v60, %v11350_v34  ;;  %v11614_v46 = vrot.slane %v2721_v26, %v11350_v34  ;;  %v2210_v3 = vpack.i.b16 %v2209_v19, %v2208_v41  ;;  %v14864_v11 = vcombine.high %v11409_v22, %v11412_v25  ;;  %v1031_v35 = vpop.permute.xlu1 %1030 }
 0x2c3   : > { %v11600_v32 = vrot.slane %v14857_v53, %v11350_v34  ;;  %v11606_v59 = vrot.slane %v14859_v15, %v11350_v34  ;;  %v11619_v53 = vrot.slane %v2507_v14, %v11333_v17  ;;  %v11622_v15 = vrot.slane %v2390_v24, %v11350_v34 }
 0x2c4   : > { %14861 = vst [vmem:[#allocation30_spill] sm:$0xff] %v11611_v48  ;;  %14862 = vst [vmem:[#allocation31_spill] sm:$0xff] %v11614_v46  ;;  %v11628_v60 = vrot.slane %v14864_v11, %v11350_v34  ;;  %v2406_v41 = vcombine.low %v11391_v5, %v11399_v13  ;;  %v11637_v14 = vrot.slane %v2492_v61, %v11333_v17 }
 0x2c5   : > { %14858 = vst [vmem:[#allocation28_spill] sm:$0xff] %v11600_v32  ;;  %14860 = vst [vmem:[#allocation29_spill] sm:$0xff] %v11606_v59  ;;  %v2558_v24 = vcombine.high %v2202_v29, %v11331_v16  ;;  %v1070_v19 = vpack.i.b16 %v1033_v57, %v11316_v63  ;;  %v14866_v5 = vcombine.high %v11383_v56, %v11396_v10  ;;  %v1073_v56 = vshrl.u32 %v1033_v57, 16  ;;  %v14902_v32 = vld [vmem:[#allocation25_spill] sm:$0xff] }
 0x2c6   : > { %14863 = vst [vmem:[#allocation32_spill] sm:$0xff] %v11622_v15  ;;  %14865 = vst [vmem:[#allocation33_spill] sm:$0xff] %v11628_v60  ;;  %v11656_v61 = vrot.slane %v2523_v40, %v11350_v34  ;;  %v2539_v11 = vcombine.high %v11637_v14, %v11619_v53  ;;  %v2573_v49 = vcombine.high %v2210_v3, %v11331_v16 }
 0x2c7   : > { %v11653_v13 = vrot.slane %v14866_v5, %v11350_v34  ;;  %v2456_v26 = vcombine.low %v11409_v22, %v11412_v25  ;;  %v11664_v48 = vrot.slane %v2202_v29, %v11333_v17  ;;  %v11667_v7 = vrot.slane %v2210_v3, %v11333_v17 }
 0x2c8   : > { %14868 = vst [vmem:[#allocation35_spill] sm:$0xff] %v11656_v61  ;;  %v11670_v10 = vrot.slane %v2558_v24, %v11333_v17  ;;  %v11673_v40 = vrot.slane %v2539_v11, %v11350_v34  ;;  %v11676_v5 = vrot.slane %v2573_v49, %v11333_v17  ;;  %v14870_v22 = vcombine.high %v11440_v50, %v11423_v1 }
 0x2c9   : > { %14867 = vst [vmem:[#allocation34_spill] sm:$0xff] %v11653_v13  ;;  %v2589_v29 = vcombine.high %v11664_v48, %v11667_v7  ;;  %v1255_v3 = vcombine.high %v1070_v19, %v11331_v16  ;;  %v11692_v49 = vrot.slane %v2258_v51, %v11350_v34  ;;  %v2274_v24 = vcombine.low %v11440_v50, %v11423_v1 }
 0x2ca   : > { %14869 = vst [vmem:[#allocation36_spill] sm:$0xff] %v11673_v40  ;;  %v11684_v25 = vrot.slane %v14870_v22, %v11350_v34  ;;  %v14873_v11 = vcombine.high %v11458_v55, %v11464_v62  ;;  %v14876_v1 = vshrl.u32 %v11316_v63, 16  ;;  %v2472_v59 = vcombine.low %v11427_v23, %v11430_v36  ;;  %v1037_v63 = vpop.permute.xlu0 %1036 }
 0x2cb   : > { %14872 = vst [vmem:[#allocation38_spill] sm:$0xff] %v11692_v49  ;;  %v11705_v60 = vrot.slane %v2589_v29, %v11350_v34  ;;  %v11718_v46 = vrot.slane %v1070_v19, %v11333_v17  ;;  %v11721_v29 = vrot.slane %v1255_v3, %v11333_v17  ;;  %v11724_v57 = vrot.slane %v2406_v41, %v11350_v34 }
 0x2cc   : > { %14871 = vst [vmem:[#allocation37_spill] sm:$0xff] %v11684_v25  ;;  %v11700_v22 = vrot.slane %v14873_v11, %v11350_v34  ;;  %v1074_v50 = vpack.i.b16 %v1073_v56, %v14876_v1  ;;  %v2324_v11 = vcombine.low %v11458_v55, %v11464_v62  ;;  %v11727_v51 = vrot.slane %v2456_v26, %v11350_v34 }
 0x2cd   : > { %14875 = vst [vmem:[#allocation40_spill] sm:$0xff] %v11705_v60  ;;  %v2340_v55 = vcombine.low %v11474_v12, %v11477_v18  ;;  %v2654_v62 = vcombine.low %v11546_v9, %v11551_v28  ;;  %v1048_v1 = vpack.i.b16 %v1031_v35, %v11318_v0  ;;  %v1051_v56 = vshrl.u32 %v1031_v35, 16 }
 0x2ce   : > { %14874 = vst [vmem:[#allocation39_spill] sm:$0xff] %v11700_v22  ;;  %v1321_v26 = vcombine.high %v1074_v50, %v11331_v16  ;;  %v11743_v3 = vrot.slane %v1074_v50, %v11333_v17  ;;  %v11747_v60 = vrot.slane %v2472_v59, %v11350_v34  ;;  %v14877_v28 = vcombine.high %v11427_v23, %v11430_v36 }
 0x2cf   : > { %v11756_v41 = vrot.slane %v2274_v24, %v11350_v34  ;;  %v11759_v19 = vrot.slane %v2324_v11, %v11350_v34  ;;  %v2670_v50 = vcombine.low %v11554_v43, %v11567_v4  ;;  %v14880_v22 = vshrl.u32 %v11318_v0, 16 }
 0x2d0   : > { %v11753_v9 = vrot.slane %v14877_v28, %v11350_v34  ;;  %v11764_v35 = vrot.slane %v1321_v26, %v11333_v17  ;;  %v2522_v36 = vcombine.low %v11558_v37, %v11561_v30  ;;  %v1123_v24 = vcombine.high %v1048_v1, %v11331_v16 }
 0x2d1   : > { %14879 = vst [vmem:[#allocation42_spill] sm:$0xff] %v11756_v41  ;;  %v1052_v23 = vpack.i.b16 %v1051_v56, %v14880_v22  ;;  %v11774_v11 = vrot.slane %v1048_v1, %v11333_v17  ;;  %v1105_v28 = vshrl.u32 %v1037_v63, 16  ;;  %v11777_v43 = vrot.slane %v2340_v55, %v11350_v34 }
 0x2d2   : > { %14878 = vst [vmem:[#allocation41_spill] sm:$0xff] %v11753_v9  ;;  %v11780_v4 = vrot.slane %v2654_v62, %v11350_v34  ;;  %v1353_v26 = vcombine.high %v11494_v20, %v11764_v35  ;;  %v1102_v0 = vpack.i.b16 %v1037_v63, %v11324_v6  ;;  %v2720_v30 = vcombine.low %v11564_v27, %v11573_v54 }
 0x2d3   : > { %v11788_v37 = vrot.slane %v1123_v24, %v11333_v17  ;;  %v1189_v56 = vcombine.high %v1052_v23, %v11331_v16  ;;  %v14882_v55 = vcombine.high %v11474_v12, %v11477_v18  ;;  %v11800_v1 = vrot.slane %v2670_v50, %v11350_v34 }
 0x2d4   : > { %14881 = vst [vmem:[#allocation43_spill] sm:$0xff] %v11780_v4  ;;  %v11803_v63 = vrot.slane %v1052_v23, %v11333_v17  ;;  %v14884_v27 = vshrl.u32 %v11324_v6, 16  ;;  %v2736_v24 = vcombine.low %v11580_v21, %v11592_v8  ;;  %v11810_v22 = vrot.slane %v2522_v36, %v11350_v34 }
 0x2d5   : > { %v11797_v62 = vrot.slane %v14882_v55, %v11350_v34  ;;  %v2538_v12 = vcombine.low %v11637_v14, %v11619_v53  ;;  %v2588_v50 = vcombine.low %v11664_v48, %v11667_v7  ;;  %v11819_v23 = vrot.slane %v1189_v56, %v11333_v17 }
 0x2d6   : > { %v1106_v54 = vpack.i.b16 %v1105_v28, %v14884_v27  ;;  %14885 = vst [vmem:[#allocation45_spill] sm:$0xff] %v11810_v22  ;;  %v1519_v28 = vcombine.high %v1102_v0, %v11331_v16  ;;  %v11825_v36 = vrot.slane %v2720_v30, %v11350_v34  ;;  %v1526_v14 = vrot.slane %v1102_v0, %v11333_v17 }
 0x2d7   : > { %14883 = vst [vmem:[#allocation44_spill] sm:$0xff] %v11797_v62  ;;  %v11840_v27 = vrot.slane %v2538_v12, %v11350_v34  ;;  %v11850_v7 = vrot.slane %v2736_v24, %v11350_v34  ;;  %v11853_v48 = vrot.slane %v2588_v50, %v11350_v34  ;;  %v2604_v56 = vcombine.low %v11670_v10, %v11676_v5  ;;  %v14896_v62 = vld [vmem:[#allocation18_spill] sm:$0xff] }
 0x2d8   : > { %v1585_v55 = vcombine.high %v1106_v54, %v11331_v16  ;;  %v11843_v53 = vrot.slane %v1519_v28, %v11333_v17  ;;  %v1535_v0 = vcombine.high %v11501_v2, %v1526_v14  ;;  %v11847_v6 = vrot.slane %v1106_v54, %v11333_v17 }
 0x2d9   : > { %14886 = vst [vmem:[#allocation46_spill] sm:$0xff] %v11840_v27  ;;  %v14887_v28 = vcombine.high %v11580_v21, %v11592_v8  ;;  %v14889_v59 = vcombine.high %v11670_v10, %v11676_v5  ;;  %v1270_v24 = vcombine.low %v11362_v31, %v11718_v46  ;;  %v1204_v25 = vcombine.low %v11489_v39, %v11803_v63 }
 0x2da   : > { %v11858_v12 = vrot.slane %v1585_v55, %v11333_v17  ;;  %v1551_v50 = vcombine.high %v11506_v42, %v11843_v53  ;;  %v1601_v21 = vcombine.high %v11518_v45, %v11847_v6  ;;  %v11885_v54 = vrot.slane %v1535_v0, %v11350_v34  ;;  %v1035_v0 = vpop.permute.xlu1 %1034 }
 0x2db   : > { %v11864_v30 = vrot.slane %v14887_v28, %v11350_v34  ;;  %v11891_v55 = vrot.slane %v2604_v56, %v11350_v34  ;;  %v11897_v9 = vrot.slane %v14889_v59, %v11350_v34  ;;  %v14892_v56 = vcombine.high %v11435_v47, %v11721_v29 }
 0x2dc   : > { %v1617_v8 = vcombine.high %v11538_v58, %v11858_v12  ;;  %v11888_v18 = vrot.slane %v1551_v50, %v11350_v34  ;;  %v14891_v50 = vcombine.high %v11362_v31, %v11718_v46  ;;  %v11916_v5 = vrot.slane %v1601_v21, %v11350_v34 }
 0x2dd   : > { %14888 = vst [vmem:[#allocation47_spill] sm:$0xff] %v11864_v30  ;;  %14890 = vst [vmem:[#allocation48_spill] sm:$0xff] %v11897_v9  ;;  %v11913_v10 = vrot.slane %v14892_v56, %v11350_v34  ;;  %v1286_v31 = vcombine.low %v11435_v47, %v11721_v29  ;;  %v1336_v46 = vcombine.low %v11448_v52, %v11743_v3 }
 0x2de   : > { %v11907_v30 = vrot.slane %v14891_v50, %v11350_v34  ;;  %v11919_v59 = vrot.slane %v1617_v8, %v11350_v34  ;;  %v14894_v50 = vcombine.high %v11448_v52, %v11743_v3  ;;  %v11934_v21 = vrot.slane %v1353_v26, %v11350_v34 }
 0x2df   : > { %v1086_v47 = vpack.i.b16 %v1035_v0, %v14896_v62  ;;  %v11942_v29 = vrot.slane %v1270_v24, %v11350_v34  ;;  %v1352_v9 = vcombine.low %v11494_v20, %v11764_v35  ;;  %v1138_v52 = vcombine.low %v11370_v44, %v11774_v11 }
 0x2e0   : > { %14893 = vst [vmem:[#allocation49_spill] sm:$0xff] %v11919_v59  ;;  %v11931_v56 = vrot.slane %v14894_v50, %v11350_v34  ;;  %14895 = vst [vmem:[#allocation50_spill] sm:$0xff] %v11934_v21  ;;  %v1534_v3 = vcombine.low %v11501_v2, %v1526_v14  ;;  %v1154_v26 = vcombine.low %v11485_v38, %v11788_v37  ;;  %v1089_v8 = vshrl.u32 %v1035_v0, 16 }
 0x2e1   : > { %v1550_v50 = vcombine.low %v11506_v42, %v11843_v53  ;;  %v9721_v20 = vcombine.high %v11907_v30, %v11885_v54  ;;  %v9723_v35 = vcombine.high %v11913_v10, %v11888_v18  ;;  %v11966_v42 = vrot.slane %v1286_v31, %v11350_v34 }
 0x2e2   : > { %v1894_v28 = vcombine.low %v11931_v56, %v11916_v5  ;;  %v9725_v2 = vcombine.high %v11931_v56, %v11916_v5  ;;  %v11969_v53 = vrot.slane %v1336_v46, %v11350_v34  ;;  %v1387_v24 = vcombine.high %v1086_v47, %v11331_v16 }
 0x2e3   : > { %v11973_v40 = vrot.slane %v1352_v9, %v11350_v34  ;;  %v11978_v5 = vrot.slane %v1534_v3, %v11350_v34  ;;  %v1600_v56 = vcombine.low %v11518_v45, %v11847_v6  ;;  %v1616_v31 = vcombine.low %v11538_v58, %v11858_v12  ;;  %v14899_v6 = vld [vmem:[#allocation21_spill] sm:$0xff] }
 0x2e4   : > { %v14897_v46 = vshrl.u32 %v14896_v62, 16  ;;  %v1394_v14 = vrot.slane %v1086_v47, %v11333_v17  ;;  %v1401_v9 = vrot.slane %v1387_v24, %v11333_v17  ;;  %v11989_v59 = vrot.slane %v1138_v52, %v11350_v34 }
 0x2e5   : > { %v14898_v3 = vcombine.high %v11370_v44, %v11774_v11  ;;  %v11998_v45 = vrot.slane %v1154_v26, %v11350_v34  ;;  %v12001_v58 = vrot.slane %v1550_v50, %v11350_v34  ;;  %v1220_v62 = vcombine.low %v11497_v33, %v11819_v23 }
 0x2e6   : > { %v1090_v0 = vpack.i.b16 %v1089_v8, %v14897_v46  ;;  %v1403_v12 = vcombine.high %v14899_v6, %v1394_v14  ;;  %v14900_v8 = vld [vmem:[#allocation24_spill] sm:$0xff]  ;;  %v12009_v24 = vrot.slane %v1600_v56, %v11350_v34  ;;  %v1644_v44 = vcombine.low %v11942_v29, %v11978_v5 }
 0x2e7   : > { %v11995_v21 = vrot.slane %v14898_v3, %v11350_v34  ;;  %v1418_v47 = vcombine.low %v14900_v8, %v1401_v9  ;;  %v1419_v52 = vcombine.high %v14900_v8, %v1401_v9  ;;  %v14901_v50 = vcombine.high %v11485_v38, %v11788_v37 }
 0x2e8   : > { %v1453_v11 = vcombine.high %v1090_v0, %v11331_v16  ;;  %v1460_v26 = vrot.slane %v1090_v0, %v11333_v17  ;;  %v12020_v3 = vrot.slane %v1204_v25, %v11350_v34  ;;  %v12023_v9 = vrot.slane %v1616_v31, %v11350_v34 }
 0x2e9   : > { %v1169_v46 = vrot.slane %v14901_v50, %v11350_v34  ;;  %v1402_v56 = vcombine.low %v14899_v6, %v1394_v14  ;;  %v1669_v8 = vcombine.low %v11966_v42, %v12001_v58  ;;  %v12029_v16 = vrot.slane %v1418_v47, %v11350_v34 }
 0x2ea   : > { %v1467_v0 = vrot.slane %v1453_v11, %v11333_v17  ;;  %v1469_v61 = vcombine.high %v14902_v32, %v1460_v26  ;;  %v14903_v38 = vcombine.high %v11489_v39, %v11803_v63  ;;  %v12038_v37 = vrot.slane %v1220_v62, %v11350_v34  ;;  %v14905_v63 = vld [vmem:[#allocation26_spill] sm:$0xff] }
 0x2eb   : > { %v14904_v14 = vcombine.high %v11497_v33, %v11819_v23  ;;  %v9713_v6 = vcombine.high %v11942_v29, %v11978_v5  ;;  %v12049_v47 = vrot.slane %v1644_v44, %v11333_v17  ;;  %v1694_v11 = vcombine.low %v11969_v53, %v12009_v24 }
 0x2ec   : > { %v1219_v25 = vrot.slane %v14903_v38, %v11350_v34  ;;  %v9715_v39 = vcombine.high %v11966_v42, %v12001_v58  ;;  %v1485_v62 = vcombine.high %v14905_v63, %v1467_v0  ;;  %v1719_v50 = vcombine.low %v11973_v40, %v12023_v9 }
 0x2ed   : > { %v12044_v31 = vrot.slane %v14904_v14, %v11350_v34  ;;  %v12059_v33 = vrot.slane %v1402_v56, %v11350_v34  ;;  %v1417_v23 = vrot.slane %v1403_v12, %v11350_v34  ;;  %v1433_v29 = vrot.slane %v1419_v52, %v11350_v34 }
 0x2ee   : > { %v1676_v5 = vrot.slane %v1669_v8, %v11333_v17  ;;  %v1661_v44 = vcombine.low %v11998_v45, %v12029_v16  ;;  %v14906_v42 = vcombine.low %v11692_v49, %v11810_v22  ;;  %v14907_v38 = vcombine.low %v11622_v15, %v11780_v4 }
 0x2ef   : > { %v14908_v12 = vcombine.low %v11907_v30, %v11885_v54  ;;  %v14909_v8 = vcombine.low %v11913_v10, %v11888_v18  ;;  %v1483_v13 = vrot.slane %v1469_v61, %v11350_v34  ;;  %v12091_v4 = vrot.slane %v1894_v28, %v11333_v17 }
 0x2f0   : > { %v2763_v58 = vrot.slane %v14906_v42, %v11333_v17  ;;  %v2771_v56 = vrot.slane %v14907_v38, %v11333_v17  ;;  %v12088_v42 = vrot.slane %v1485_v62, %v11350_v34  ;;  %v12094_v38 = vrot.slane %v9721_v20, %v11333_v17 }
 0x2f1   : > { %v12078_v52 = vrot.slane %v14908_v12, %v11333_v17  ;;  %v12084_v14 = vrot.slane %v14909_v8, %v11333_v17  ;;  %v12097_v30 = vrot.slane %v9723_v35, %v11333_v17  ;;  %v12100_v54 = vrot.slane %v9725_v2, %v11333_v17 }
 0x2f2   : > { %14910 = vst [vmem:[#allocation18_spill] sm:$0xff] %v12094_v38  ;;  %v1636_v18 = vcombine.low %v11989_v59, %v12059_v33  ;;  %v1836_v61 = vcombine.low %v11995_v21, %v1417_v23  ;;  %v1861_v10 = vcombine.low %v1169_v46, %v1433_v29  ;;  %v14913_v28 = vcombine.low %v11756_v41, %v11840_v27  ;;  %v14965_v38 = vld [vmem:[#allocation47_spill] sm:$0xff] }
 0x2f3   : > { %14911 = vst [vmem:[#allocation21_spill] sm:$0xff] %v12097_v30  ;;  %14912 = vst [vmem:[#allocation24_spill] sm:$0xff] %v12100_v54  ;;  %v1468_v20 = vcombine.low %v14902_v32, %v1460_v26  ;;  %v1484_v12 = vcombine.low %v14905_v63, %v1467_v0  ;;  %v1668_v35 = vrot.slane %v1661_v44, %v11333_v17  ;;  %v14956_v30 = vld [vmem:[#allocation39_spill] sm:$0xff] }
 0x2f4   : > { %v2788_v62 = vrot.slane %v14913_v28, %v11333_v17  ;;  %v2772_v8 = vcombine.low %v2763_v58, %v2771_v56  ;;  %v12113_v2 = vrot.slane %v1836_v61, %v11333_v17  ;;  %v12116_v15 = vrot.slane %v1861_v10, %v11333_v17 }
 0x2f5   : > { %v1886_v22 = vcombine.low %v1219_v25, %v1483_v13  ;;  %v9720_v27 = vcombine.high %v11995_v21, %v1417_v23  ;;  %v9722_v28 = vcombine.high %v1169_v46, %v1433_v29  ;;  %v9724_v41 = vcombine.high %v1219_v25, %v1483_v13 }
 0x2f6   : > { %v1643_v26 = vrot.slane %v1636_v18, %v11333_v17  ;;  %v12132_v58 = vrot.slane %v1484_v12, %v11350_v34  ;;  %v12144_v25 = vrot.slane %v1468_v20, %v11350_v34  ;;  %v1677_v23 = vcombine.low %v1668_v35, %v1676_v5 }
 0x2f7   : > { %v12129_v44 = vrot.slane %v1886_v22, %v11333_v17  ;;  %v12135_v13 = vrot.slane %v9720_v27, %v11333_v17  ;;  %v12138_v21 = vrot.slane %v9722_v28, %v11333_v17  ;;  %v12141_v46 = vrot.slane %v9724_v41, %v11333_v17 }
 0x2f8   : > { %v14917_v29 = vcombine.low %v11724_v57, %v11800_v1  ;;  %v2779_v61 = vrot.slane %v2772_v8, %v11350_v34  ;;  %v12160_v5 = vrot.slane %v9713_v6, %v11333_v17  ;;  %v9717_v10 = vcombine.high %v11969_v53, %v12009_v24 }
 0x2f9   : > { %14914 = vst [vmem:[#allocation25_spill] sm:$0xff] %v12135_v13  ;;  %14915 = vst [vmem:[#allocation26_spill] sm:$0xff] %v12138_v21  ;;  %v9719_v20 = vcombine.high %v11973_v40, %v12023_v9  ;;  %v12167_v35 = vrot.slane %v1694_v11, %v11333_v17  ;;  %v12170_v28 = vrot.slane %v9715_v39, %v11333_v17  ;;  %v14957_v21 = vld [vmem:[#allocation40_spill] sm:$0xff]  ;;  %v14966_v13 = vld [vmem:[#allocation41_spill] sm:$0xff] }
 0x2fa   : > { %14916 = vst [vmem:[#allocation51_spill] sm:$0xff] %v12141_v46  ;;  %v2796_v56 = vrot.slane %v14917_v29, %v11333_v17  ;;  %v1652_v29 = vcombine.low %v1643_v26, %v12049_v47  ;;  %v1711_v8 = vcombine.low %v12038_v37, %v12132_v58  ;;  %v1726_v6 = vrot.slane %v1719_v50, %v11333_v17  ;;  %v14941_v46 = vld [vmem:[#allocation37_spill] sm:$0xff] }
 0x2fb   : > { %v9712_v53 = vcombine.high %v11989_v59, %v12059_v33  ;;  %v2831_v40 = vcombine.low %v11777_v43, %v11891_v55  ;;  %v1684_v9 = vrot.slane %v1677_v23, %v11350_v34  ;;  %v1686_v11 = vcombine.low %v12020_v3, %v12144_v25 }
 0x2fc   : > { %v2797_v12 = vcombine.low %v2788_v62, %v2796_v56  ;;  %v3159_v39 = vshrl.u32 %v2779_v61, 16  ;;  %v2839_v47 = vcombine.low %v11747_v60, %v11850_v7  ;;  %v14918_v50 = vmov 0  }
 0x2fd   : > { %v2838_v59 = vrot.slane %v2831_v40, %v11333_v17  ;;  %v1659_v33 = vrot.slane %v1652_v29, %v11350_v34  ;;  %v2780_v41 = vcombine.high %v2779_v61, %v14918_v50  ;;  %v14919_v32 = vcombine.low %v11759_v19, %v11853_v48 }
 0x2fe   : > { %v2804_v24 = vrot.slane %v2797_v12, %v11350_v34  ;;  %v1718_v12 = vrot.slane %v1711_v8, %v11333_v17  ;;  %v2846_v23 = vrot.slane %v2839_v47, %v11333_v17  ;;  %v12202_v29 = vrot.slane %v9717_v10, %v11333_v17  ;;  %v12210_v47 = vpop.permute.xlu0 %3252 }
 0x2ff   : > { %v2813_v22 = vrot.slane %v14919_v32, %v11333_v17  ;;  %v1693_v8 = vrot.slane %v1686_v11, %v11333_v17  ;;  %v12212_v32 = vpop.permute.xlu1 %3254  ;;  %v9716_v11 = vcombine.high %v12020_v3, %v12144_v25  ;;  %v3165_v63 = vshrl.u32 %v2780_v41, 16 }
 0x300   : > { %v3158_v62 = vpack.i.b16 %v2804_v24, %v2779_v61  ;;  %v3160_v26 = vshrl.u32 %v2804_v24, 16  ;;  %v2805_v56 = vcombine.high %v2804_v24, %v14918_v50  ;;  %v14920_v24 = vcombine.low %v11727_v51, %v11825_v36 }
 0x301   : > { %v12205_v61 = vrot.slane %v9719_v20, %v11333_v17  ;;  %v2847_v49 = vcombine.low %v2838_v59, %v2846_v23  ;;  %v12217_v20 = vrot.slane %v9712_v53, %v11333_v17  ;;  %v1685_v53 = vcombine.high %v1684_v9, %v14918_v50 }
 0x302   : > { %v4377_v18 = vsel %vm4372_vm2, %v3158_v62, 0  ;;  %v3161_v27 = vpack.i.b16 %v3160_v26, %v3159_v39  ;;  %v2821_v40 = vrot.slane %v14920_v24, %v11333_v17  ;;  %v9714_v39 = vcombine.high %v11998_v45, %v12029_v16 }
 0x303   : > { %10078 = vmatpush3.bf16.xpose.msra.mxu0 %v4377_v18  ;;  %v14921_v26 = vmov 0.0   ;;  %v2040_v24 = vshrl.u32 %v1684_v9, 16  ;;  %v3166_v10 = vshrl.u32 %v2805_v56, 16  ;;  %v2038_v16 = vpack.i.b16 %v1684_v9, %v1659_v33 }
 0x304   : > { %v4423_v62 = vsel %vm4372_vm2, %v3161_v27, 0  ;;  %10089 = vmatprep.subr.bf16.mxu0 %v14921_v26  ;;  %v2039_v45 = vshrl.u32 %v1659_v33, 16  ;;  %v3164_v18 = vpack.i.b16 %v2805_v56, %v2780_v41  ;;  %v2822_v0 = vcombine.low %v2813_v22, %v2821_v40 }
 0x305   : > { %10084 = vmatpush3.bf16.xpose.msra.mxu1 %v4423_v62  ;;  %v1727_v27 = vcombine.low %v1718_v12, %v1726_v6  ;;  %v1768_v54 = vrot.slane %v9714_v39, %v11333_v17  ;;  %v1702_v23 = vcombine.low %v1693_v8, %v12167_v35  ;;  %v3167_v25 = vpack.i.b16 %v3166_v10, %v3165_v63 }
 0x306   : > { %10095 = vmatprep.subr.bf16.mxu1 %v14921_v26  ;;  %v2041_v3 = vpack.i.b16 %v2040_v24, %v2039_v45  ;;  %v2854_v62 = vrot.slane %v2847_v49, %v11350_v34  ;;  %v1752_v56 = vcombine.low %v12217_v20, %v12160_v5  ;;  %v12231_v22 = vrot.slane %v9716_v11, %v11333_v17  ;;  %v14922_v49 = vld [vmem:[#allocation38_spill] sm:$0xff]  ;;  %v14923_v5 = vld [vmem:[#allocation45_spill] sm:$0xff] }
 0x307   : > { %v9718_v41 = vcombine.high %v12038_v37, %v12132_v58  ;;  %v1660_v6 = vcombine.high %v1659_v33, %v14918_v50  ;;  %v4469_v9 = vsel %vm4372_vm2, %v3164_v18, 0  ;;  %v2829_v35 = vrot.slane %v2822_v0, %v11350_v34  ;;  %v14925_v58 = vld [vmem:[#allocation32_spill] sm:$0xff]  ;;  %v14926_v33 = vld [vmem:[#allocation43_spill] sm:$0xff]  ;;  %v14928_v0 = vld [vmem:[#allocation42_spill] sm:$0xff] }
 0x308   : > { %v12240_v63 = vrot.slane %v1727_v27, %v11350_v34  ;;  %v14924_v12 = vcombine.high %v14922_v49, %v14923_v5  ;;  %v2046_v37 = vshrl.u32 %v1685_v53, 16  ;;  %v14927_v8 = vcombine.high %v14925_v58, %v14926_v33  ;;  %v14929_v24 = vld [vmem:[#allocation46_spill] sm:$0xff] }
 0x309   : > { %v14930_v10 = vcombine.high %v14928_v0, %v14929_v24  ;;  %v14931_v11 = vcombine.high %v11724_v57, %v11800_v1  ;;  %v1777_v45 = vcombine.low %v1768_v54, %v12170_v28  ;;  %v4515_v18 = vsel %vm4372_vm2, %v3167_v25, 0 }
 0x30a   : > { %10080 = vmatmul.mubr.msk.bf16.vlgmr.msra.gmra.mrb[8].mxu0 %vm4372_vm2, %v2038_v16  ;;  %v2863_v40 = vrot.slane %v14924_v12, %v11333_v17  ;;  %v2871_v39 = vrot.slane %v14927_v8, %v11333_v17  ;;  %v3172_v27 = vshrl.u32 %v2854_v62, 16  ;;  %v1802_v49 = vcombine.low %v12231_v22, %v12202_v29 }
 0x30b   : > { %10090 = vmatpush3.bf16.xpose.msra.mxu0 %v4469_v9  ;;  %10091 = vmatprep.mubr.msk.bf16.mxu0 %vm10905_vm1, %v14921_v26  ;;  %v2888_v20 = vrot.slane %v14930_v10, %v11333_v17  ;;  %v2896_v16 = vrot.slane %v14931_v11, %v11333_v17  ;;  %v12265_v9 = vrot.slane %v1702_v23, %v11350_v34  ;;  %v2045_v57 = vshrl.u32 %v1660_v6, 16 }
 0x30c   : > { %10086 = vmatmul.mubr.msk.bf16.vlgmr.msra.gmra.mrb[24].mxu1 %vm4372_vm2, %v2041_v3  ;;  %10101 = vmatprep.subr.bf16.mxu0 %v14921_v26  ;;  %v12270_v5 = vrot.slane %v9718_v41, %v11333_v17  ;;  %v2855_v1 = vcombine.high %v2854_v62, %v14918_v50  ;;  %v2044_v54 = vpack.i.b16 %v1685_v53, %v1660_v6  ;;  %v3171_v3 = vshrl.u32 %v2829_v35, 16 }
 0x30d   : > { %10096 = vmatpush3.bf16.xpose.msra.mxu1 %v4515_v18  ;;  %10097 = vmatprep.mubr.msk.bf16.mxu1 %vm10905_vm1, %v14921_v26  ;;  %v3170_v28 = vpack.i.b16 %v2854_v62, %v2829_v35  ;;  %v2052_v23 = vshrl.u32 %v12240_v63, 16  ;;  %v2047_v25 = vpack.i.b16 %v2046_v37, %v2045_v57  ;;  %v2830_v12 = vcombine.high %v2829_v35, %v14918_v50 }
 0x30e   : > { %10107 = vmatprep.subr.bf16.mxu1 %v14921_v26  ;;  %v2872_v58 = vcombine.low %v2863_v40, %v2871_v39  ;;  %v2897_v41 = vcombine.low %v2888_v20, %v2896_v16  ;;  %v3173_v33 = vpack.i.b16 %v3172_v27, %v3171_v3  ;;  %v2051_v8 = vshrl.u32 %v12265_v9, 16 }
 0x30f   : > { %v12281_v0 = vcombine.high %v12265_v9, %v14918_v50  ;;  %v12285_v53 = vcombine.high %v12240_v63, %v14918_v50  ;;  %v3176_v62 = vpack.i.b16 %v2855_v1, %v2830_v12  ;;  %v3178_v6 = vshrl.u32 %v2855_v1, 16  ;;  %v12323_v1 = vpop.permute.xlu0 %3258 }
 0x310   : > { %v9734_v37 = vcombine.high %v11777_v43, %v11891_v55  ;;  %v9735_v35 = vcombine.high %v11747_v60, %v11850_v7  ;;  %v4561_v40 = vsel %vm4372_vm2, %v3170_v28, 0  ;;  %v2050_v39 = vpack.i.b16 %v12240_v63, %v12265_v9  ;;  %14934 = vst [vmem:[#allocation38_spill] sm:$0xff] %v12323_v1 }
 0x311   : > { %v2053_v24 = vpack.i.b16 %v2052_v23, %v2051_v8  ;;  %v12296_v10 = vrot.slane %v1777_v45, %v11350_v34  ;;  %v3177_v20 = vshrl.u32 %v2830_v12, 16  ;;  %v2879_v43 = vrot.slane %v2872_v58, %v11350_v34  ;;  %v14935_v23 = vld [vmem:[#allocation34_spill] sm:$0xff] }
 0x312   : > { %10092 = vmatmul.mubr.msk.bf16.vlgmr.msra.gmra.mrb[12].mxu0 %vm4372_vm2, %v2044_v54  ;;  %v2904_v60 = vrot.slane %v2897_v41, %v11350_v34  ;;  %v12303_v7 = vrot.slane %v1752_v56, %v11350_v34  ;;  %v4607_v55 = vsel %vm4372_vm2, %v3173_v33, 0  ;;  %v2056_v63 = vpack.i.b16 %v12285_v53, %v12281_v0 }
 0x313   : > { %10102 = vmatpush3.bf16.xpose.msra.mxu0 %v4561_v40  ;;  %10103 = vmatprep.mubr.msk.bf16.mxu0 %vm10905_vm1, %v14921_v26  ;;  %v2938_v11 = vrot.slane %v9734_v37, %v11333_v17  ;;  %v2946_v16 = vrot.slane %v9735_v35, %v11333_v17  ;;  %v4653_v56 = vsel %vm4372_vm2, %v3176_v62, 0  ;;  %v3179_v45 = vpack.i.b16 %v3178_v6, %v3177_v20  ;;  %v14938_v62 = vld [vmem:[#allocation28_spill] sm:$0xff]  ;;  %v14939_v6 = vld [vmem:[#allocation27_spill] sm:$0xff] }
 0x314   : > { %10098 = vmatmul.mubr.msk.bf16.vlgmr.msra.gmra.mrb[28].mxu1 %vm4372_vm2, %v2047_v25  ;;  %10113 = vmatprep.subr.bf16.mxu0 %v14921_v26  ;;  %v14932_v18 = vcombine.high %v11759_v19, %v11853_v48  ;;  %v14933_v9 = vcombine.high %v11727_v51, %v11825_v36  ;;  %v2057_v54 = vshrl.u32 %v12281_v0, 16  ;;  %v2058_v28 = vshrl.u32 %v12285_v53, 16  ;;  %v14936_v25 = vld [vmem:[#allocation35_spill] sm:$0xff] }
 0x315   : > { %10108 = vmatpush3.bf16.xpose.msra.mxu1 %v4607_v55  ;;  %10109 = vmatprep.mubr.msk.bf16.mxu1 %vm10905_vm1, %v14921_v26  ;;  %v2064_v3 = vshrl.u32 %v12296_v10, 16  ;;  %v14937_v19 = vcombine.low %v14935_v23, %v14936_v25  ;;  %v3184_v12 = vshrl.u32 %v2904_v60, 16  ;;  %v2880_v58 = vcombine.high %v2879_v43, %v14918_v50 }
 0x316   : > { %v2913_v27 = vrot.slane %v14932_v18, %v11333_v17  ;;  %v2921_v57 = vrot.slane %v14933_v9, %v11333_v17  ;;  %10119 = vmatprep.subr.bf16.mxu1 %v14921_v26  ;;  %v2905_v51 = vcombine.high %v2904_v60, %v14918_v50  ;;  %v2063_v36 = vshrl.u32 %v12303_v7, 16 }
 0x317   : > { %v2963_v48 = vrot.slane %v14937_v19, %v11333_v17  ;;  %v3182_v41 = vpack.i.b16 %v2904_v60, %v2879_v43  ;;  %v12338_v33 = vcombine.high %v12296_v10, %v14918_v50  ;;  %v2947_v8 = vcombine.low %v2938_v11, %v2946_v16 }
 0x318   : > { %v14940_v37 = vcombine.low %v14938_v62, %v14939_v6  ;;  %v4699_v40 = vsel %vm4372_vm2, %v3179_v45, 0  ;;  %v3183_v20 = vshrl.u32 %v2879_v43, 16  ;;  %v12347_v55 = vcombine.high %v12303_v7, %v14918_v50  ;;  %v3263_v19 = vpop.permute.xlu0 %3262 }
 0x319   : > { %v2922_v18 = vcombine.low %v2913_v27, %v2921_v57  ;;  %v2059_v60 = vpack.i.b16 %v2058_v28, %v2057_v54  ;;  %v12352_v11 = vpack.i.b16 %v2064_v3, %v2063_v36  ;;  %v3188_v45 = vpack.i.b16 %v2905_v51, %v2880_v58  ;;  %v14942_v27 = vld [vmem:[#allocation36_spill] sm:$0xff]  ;;  %v12360_v54 = vpop.permute.xlu1 %3256  ;;  %v14945_v36 = vld [vmem:[#allocation29_spill] sm:$0xff] }
 0x31a   : > { %v2971_v35 = vrot.slane %v14940_v37, %v11333_v17  ;;  %10104 = vmatmul.mubr.msk.bf16.vlgmr.msra.gmra.mrb[16].mxu0 %vm4372_vm2, %v2050_v39  ;;  %v3185_v43 = vpack.i.b16 %v3184_v12, %v3183_v20  ;;  %v3189_v37 = vshrl.u32 %v2880_v58, 16  ;;  %v14943_v57 = vcombine.low %v14941_v46, %v14942_v27  ;;  %14944 = vst [vmem:[#allocation45_spill] sm:$0xff] %v12360_v54 }
 0x31b   : > { %10114 = vmatpush3.bf16.xpose.msra.mxu0 %v4653_v56  ;;  %10115 = vmatprep.mubr.msk.bf16.mxu0 %vm10905_vm1, %v14921_v26  ;;  %v4745_v28 = vsel %vm4372_vm2, %v3182_v41, 0  ;;  %v3190_v56 = vshrl.u32 %v2905_v51, 16  ;;  %v12373_v12 = vrot.slane %v2922_v18, %v11350_v34  ;;  %v2070_v58 = vshrl.u32 %v12338_v33, 16  ;;  %v14946_v51 = vld [vmem:[#allocation30_spill] sm:$0xff] }
 0x31c   : > { %v2972_v16 = vcombine.low %v2963_v48, %v2971_v35  ;;  %v2988_v39 = vrot.slane %v14943_v57, %v11333_v17  ;;  %10110 = vmatmul.mubr.msk.bf16.vlgmr.msra.gmra.mrb[32].mxu1 %vm4372_vm2, %v2053_v24  ;;  %10125 = vmatprep.subr.bf16.mxu0 %v14921_v26  ;;  %v12368_v48 = vrot.slane %v2947_v8, %v11350_v34  ;;  %v2069_v24 = vshrl.u32 %v12347_v55, 16 }
 0x31d   : > { %10120 = vmatpush3.bf16.xpose.msra.mxu1 %v4699_v40  ;;  %10121 = vmatprep.mubr.msk.bf16.mxu1 %vm10905_vm1, %v14921_v26  ;;  %v14947_v41 = vcombine.low %v14945_v36, %v14946_v51  ;;  %v1827_v8 = vcombine.low %v12270_v5, %v12205_v61  ;;  %v14948_v20 = vcombine.low %v12113_v2, %v12078_v52  ;;  %v4837_v9 = vsel %vm4372_vm2, %v3188_v45, 0  ;;  %v3271_v2 = vpop.permute.xlu0 %3270 }
 0x31e   : > { %10131 = vmatprep.subr.bf16.mxu1 %v14921_v26  ;;  %v12385_v40 = vrot.slane %v2972_v16, %v11350_v34  ;;  %v14950_v57 = vcombine.low %v12116_v15, %v12084_v14  ;;  %v3305_v5 = vshrl.u32 %v3263_v19, 16  ;;  %v3191_v16 = vpack.i.b16 %v3190_v56, %v3189_v37  ;;  %v12410_v14 = vpop.permute.xlu1 %3260 }
 0x31f   : > { %v2996_v35 = vrot.slane %v14947_v41, %v11333_v17  ;;  %v12391_v18 = vrot.slane %v14948_v20, %v11350_v34  ;;  %v4791_v41 = vsel %vm4372_vm2, %v3185_v43, 0  ;;  %v3196_v59 = vshrl.u32 %v12368_v48, 16 }
 0x320   : > { %v12397_v3 = vrot.slane %v14950_v57, %v11350_v34  ;;  %v12406_v52 = vrot.slane %v1802_v49, %v11350_v34  ;;  %v12412_v43 = vpack.i.b16 %v2070_v58, %v2069_v24  ;;  %v3195_v45 = vshrl.u32 %v12373_v12, 16 }
 0x321   : > { %14949 = vst [vmem:[#allocation32_spill] sm:$0xff] %v12391_v18  ;;  %v2997_v61 = vcombine.low %v2988_v39, %v2996_v35  ;;  %v12417_v37 = vcombine.high %v12368_v48, %v14918_v50  ;;  %v12427_v29 = vrot.slane %v1827_v8, %v11350_v34  ;;  %v12431_v22 = vcombine.high %v12373_v12, %v14918_v50 }
 0x322   : > { %14951 = vst [vmem:[#allocation43_spill] sm:$0xff] %v12397_v3  ;;  %10116 = vmatmul.mubr.msk.bf16.vlgmr.msra.gmra.mrb[20].mxu0 %vm4372_vm2, %v2056_v63  ;;  %v3302_v49 = vpack.i.b16 %v3263_v19, %v12212_v32  ;;  %v12436_v56 = vcombine.high %v12385_v40, %v14918_v50  ;;  %v3207_v53 = vshrl.u32 %v12385_v40, 16  ;;  %v14952_v24 = vshrl.u32 %v12212_v32, 16 }
 0x323   : > { %v12420_v39 = vrot.slane %v2997_v61, %v11350_v34  ;;  %10126 = vmatpush3.bf16.xpose.msra.mxu0 %v4745_v28  ;;  %10127 = vmatprep.mubr.msk.bf16.mxu0 %vm10905_vm1, %v14921_v26  ;;  %v4883_v19 = vsel %vm4372_vm2, %v3191_v16, 0  ;;  %v3194_v28 = vpack.i.b16 %v12368_v48, %v12373_v12  ;;  %v12453_v35 = vpack.i.b16 %v3196_v59, %v3195_v45  ;;  %v14953_v59 = vld [vmem:[#allocation19_spill] sm:$0xff]  ;;  %v3279_v16 = vpop.permute.xlu0 %3278 }
 0x324   : > { %v12446_v58 = vpack.i.b16 %v3305_v5, %v14952_v24  ;;  %10122 = vmatmul.mubr.msk.bf16.vlgmr.msra.gmra.mrb[36].mxu1 %vm4372_vm2, %v2059_v60  ;;  %10137 = vmatprep.subr.bf16.mxu0 %v14921_v26  ;;  %v2087_v20 = vshrl.u32 %v12391_v18, 16  ;;  %v2088_v57 = vshrl.u32 %v12397_v3, 16  ;;  %v3480_v48 = vcombine.high %v3302_v49, %v14953_v59  ;;  %v12473_v5 = vpop.permute.xlu1 %3268 }
 0x325   : > { %v3208_v63 = vshrl.u32 %v12420_v39, 16  ;;  %v12457_v8 = vcombine.high %v12420_v39, %v14918_v50  ;;  %10132 = vmatpush3.bf16.xpose.msra.mxu1 %v4791_v41  ;;  %10133 = vmatprep.mubr.msk.bf16.mxu1 %vm10905_vm1, %v14921_v26  ;;  %v3213_v41 = vshrl.u32 %v12436_v56, 16  ;;  %v12476_v45 = vrot.slane %v3302_v49, %v11333_v17 }
 0x326   : > { %10143 = vmatprep.subr.bf16.mxu1 %v14921_v26  ;;  %v12484_v24 = vpack.i.b16 %v2088_v57, %v2087_v20  ;;  %v3289_v15 = vshrl.u32 %v12410_v14, 16  ;;  %v3312_v0 = vshrl.u32 %v3271_v2, 16  ;;  %v12491_v32 = vcombine.high %v12391_v18, %v14918_v50 }
 0x327   : > { %v12463_v60 = vpack.i.b16 %v3208_v63, %v3207_v53  ;;  %v3214_v61 = vshrl.u32 %v12457_v8, 16  ;;  %v3546_v53 = vcombine.high %v12446_v58, %v14953_v59  ;;  %v12482_v63 = vpack.i.b16 %v12410_v14, %v12210_v47 }
 0x328   : > { %14954 = vst [vmem:[#allocation42_spill] sm:$0xff] %v12484_v24  ;;  %v12495_v49 = vcombine.high %v12397_v3, %v14918_v50  ;;  %v3310_v54 = vpack.i.b16 %v3279_v16, %v3271_v2  ;;  %v3313_v1 = vshrl.u32 %v3279_v16, 16  ;;  %v14958_v20 = vcombine.low %v14956_v30, %v14957_v21  ;;  %v14961_v24 = vld [vmem:[#allocation31_spill] sm:$0xff]  ;;  %v14963_v2 = vld [vmem:[#allocation48_spill] sm:$0xff] }
 0x329   : > { %v12487_v12 = vpack.i.b16 %v3214_v61, %v3213_v41  ;;  %v14959_v14 = vpack.i.b16 %v12296_v10, %v12303_v7  ;;  %v12506_v41 = vrot.slane %v3480_v48, %v11333_v17  ;;  %v14960_v61 = vld [vmem:[#allocation33_spill] sm:$0xff]  ;;  %v14964_v16 = vld [vmem:[#allocation44_spill] sm:$0xff]  ;;  %v3039_v21 = vcombine.low %v14966_v13, %v14965_v38  ;;  %v3277_v10 = vpop.permute.xlu1 %3276 }
 0x32a   : > { %v3013_v57 = vrot.slane %v14958_v20, %v11333_v17  ;;  %v14962_v18 = vcombine.low %v14960_v61, %v14961_v24  ;;  %v3314_v48 = vpack.i.b16 %v3313_v1, %v3312_v0  ;;  %v3495_v20 = vcombine.high %v3310_v54, %v14953_v59 }
 0x32b   : > { %14955 = vst [vmem:[#allocation46_spill] sm:$0xff] %v12487_v12  ;;  %10128 = vmatmul.mubr.msk.bf16.vlgmr.msra.gmra.mrb[24].mxu0 %vm4372_vm2, %v14959_v14  ;;  %v3031_v12 = vcombine.low %v14964_v16, %v14963_v2  ;;  %v4929_v1 = vsel %vm4372_vm2, %v3194_v28, 0  ;;  %v2094_v38 = vshrl.u32 %v12495_v49, 16  ;;  %v2093_v28 = vshrl.u32 %v12491_v32, 16 }
 0x32c   : > { %v3021_v3 = vrot.slane %v14962_v18, %v11333_v17  ;;  %10138 = vmatpush3.bf16.xpose.msra.mxu0 %v4837_v9  ;;  %10139 = vmatprep.mubr.msk.bf16.mxu0 %vm10905_vm1, %v14921_v26  ;;  %v3201_v18 = vshrl.u32 %v12431_v22, 16  ;;  %v12527_v9 = vrot.slane %v3310_v54, %v11333_v17  ;;  %v12534_v0 = vrot.slane %v3495_v20, %v11333_v17 }
 0x32d   : > { %10134 = vmatmul.mubr.msk.bf16.vlgmr.msra.gmra.mrb[40].mxu1 %vm4372_vm2, %v12352_v11  ;;  %10149 = vmatprep.subr.bf16.mxu0 %v14921_v26  ;;  %v3038_v13 = vrot.slane %v3031_v12, %v11333_v17  ;;  %v3561_v11 = vcombine.high %v3314_v48, %v14953_v59  ;;  %v12538_v7 = vrot.slane %v3314_v48, %v11333_v17  ;;  %v3297_v20 = vshrl.u32 %v3277_v10, 16 }
 0x32e   : > { %v3022_v14 = vcombine.low %v3013_v57, %v3021_v3  ;;  %10144 = vmatpush3.bf16.xpose.msra.mxu1 %v4883_v19  ;;  %10145 = vmatprep.mubr.msk.bf16.mxu1 %vm10905_vm1, %v14921_v26  ;;  %v12543_v54 = vrot.slane %v12446_v58, %v11333_v17  ;;  %v14968_v3 = vshrl.u32 %v12210_v47, 16  ;;  %v3046_v12 = vrot.slane %v3039_v21, %v11333_v17 }
 0x32f   : > { %10155 = vmatprep.subr.bf16.mxu1 %v14921_v26  ;;  %v12553_v48 = vrot.slane %v3561_v11, %v11333_v17  ;;  %v12557_v58 = vrot.slane %v3546_v53, %v11333_v17  ;;  %v3202_v21 = vshrl.u32 %v12417_v37, 16  ;;  %v3348_v57 = vcombine.high %v12482_v63, %v14953_v59 }
 0x330   : > { %14967 = vst [vmem:[#allocation34_spill] sm:$0xff] %v12543_v54  ;;  %v3290_v19 = vpack.i.b16 %v3289_v15, %v14968_v3  ;;  %v12562_v15 = vrot.slane %v3022_v14, %v11350_v34  ;;  %v3047_v3 = vcombine.low %v3038_v13, %v3046_v12  ;;  %v3296_v11 = vshrl.u32 %v12473_v5, 16 }
 0x331   : > { %v14969_v53 = vpack.i.b16 %v12338_v33, %v12347_v55  ;;  %v12575_v47 = vrot.slane %v12482_v63, %v11333_v17  ;;  %v3294_v12 = vpack.i.b16 %v3277_v10, %v12473_v5  ;;  %v4975_v54 = vsel %vm4372_vm2, %v12453_v35, 0 }
 0x332   : > { %v12580_v14 = vrot.slane %v3047_v3, %v11350_v34  ;;  %v3414_v33 = vcombine.high %v3290_v19, %v14953_v59  ;;  %v3298_v55 = vpack.i.b16 %v3297_v20, %v3296_v11  ;;  %v12588_v63 = vpack.i.b16 %v2094_v38, %v2093_v28 }
 0x333   : > { %10140 = vmatmul.mubr.msk.bf16.vlgmr.msra.gmra.mrb[28].mxu0 %vm4372_vm2, %v14969_v53  ;;  %v3363_v10 = vcombine.high %v3294_v12, %v14953_v59  ;;  %v3219_v35 = vshrl.u32 %v12562_v15, 16  ;;  %v2076_v38 = vshrl.u32 %v12427_v29, 16  ;;  %v12602_v28 = vrot.slane %v3294_v12, %v11333_v17 }
 0x334   : > { %10150 = vmatpush3.bf16.xpose.msra.mxu0 %v4929_v1  ;;  %10151 = vmatprep.mubr.msk.bf16.mxu0 %vm10905_vm1, %v14921_v26  ;;  %v3220_v1 = vshrl.u32 %v12580_v14, 16  ;;  %v12606_v20 = vrot.slane %v3298_v55, %v11333_v17  ;;  %v12610_v3 = vrot.slane %v3348_v57, %v11333_v17  ;;  %v2074_v12 = vpack.i.b16 %v12427_v29, %v12406_v52 }
 0x335   : > { %10146 = vmatmul.mubr.msk.bf16.vlgmr.msra.gmra.mrb[44].mxu1 %vm4372_vm2, %v12412_v43  ;;  %10161 = vmatprep.subr.bf16.mxu0 %v14921_v26  ;;  %v3429_v43 = vcombine.high %v3298_v55, %v14953_v59  ;;  %v12616_v11 = vrot.slane %v3363_v10, %v11333_v17  ;;  %v1835_v55 = vcombine.high %v12427_v29, %v14918_v50  ;;  %v14973_v10 = vld [vmem:[#allocation49_spill] sm:$0xff] }
 0x336   : > { %10156 = vmatpush3.bf16.xpose.msra.mxu1 %v4975_v54  ;;  %10157 = vmatprep.mubr.msk.bf16.mxu1 %vm10905_vm1, %v14921_v26  ;;  %v12613_v54 = vrot.slane %v3290_v19, %v11333_v17  ;;  %v12618_v53 = vpack.i.b16 %v3220_v1, %v3219_v35  ;;  %v3203_v5 = vpack.i.b16 %v3202_v21, %v3201_v18 }
 0x337   : > { %10167 = vmatprep.subr.bf16.mxu1 %v14921_v26  ;;  %v12627_v57 = vrot.slane %v3429_v43, %v11333_v17  ;;  %v12630_v19 = vrot.slane %v3414_v33, %v11333_v17  ;;  %v14970_v29 = vpack.i.b16 %v12417_v37, %v12431_v22  ;;  %v14971_v43 = vshrl.u32 %v12406_v52, 16  ;;  %v14972_v33 = vld [vmem:[#allocation50_spill] sm:$0xff] }
 0x338   : > { %v1810_v18 = vcombine.high %v12406_v52, %v14918_v50  ;;  %v14974_v35 = vcombine.low %v14972_v33, %v14973_v10  ;;  %v14975_v37 = vcombine.low %v12044_v31, %v12088_v42  ;;  %v5067_v52 = vsel %vm4372_vm2, %v3203_v5, 0 }
 0x339   : > { %v5021_v1 = vsel %vm4372_vm2, %v14970_v29, 0  ;;  %v2077_v13 = vpack.i.b16 %v2076_v38, %v14971_v43  ;;  %v2082_v38 = vshrl.u32 %v1835_v55, 16  ;;  %v12677_v43 = vcombine.high %v12562_v15, %v14918_v50 }
 0x33a   : > { %v1926_v59 = vrot.slane %v14974_v35, %v11333_v17  ;;  %v1918_v22 = vrot.slane %v14975_v37, %v11333_v17  ;;  %v14976_v35 = vcombine.low %v12129_v44, %v12091_v4  ;;  %v12681_v37 = vcombine.high %v12580_v14, %v14918_v50 }
 0x33b   : > { %10152 = vmatmul.mubr.msk.bf16.vlgmr.msra.gmra.mrb[32].mxu0 %vm4372_vm2, %v2074_v12  ;;  %v2081_v12 = vshrl.u32 %v1810_v18, 16  ;;  %v14978_v4 = vcombine.high %v12044_v31, %v12088_v42  ;;  %v5159_v31 = vsel %vm4372_vm2, %v12463_v60, 0 }
 0x33c   : > { %10162 = vmatpush3.bf16.xpose.msra.mxu0 %v5021_v1  ;;  %10163 = vmatprep.mubr.msk.bf16.mxu0 %vm10905_vm1, %v14921_v26  ;;  %v12667_v29 = vrot.slane %v14976_v35, %v11350_v34  ;;  %v1927_v1 = vcombine.low %v1918_v22, %v1926_v59  ;;  %v3226_v21 = vshrl.u32 %v12681_v37, 16 }
 0x33d   : > { %10158 = vmatmul.mubr.msk.bf16.vlgmr.msra.gmra.mrb[48].mxu1 %vm4372_vm2, %v2077_v13  ;;  %10173 = vmatprep.subr.bf16.mxu0 %v14921_v26  ;;  %v14977_v13 = vcombine.high %v14972_v33, %v14973_v10  ;;  %v12687_v44 = vrot.slane %v14978_v4, %v11333_v17  ;;  %v14979_v10 = vpack.i.b16 %v12420_v39, %v12385_v40 }
 0x33e   : > { %10168 = vmatpush3.bf16.xpose.msra.mxu1 %v5067_v52  ;;  %10169 = vmatprep.mubr.msk.bf16.mxu1 %vm10905_vm1, %v14921_v26  ;;  %v2080_v52 = vpack.i.b16 %v1835_v55, %v1810_v18  ;;  %v2083_v33 = vpack.i.b16 %v2082_v38, %v2081_v12  ;;  %v12694_v22 = vrot.slane %v1927_v1, %v11350_v34  ;;  %v2099_v38 = vshrl.u32 %v12667_v29, 16 }
 0x33f   : > { %10179 = vmatprep.subr.bf16.mxu1 %v14921_v26  ;;  %v12673_v5 = vrot.slane %v14977_v13, %v11333_v17  ;;  %v5113_v59 = vsel %vm4372_vm2, %v14979_v10, 0  ;;  %v3225_v13 = vshrl.u32 %v12677_v43, 16  ;;  %v12705_v42 = vcombine.high %v12667_v29, %v14918_v50 }
 0x340   : > { %v14980_v40 = vcombine.high %v14935_v23, %v14936_v25  ;;  %v14981_v55 = vcombine.high %v14938_v62, %v14939_v6  ;;  %v2100_v12 = vshrl.u32 %v12694_v22, 16  ;;  %v14982_v23 = vpack.i.b16 %v12457_v8, %v12436_v56 }
 0x341   : > { %v12721_v1 = vpack.i.b16 %v3226_v21, %v3225_v13  ;;  %v12731_v62 = vcombine.high %v12694_v22, %v14918_v50  ;;  %v14983_v4 = vcombine.high %v14941_v46, %v14942_v27  ;;  %v14984_v56 = vcombine.high %v14945_v36, %v14946_v51  ;;  %v14988_v36 = vld [vmem:[#allocation26_spill] sm:$0xff]  ;;  %v14989_v51 = vld [vmem:[#allocation21_spill] sm:$0xff] }
 0x342   : > { %v3063_v39 = vrot.slane %v14980_v40, %v11333_v17  ;;  %v3071_v18 = vrot.slane %v14981_v55, %v11333_v17  ;;  %v5205_v25 = vsel %vm4372_vm2, %v14982_v23, 0  ;;  %v2105_v10 = vshrl.u32 %v12705_v42, 16 }
 0x343   : > { %10164 = vmatmul.mubr.msk.bf16.vlgmr.msra.gmra.mrb[36].mxu0 %vm4372_vm2, %v2080_v52  ;;  %v3088_v21 = vrot.slane %v14983_v4, %v11333_v17  ;;  %v12739_v52 = vpack.i.b16 %v2100_v12, %v2099_v38  ;;  %v3096_v8 = vrot.slane %v14984_v56, %v11333_v17 }
 0x344   : > { %10174 = vmatpush3.bf16.xpose.msra.mxu0 %v5113_v59  ;;  %10175 = vmatprep.mubr.msk.bf16.mxu0 %vm10905_vm1, %v14921_v26  ;;  %v3072_v6 = vcombine.low %v3063_v39, %v3071_v18  ;;  %v14985_v59 = vld [vmem:[#allocation25_spill] sm:$0xff]  ;;  %v14990_v39 = vcombine.low %v14988_v36, %v14989_v51  ;;  %v14991_v18 = vld [vmem:[#allocation46_spill] sm:$0xff] }
 0x345   : > { %10170 = vmatmul.mubr.msk.bf16.vlgmr.msra.gmra.mrb[52].mxu1 %vm4372_vm2, %v2083_v33  ;;  %10185 = vmatprep.subr.bf16.mxu0 %v14921_v26  ;;  %v14986_v33 = vld [vmem:[#allocation18_spill] sm:$0xff]  ;;  %v5251_v38 = vsel %vm4372_vm2, %v14991_v18, 0  ;;  %v3097_v12 = vcombine.low %v3088_v21, %v3096_v8  ;;  %v14996_v18 = vld [vmem:[#allocation32_spill] sm:$0xff] }
 0x346   : > { %10180 = vmatpush3.bf16.xpose.msra.mxu1 %v5159_v31  ;;  %10181 = vmatprep.mubr.msk.bf16.mxu1 %vm10905_vm1, %v14921_v26  ;;  %v14987_v13 = vcombine.low %v14985_v59, %v14986_v33  ;;  %v12756_v27 = vrot.slane %v3072_v6, %v11350_v34  ;;  %v2106_v31 = vshrl.u32 %v12731_v62, 16  ;;  %v12763_v55 = vrot.slane %v14990_v39, %v11350_v34  ;;  %v14992_v33 = vld [vmem:[#allocation40_spill] sm:$0xff]  ;;  %v14995_v39 = vld [vmem:[#allocation43_spill] sm:$0xff] }
 0x347   : > { %10191 = vmatprep.subr.bf16.mxu1 %v14921_v26  ;;  %v12785_v8 = vrot.slane %v3097_v12, %v11350_v34  ;;  %v14997_v56 = vpack.i.b16 %v14995_v39, %v14996_v18  ;;  %v9742_v12 = vcombine.high %v14964_v16, %v14963_v2  ;;  %v15000_v2 = vld [vmem:[#allocation42_spill] sm:$0xff] }
 0x348   : > { %v12750_v40 = vrot.slane %v14987_v13, %v11350_v34  ;;  %v12772_v6 = vpack.i.b16 %v2106_v31, %v2105_v10  ;;  %v12778_v59 = vcombine.high %v12756_v27, %v14918_v50  ;;  %v14993_v13 = vcombine.high %v14956_v30, %v14992_v33  ;;  %v14998_v33 = vld [vmem:[#allocation47_spill] sm:$0xff] }
 0x349   : > { %v2112_v36 = vshrl.u32 %v12763_v55, 16  ;;  %v12790_v10 = vcombine.high %v12763_v55, %v14918_v50  ;;  %v14994_v31 = vcombine.high %v14960_v61, %v14961_v24  ;;  %v3231_v30 = vshrl.u32 %v12756_v27, 16 }
 0x34a   : > { %v2111_v23 = vshrl.u32 %v12750_v40, 16  ;;  %v12770_v4 = vcombine.high %v12750_v40, %v14918_v50  ;;  %v3113_v21 = vrot.slane %v14993_v13, %v11333_v17  ;;  %v14999_v13 = vld [vmem:[#allocation41_spill] sm:$0xff]  ;;  %v3232_v61 = vshrl.u32 %v12785_v8, 16 }
 0x34b   : > { %v3121_v51 = vrot.slane %v14994_v31, %v11333_v17  ;;  %10176 = vmatmul.mubr.msk.bf16.vlgmr.msra.gmra.mrb[40].mxu0 %vm4372_vm2, %v14997_v56  ;;  %v9743_v46 = vcombine.high %v14999_v13, %v14998_v33  ;;  %v12813_v56 = vcombine.high %v12785_v8, %v14918_v50  ;;  %v3138_v39 = vrot.slane %v9742_v12, %v11333_v17 }
 0x34c   : > { %v2117_v35 = vshrl.u32 %v12770_v4, 16  ;;  %10186 = vmatpush3.bf16.xpose.msra.mxu0 %v5205_v25  ;;  %10187 = vmatprep.mubr.msk.bf16.mxu0 %vm10905_vm1, %v14921_v26  ;;  %v12815_v31 = vpack.i.b16 %v2112_v36, %v2111_v23  ;;  %v2118_v18 = vshrl.u32 %v12790_v10, 16  ;;  %v3233_v33 = vpack.i.b16 %v3232_v61, %v3231_v30 }
 0x34d   : > { %10182 = vmatmul.mubr.msk.bf16.vlgmr.msra.gmra.mrb[56].mxu1 %vm4372_vm2, %v15000_v2  ;;  %10197 = vmatprep.subr.bf16.mxu0 %v14921_v26  ;;  %v3122_v25 = vcombine.low %v3113_v21, %v3121_v51  ;;  %v3237_v36 = vshrl.u32 %v12778_v59, 16  ;;  %v3238_v13 = vshrl.u32 %v12813_v56, 16  ;;  %v3146_v51 = vrot.slane %v9743_v46, %v11333_v17  ;;  %v15002_v2 = vld [vmem:[#allocation24_spill] sm:$0xff] }
 0x34e   : > { %10192 = vmatpush3.bf16.xpose.msra.mxu1 %v5251_v38  ;;  %10193 = vmatprep.mubr.msk.bf16.mxu1 %vm10905_vm1, %v14921_v26  ;;  %v12835_v12 = vpack.i.b16 %v2118_v18, %v2117_v35  ;;  %v15001_v38 = vld [vmem:[#allocation51_spill] sm:$0xff]  ;;  %v2027_v23 = vcombine.low %v12687_v44, %v12673_v5  ;;  %v15004_v35 = vpack.i.b16 %v12495_v49, %v12491_v32  ;;  %v5343_v5 = vsel %vm4372_vm2, %v12618_v53, 0 }
 0x34f   : > { %10203 = vmatprep.subr.bf16.mxu1 %v14921_v26  ;;  %v12832_v21 = vrot.slane %v3122_v25, %v11350_v34  ;;  %v15003_v30 = vcombine.low %v15001_v38, %v15002_v2  ;;  %v3239_v16 = vpack.i.b16 %v3238_v13, %v3237_v36  ;;  %v3147_v24 = vcombine.low %v3138_v39, %v3146_v51 }
 0x350   : > { %v12846_v60 = vrot.slane %v2027_v23, %v11350_v34  ;;  %v15005_v46 = vpack.i.b16 %v12580_v14, %v12562_v15 }
 0x351   : > { %v12841_v61 = vrot.slane %v15003_v30, %v11350_v34  ;;  %v3154_v44 = vrot.slane %v3147_v24, %v11350_v34  ;;  %v12865_v39 = vcombine.high %v12832_v21, %v14918_v50  ;;  %v3243_v24 = vshrl.u32 %v12832_v21, 16 }
 0x352   : > { %v5297_v18 = vsel %vm4372_vm2, %v15005_v46, 0  ;;  %v2124_v15 = vshrl.u32 %v12846_v60, 16  ;;  %v12875_v14 = vcombine.high %v12846_v60, %v14918_v50 }
 0x353   : > { %v12850_v25 = vcombine.high %v12841_v61, %v14918_v50  ;;  %10188 = vmatmul.mubr.msk.bf16.vlgmr.msra.gmra.mrb[44].mxu0 %vm4372_vm2, %v15004_v35  ;;  %v2122_v32 = vpack.i.b16 %v12846_v60, %v12841_v61  ;;  %v2123_v49 = vshrl.u32 %v12841_v61, 16  ;;  %v3242_v53 = vpack.i.b16 %v3154_v44, %v12832_v21 }
 0x354   : > { %10198 = vmatpush3.bf16.xpose.msra.mxu0 %v5297_v18  ;;  %10199 = vmatprep.mubr.msk.bf16.mxu0 %vm10905_vm1, %v14921_v26  ;;  %v3244_v23 = vshrl.u32 %v3154_v44, 16  ;;  %v3155_v36 = vcombine.high %v3154_v44, %v14918_v50  ;;  %v3249_v30 = vshrl.u32 %v12865_v39, 16 }
 0x355   : > { %10194 = vmatmul.mubr.msk.bf16.vlgmr.msra.gmra.mrb[60].mxu1 %vm4372_vm2, %v12588_v63  ;;  %10209 = vmatprep.subr.bf16.mxu0 %v14921_v26  ;;  %v2125_v13 = vpack.i.b16 %v2124_v15, %v2123_v49  ;;  %v2128_v51 = vpack.i.b16 %v12875_v14, %v12850_v25  ;;  %v2129_v38 = vshrl.u32 %v12850_v25, 16  ;;  %v2130_v63 = vshrl.u32 %v12875_v14, 16 }
 0x356   : > { %10204 = vmatpush3.bf16.xpose.msra.mxu1 %v5343_v5  ;;  %10205 = vmatprep.mubr.msk.bf16.mxu1 %vm10905_vm1, %v14921_v26  ;;  %v3245_v2 = vpack.i.b16 %v3244_v23, %v3243_v24  ;;  %v3248_v21 = vpack.i.b16 %v3155_v36, %v12865_v39  ;;  %v3250_v35 = vshrl.u32 %v3155_v36, 16  ;;  %v15006_v5 = vpack.i.b16 %v12694_v22, %v12667_v29 }
 0x357   : > { %10215 = vmatprep.subr.bf16.mxu1 %v14921_v26  ;;  %v2131_v46 = vpack.i.b16 %v2130_v63, %v2129_v38  ;;  %v15007_v25 = vpack.i.b16 %v12681_v37, %v12677_v43  ;;  %v5435_v39 = vsel %vm4372_vm2, %v12721_v1, 0  ;;  %v15008_v29 = vpack.i.b16 %v12731_v62, %v12705_v42 }
 0x358   : > { %v3251_v18 = vpack.i.b16 %v3250_v35, %v3249_v30  ;;  %v15009_v43 = vpack.i.b16 %v12785_v8, %v12756_v27  ;;  %v5527_v22 = vsel %vm4372_vm2, %v3233_v33, 0  ;;  %v15010_v42 = vpack.i.b16 %v12763_v55, %v12750_v40 }
 0x359   : > { %v5389_v44 = vsel %vm4372_vm2, %v15007_v25, 0  ;;  %v15011_v1 = vpack.i.b16 %v12813_v56, %v12778_v59  ;;  %v15012_v40 = vpack.i.b16 %v12790_v10, %v12770_v4  ;;  %v5665_v27 = vsel %vm4372_vm2, %v3242_v53, 0 }
 0x35a   : > { %v5481_v37 = vsel %vm4372_vm2, %v15009_v43, 0  ;;  %v5711_v55 = vsel %vm4372_vm2, %v3245_v2, 0  ;;  %v5757_v4 = vsel %vm4372_vm2, %v3248_v21, 0 }
 0x35b   : > { %10200 = vmatmul.mubr.msk.bf16.vlgmr.msra.gmra.mrb[48].mxu0 %vm4372_vm2, %v15006_v5  ;;  %v5573_v62 = vsel %vm4372_vm2, %v15011_v1, 0 }
 0x35c   : > { %10210 = vmatpush3.bf16.xpose.msra.mxu0 %v5389_v44  ;;  %10211 = vmatprep.mubr.msk.bf16.mxu0 %vm10905_vm1, %v14921_v26 }
 0x35d   : > { %10206 = vmatmul.mubr.msk.bf16.vlgmr.msra.gmra.mrb[64].mxu1 %vm4372_vm2, %v12739_v52  ;;  %10221 = vmatprep.subr.bf16.mxu0 %v14921_v26  ;;  %v5619_v52 = vsel %vm4372_vm2, %v3239_v16, 0 }
 0x35e   : > { %10216 = vmatpush3.bf16.xpose.msra.mxu1 %v5435_v39  ;;  %10217 = vmatprep.mubr.msk.bf16.mxu1 %vm10905_vm1, %v14921_v26 }
 0x35f   : > { %10227 = vmatprep.subr.bf16.mxu1 %v14921_v26 }
 0x363   : > { %10212 = vmatmul.mubr.msk.bf16.vlgmr.msra.gmra.mrb[52].mxu0 %vm4372_vm2, %v15008_v29 }
 0x364   : > { %10222 = vmatpush3.bf16.xpose.msra.mxu0 %v5481_v37  ;;  %10223 = vmatprep.mubr.msk.bf16.mxu0 %vm10905_vm1, %v14921_v26 }
 0x365   : > { %10218 = vmatmul.mubr.msk.bf16.vlgmr.msra.gmra.mrb[68].mxu1 %vm4372_vm2, %v12772_v6  ;;  %10233 = vmatprep.subr.bf16.mxu0 %v14921_v26  ;;  %v5803_v6 = vsel %vm4372_vm2, %v3251_v18, 0 }
 0x366   : > { %10228 = vmatpush3.bf16.xpose.msra.mxu1 %v5527_v22  ;;  %10229 = vmatprep.mubr.msk.bf16.mxu1 %vm10905_vm1, %v14921_v26 }
 0x367   : > { %10239 = vmatprep.subr.bf16.mxu1 %v14921_v26 }
 0x36b   : > { %10224 = vmatmul.mubr.msk.bf16.vlgmr.msra.gmra.mrb[56].mxu0 %vm4372_vm2, %v15010_v42 }
 0x36c   : > { %10234 = vmatpush3.bf16.xpose.msra.mxu0 %v5573_v62  ;;  %10235 = vmatprep.mubr.msk.bf16.mxu0 %vm10905_vm1, %v14921_v26 }
 0x36d   : > { %10230 = vmatmul.mubr.msk.bf16.vlgmr.msra.gmra.mrb[72].mxu1 %vm4372_vm2, %v12815_v31  ;;  %10245 = vmatprep.subr.bf16.mxu0 %v14921_v26 }
 0x36e   : > { %10240 = vmatpush3.bf16.xpose.msra.mxu1 %v5619_v52  ;;  %10241 = vmatprep.mubr.msk.bf16.mxu1 %vm10905_vm1, %v14921_v26 }
 0x36f   : > { %10251 = vmatprep.subr.bf16.mxu1 %v14921_v26 }
 0x373   : > { %10236 = vmatmul.mubr.msk.bf16.vlgmr.msra.gmra.mrb[60].mxu0 %vm4372_vm2, %v15012_v40 }
 0x374   : > { %10246 = vmatpush3.bf16.xpose.msra.mxu0 %v5665_v27  ;;  %10247 = vmatprep.mubr.msk.bf16.mxu0 %vm10905_vm1, %v14921_v26 }
 0x375   : > { %10242 = vmatmul.mubr.msk.bf16.vlgmr.msra.gmra.mrb[76].mxu1 %vm4372_vm2, %v12835_v12  ;;  %10257 = vmatprep.subr.bf16.mxu0 %v14921_v26 }
 0x376   : > { %10252 = vmatpush3.bf16.xpose.msra.mxu1 %v5711_v55  ;;  %10253 = vmatprep.mubr.msk.bf16.mxu1 %vm10905_vm1, %v14921_v26 }
 0x377   : > { %10263 = vmatprep.subr.bf16.mxu1 %v14921_v26 }
 0x37b   : > { %10248 = vmatmul.mubr.msk.bf16.vlgmr.msra.gmra.mrb[64].mxu0 %vm4372_vm2, %v2122_v32 }
 0x37c   : > { %10258 = vmatpush3.bf16.xpose.msra.mxu0 %v5757_v4  ;;  %10259 = vmatprep.mubr.msk.bf16.mxu0 %vm10905_vm1, %v14921_v26 }
 0x37d   : > { %10254 = vmatmul.mubr.msk.bf16.vlgmr.msra.gmra.mrb[80].mxu1 %vm4372_vm2, %v2125_v13  ;;  %10269 = vmatprep.subr.bf16.mxu0 %v14921_v26 }
 0x37e   : > { %10264 = vmatpush3.bf16.xpose.msra.mxu1 %v5803_v6  ;;  %10265 = vmatprep.mubr.msk.bf16.mxu1 %vm10905_vm1, %v14921_v26 }
 0x37f   : > { %10275 = vmatprep.subr.bf16.mxu1 %v14921_v26 }
 0x383   : > { %10260 = vmatmul.mubr.msk.bf16.vlgmr.msra.gmra.mrb[68].mxu0 %vm4372_vm2, %v2128_v51 }
 0x384   : > { %10271 = vmatprep.mubr.msk.bf16.mxu0 %vm10905_vm1, %v14921_v26 }
 0x385   : > { %10266 = vmatmul.mubr.msk.bf16.vlgmr.msra.gmra.mrb[84].mxu1 %vm4372_vm2, %v2131_v46 }
 0x386   : > { %10277 = vmatprep.mubr.msk.bf16.mxu1 %vm10905_vm1, %v14921_v26 }
 0x3dd   : > { %v12977_v60 = vpop.f32.mrb[8].mxu0 }
 0x3de   : > { %v10081_v59 = vpop.f32.mrb[9].mxu0  ;;  %v5845_v8 = vsel %vm4372_vm2, %v12977_v60, -inf }
 0x3df   : > { %v12981_v10 = vpop.f32.mrb[24].mxu1  ;;  %5846 = vmax.xlane.f32.xlu1 %v5845_v8  ;;  %v4416_v56 = vpop.f32.mrb[10].mxu0 }
 0x3e0   : > { %v10082_v31 = vpop.f32.mrb[11].mxu0  ;;  %v10087_v16 = vpop.f32.mrb[25].mxu1  ;;  %v5848_v33 = vsel %vm4372_vm2, %v12981_v10, -inf }
 0x3e1   : > { %5849 = vmax.xlane.f32.xlu0 %v5848_v33  ;;  %v4462_v12 = vpop.f32.mrb[26].mxu1 }
 0x3e2   : > { %v10088_v61 = vpop.f32.mrb[27].mxu1 }
 0x3e5   : > { %v12985_v32 = vpop.f32.mrb[12].mxu0 }
 0x3e6   : > { %v10093_v49 = vpop.f32.mrb[13].mxu0  ;;  %v5851_v15 = vsel %vm4372_vm2, %v12985_v32, -inf }
 0x3e7   : > { %v12989_v14 = vpop.f32.mrb[28].mxu1  ;;  %5852 = vmax.xlane.f32.xlu0 %v5851_v15  ;;  %v4508_v53 = vpop.f32.mrb[14].mxu0 }
 0x3e8   : > { %v10094_v24 = vpop.f32.mrb[15].mxu0  ;;  %v10099_v23 = vpop.f32.mrb[29].mxu1  ;;  %v5854_v36 = vsel %vm4372_vm2, %v12989_v14, -inf }
 0x3e9   : > { %5855 = vmax.xlane.f32.xlu1 %v5854_v36  ;;  %v4554_v13 = vpop.f32.mrb[30].mxu1 }
 0x3ea   : > { %v10100_v51 = vpop.f32.mrb[31].mxu1 }
 0x3ed   : > { %v12993_v38 = vpop.f32.mrb[16].mxu0 }
 0x3ee   : > { %v10105_v63 = vpop.f32.mrb[17].mxu0  ;;  %v5857_v2 = vsel %vm4372_vm2, %v12993_v38, -inf }
 0x3ef   : > { %v12997_v21 = vpop.f32.mrb[32].mxu1  ;;  %5858 = vmax.xlane.f32.xlu0 %v5857_v2  ;;  %v4600_v30 = vpop.f32.mrb[18].mxu0 }
 0x3f0   : > { %v10106_v35 = vpop.f32.mrb[19].mxu0  ;;  %v10111_v46 = vpop.f32.mrb[33].mxu1  ;;  %v5860_v18 = vsel %vm4372_vm2, %v12997_v21, -inf }
 0x3f1   : > { %5861 = vmax.xlane.f32.xlu1 %v5860_v18  ;;  %v4646_v5 = vpop.f32.mrb[34].mxu1 }
 0x3f2   : > { %v10112_v25 = vpop.f32.mrb[35].mxu1 }
 0x3f5   : > { %v13001_v44 = vpop.f32.mrb[20].mxu0 }
 0x3f6   : > { %v10117_v39 = vpop.f32.mrb[21].mxu0  ;;  %v5863_v29 = vsel %vm4372_vm2, %v13001_v44, -inf }
 0x3f7   : > { %v13005_v43 = vpop.f32.mrb[36].mxu1  ;;  %5864 = vmax.xlane.f32.xlu0 %v5863_v29  ;;  %v4692_v37 = vpop.f32.mrb[22].mxu0 }
 0x3f8   : > { %v10118_v22 = vpop.f32.mrb[23].mxu0  ;;  %v10123_v42 = vpop.f32.mrb[37].mxu1  ;;  %v5866_v1 = vsel %vm4372_vm2, %v13005_v43, -inf }
 0x3f9   : > { %5867 = vmax.xlane.f32.xlu1 %v5866_v1  ;;  %v4738_v62 = vpop.f32.mrb[38].mxu1 }
 0x3fa   : > { %v10124_v52 = vpop.f32.mrb[39].mxu1 }
 0x3fe   : > { %v13009_v40 = vpop.f32.mrb[24].mxu0 }
 0x3ff   : > { %v10129_v27 = vpop.f32.mrb[25].mxu0  ;;  %v5869_v55 = vsel %vm4372_vm2, %v13009_v40, -inf }
 0x400   : > { %v13013_v4 = vpop.f32.mrb[40].mxu1  ;;  %5870 = vmax.xlane.f32.xlu0 %v5869_v55  ;;  %v4784_v6 = vpop.f32.mrb[26].mxu0 }
 0x401   : > { %v10130_v59 = vpop.f32.mrb[27].mxu0  ;;  %v10135_v8 = vpop.f32.mrb[41].mxu1  ;;  %v5872_v56 = vsel %vm4372_vm2, %v13013_v4, -inf }
 0x402   : > { %5873 = vmax.xlane.f32.xlu1 %v5872_v56  ;;  %v4830_v31 = vpop.f32.mrb[42].mxu1 }
 0x403   : > { %v10136_v16 = vpop.f32.mrb[43].mxu1 }
 0x406   : > { %v13017_v33 = vpop.f32.mrb[28].mxu0 }
 0x407   : > { %v10141_v12 = vpop.f32.mrb[29].mxu0  ;;  %v5875_v61 = vsel %vm4372_vm2, %v13017_v33, -inf }
 0x408   : > { %v13021_v49 = vpop.f32.mrb[44].mxu1  ;;  %5876 = vmax.xlane.f32.xlu0 %v5875_v61  ;;  %v4876_v15 = vpop.f32.mrb[30].mxu0 }
 0x409   : > { %v10142_v53 = vpop.f32.mrb[31].mxu0  ;;  %v10147_v24 = vpop.f32.mrb[45].mxu1  ;;  %v5878_v23 = vsel %vm4372_vm2, %v13021_v49, -inf }
 0x40a   : > { %5879 = vmax.xlane.f32.xlu1 %v5878_v23  ;;  %v4922_v36 = vpop.f32.mrb[46].mxu1 }
 0x40b   : > { %v10148_v13 = vpop.f32.mrb[47].mxu1 }
 0x40e   : > { %v13025_v51 = vpop.f32.mrb[32].mxu0 }
 0x40f   : > { %v10153_v63 = vpop.f32.mrb[33].mxu0  ;;  %v5881_v2 = vsel %vm4372_vm2, %v13025_v51, -inf }
 0x410   : > { %v13029_v30 = vpop.f32.mrb[48].mxu1  ;;  %5882 = vmax.xlane.f32.xlu0 %v5881_v2  ;;  %v4968_v35 = vpop.f32.mrb[34].mxu0 }
 0x411   : > { %v10154_v46 = vpop.f32.mrb[35].mxu0  ;;  %v10159_v18 = vpop.f32.mrb[49].mxu1  ;;  %v5884_v5 = vsel %vm4372_vm2, %v13029_v30, -inf }
 0x412   : > { %5885 = vmax.xlane.f32.xlu1 %v5884_v5  ;;  %v5014_v25 = vpop.f32.mrb[50].mxu1 }
 0x413   : > { %v10160_v39 = vpop.f32.mrb[51].mxu1 }
 0x416   : > { %v13033_v29 = vpop.f32.mrb[36].mxu0 }
 0x417   : > { %v10165_v37 = vpop.f32.mrb[37].mxu0  ;;  %v5887_v22 = vsel %vm4372_vm2, %v13033_v29, -inf }
 0x418   : > { %v13037_v42 = vpop.f32.mrb[52].mxu1  ;;  %5888 = vmax.xlane.f32.xlu0 %v5887_v22  ;;  %v5060_v1 = vpop.f32.mrb[38].mxu0 }
 0x419   : > { %v10166_v62 = vpop.f32.mrb[39].mxu0  ;;  %v10171_v52 = vpop.f32.mrb[53].mxu1  ;;  %v5890_v27 = vsel %vm4372_vm2, %v13037_v42, -inf }
 0x41a   : > { %5891 = vmax.xlane.f32.xlu1 %v5890_v27  ;;  %v5106_v55 = vpop.f32.mrb[54].mxu1 }
 0x41b   : > { %v10172_v6 = vpop.f32.mrb[55].mxu1 }
 0x41e   : > { %v13041_v59 = vpop.f32.mrb[40].mxu0 }
 0x41f   : > { %v10177_v8 = vpop.f32.mrb[41].mxu0  ;;  %v5893_v56 = vsel %vm4372_vm2, %v13041_v59, -inf }
 0x420   : > { %v13045_v31 = vpop.f32.mrb[56].mxu1  ;;  %5894 = vmax.xlane.f32.xlu0 %v5893_v56  ;;  %v5152_v16 = vpop.f32.mrb[42].mxu0 }
 0x421   : > { %v10178_v12 = vpop.f32.mrb[43].mxu0  ;;  %v10183_v61 = vpop.f32.mrb[57].mxu1  ;;  %v5896_v15 = vsel %vm4372_vm2, %v13045_v31, -inf }
 0x422   : > { %5897 = vmax.xlane.f32.xlu1 %v5896_v15  ;;  %v5198_v53 = vpop.f32.mrb[58].mxu1 }
 0x423   : > { %v10184_v24 = vpop.f32.mrb[59].mxu1  ;;  %v15017_v53 = vld [vmem:[#allocation23_spill] sm:$0xff] }
 0x426   : > { %v13049_v23 = vpop.f32.mrb[44].mxu0 }
 0x427   : > { %v10189_v36 = vpop.f32.mrb[45].mxu0  ;;  %v5899_v13 = vsel %vm4372_vm2, %v13049_v23, -inf }
 0x428   : > { %v13053_v63 = vpop.f32.mrb[60].mxu1  ;;  %5900 = vmax.xlane.f32.xlu0 %v5899_v13  ;;  %v5244_v2 = vpop.f32.mrb[46].mxu0  ;;  %v15018_v36 = vld [vmem:[#allocation22_spill] sm:$0xff] }
 0x429   : > { %v10190_v35 = vpop.f32.mrb[47].mxu0  ;;  %v10195_v46 = vpop.f32.mrb[61].mxu1  ;;  %v5902_v18 = vsel %vm4372_vm2, %v13053_v63, -inf }
 0x42a   : > { %5903 = vmax.xlane.f32.xlu1 %v5902_v18  ;;  %v5290_v5 = vpop.f32.mrb[62].mxu1 }
 0x42b   : > { %v10196_v25 = vpop.f32.mrb[63].mxu1 }
 0x42e   : > { %v13057_v39 = vpop.f32.mrb[48].mxu0 }
 0x42f   : > { %15013 = vst [vmem:[#allocation35_spill] sm:$0xff] %v13057_v39  ;;  %v10201_v37 = vpop.f32.mrb[49].mxu0 }
 0x430   : > { %v5336_v22 = vpop.f32.mrb[50].mxu0  ;;  %v13059_v1 = vpop.f32.mrb[64].mxu1 }
 0x431   : > { %15014 = vst [vmem:[#allocation28_spill] sm:$0xff] %v13059_v1  ;;  %v10202_v62 = vpop.f32.mrb[51].mxu0  ;;  %v10207_v52 = vpop.f32.mrb[65].mxu1 }
 0x432   : > { %v5382_v27 = vpop.f32.mrb[66].mxu1 }
 0x433   : > { %v10208_v55 = vpop.f32.mrb[67].mxu1 }
 0x436   : > { %v13061_v6 = vpop.f32.mrb[52].mxu0 }
 0x437   : > { %15015 = vst [vmem:[#allocation27_spill] sm:$0xff] %v13061_v6  ;;  %v10213_v8 = vpop.f32.mrb[53].mxu0 }
 0x438   : > { %v5428_v56 = vpop.f32.mrb[54].mxu0  ;;  %v13063_v16 = vpop.f32.mrb[68].mxu1 }
 0x439   : > { %15016 = vst [vmem:[#allocation37_spill] sm:$0xff] %v13063_v16  ;;  %v10214_v12 = vpop.f32.mrb[55].mxu0  ;;  %v10219_v61 = vpop.f32.mrb[69].mxu1 }
 0x43a   : > { %v5474_v15 = vpop.f32.mrb[70].mxu1 }
 0x43b   : > { %3280 = vrot.lane.b32.xlu1 %v15017_v53, %s10900_s13  ;;  %v10220_v24 = vpop.f32.mrb[71].mxu1 }
 0x43e   : > { %3282 = vrot.lane.b32.xlu0 %v15018_v36, %s10900_s13  ;;  %v13069_v13 = vpop.f32.mrb[56].mxu0  ;;  %s10909_s13 = smov 16  }
 0x43f   : > { %v10225_v2 = vpop.f32.mrb[57].mxu0 }
 0x440   : > { %v5520_v35 = vpop.f32.mrb[58].mxu0  ;;  %v13071_v46 = vpop.f32.mrb[72].mxu1 }
 0x441   : > { %v10226_v18 = vpop.f32.mrb[59].mxu0  ;;  %v10231_v5 = vpop.f32.mrb[73].mxu1 }
 0x442   : > { %v5566_v25 = vpop.f32.mrb[74].mxu1 }
 0x443   : > { %v10232_v37 = vpop.f32.mrb[75].mxu1 }
 0x446   : > { %v13073_v22 = vpop.f32.mrb[60].mxu0 }
 0x447   : > { %v10237_v62 = vpop.f32.mrb[61].mxu0 }
 0x448   : > { %v5612_v52 = vpop.f32.mrb[62].mxu0  ;;  %v13075_v27 = vpop.f32.mrb[76].mxu1 }
 0x449   : > { %v10238_v55 = vpop.f32.mrb[63].mxu0  ;;  %v10243_v8 = vpop.f32.mrb[77].mxu1 }
 0x44a   : > { %v5658_v56 = vpop.f32.mrb[78].mxu1 }
 0x44b   : > { %v10244_v12 = vpop.f32.mrb[79].mxu1 }
 0x44c   : > { %v5905_v12 = vsel %vm4372_vm2, %v13057_v39, -inf }
 0x44e   : > { %v13077_v61 = vpop.f32.mrb[64].mxu0 }
 0x44f   : > { %v10249_v15 = vpop.f32.mrb[65].mxu0 }
 0x450   : > { %v5704_v53 = vpop.f32.mrb[66].mxu0  ;;  %v13079_v24 = vpop.f32.mrb[80].mxu1  ;;  %v5908_v15 = vsel %vm4372_vm2, %v13059_v1, -inf }
 0x451   : > { %v10250_v36 = vpop.f32.mrb[67].mxu0  ;;  %v10255_v2 = vpop.f32.mrb[81].mxu1  ;;  %v5911_v53 = vsel %vm4372_vm2, %v13061_v6, -inf }
 0x452   : > { %v5750_v35 = vpop.f32.mrb[82].mxu1  ;;  %v5914_v36 = vsel %vm4372_vm2, %v13063_v16, -inf  ;;  %v13093_v2 = vpop.permute.xlu1 %3264 }
 0x453   : > { %v10256_v18 = vpop.f32.mrb[83].mxu1  ;;  %v13095_v35 = vpop.permute.xlu0 %3266 }
 0x456   : > { %v13081_v5 = vpop.f32.mrb[68].mxu0  ;;  %v13097_v18 = vpop.permute.xlu1 %3272 }
 0x457   : > { %v10261_v25 = vpop.f32.mrb[69].mxu0 }
 0x458   : > { %v5796_v37 = vpop.f32.mrb[70].mxu0  ;;  %v13083_v62 = vpop.f32.mrb[84].mxu1 }
 0x459   : > { %15019 = vst [vmem:[#allocation36_spill] sm:$0xff] %v13083_v62  ;;  %v10262_v52 = vpop.f32.mrb[71].mxu0  ;;  %v10267_v55 = vpop.f32.mrb[85].mxu1 }
 0x45a   : > { %v5842_v8 = vpop.f32.mrb[86].mxu1  ;;  %v13099_v25 = vpop.permute.xlu0 %3274 }
 0x45b   : > { %v10268_v56 = vpop.f32.mrb[87].mxu1 }
 0x45d   : > { %5906 = vmax.xlane.f32.xlu0 %v5905_v12 }
 0x45f   : > { %5909 = vmax.xlane.f32.xlu1 %v5908_v15 }
 0x461   : > { %5912 = vmax.xlane.f32.xlu0 %v5911_v53 }
 0x463   : > { %5915 = vmax.xlane.f32.xlu1 %v5914_v36 }
 0x46c   : > { %v5847_v37 = vpop.xlane.xlu1 %5846 }
 0x46d   : > { %v5941_v52 = vsub.f32 %v12977_v60, %v5847_v37 }
 0x46e   : > { %v5850_v55 = vpop.xlane.xlu0 %5849 }
 0x46f   : > { %v5973_v8 = vmul.f32 1.442695, %v5941_v52  ;;  %v5942_v56 = vsub.f32 %v12981_v10, %v5850_v55 }
 0x471   : > { %10595 = vpow2.f32 %v5973_v8  ;;  %v5975_v12 = vmul.f32 1.442695, %v5942_v56 }
 0x473   : > { %10597 = vpow2.f32 %v5975_v12 }
 0x474   : > { %v5853_v15 = vpop.xlane.xlu0 %5852 }
 0x475   : > { %v5943_v53 = vsub.f32 %v12985_v32, %v5853_v15 }
 0x476   : > { %v5856_v36 = vpop.xlane.xlu1 %5855 }
 0x477   : > { %v5977_v16 = vmul.f32 1.442695, %v5943_v53  ;;  %v5944_v6 = vsub.f32 %v12989_v14, %v5856_v36 }
 0x479   : > { %10599 = vpow2.f32 %v5977_v16  ;;  %v5979_v1 = vmul.f32 1.442695, %v5944_v6  ;;  %v5917_v16 = vsel %vm4372_vm2, %v13069_v13, -inf }
 0x47b   : > { %v13105_v39 = vpop.eup %10595  ;;  %10601 = vpow2.f32 %v5979_v1  ;;  %v5920_v1 = vsel %vm4372_vm2, %v13071_v46, -inf }
 0x47c   : > { %v5859_v60 = vpop.xlane.xlu0 %5858  ;;  %v6037_v37 = vsel %vm4372_vm2, %v13105_v39, 0.0 }
 0x47d   : > { %v13109_v10 = vpop.eup %10597  ;;  %v5945_v52 = vsub.f32 %v12993_v38, %v5859_v60  ;;  %6038 = vadd.xlane.f32.xlu0 %v6037_v37 }
 0x47e   : > { %v5862_v55 = vpop.xlane.xlu1 %5861  ;;  %v6040_v32 = vsel %vm4372_vm2, %v13109_v10, 0.0 }
 0x47f   : > { %v5981_v8 = vmul.f32 1.442695, %v5945_v52  ;;  %v5946_v14 = vsub.f32 %v12997_v21, %v5862_v55  ;;  %6041 = vadd.xlane.f32.xlu1 %v6040_v32  ;;  %v5923_v52 = vsel %vm4372_vm2, %v13073_v22, -inf  ;;  %v5926_v32 = vsel %vm4372_vm2, %v13075_v27, -inf }
 0x481   : > { %10603 = vpow2.f32 %v5981_v8  ;;  %v5983_v6 = vmul.f32 1.442695, %v5946_v14  ;;  %5921 = vmax.xlane.f32.xlu0 %v5920_v1 }
 0x483   : > { %v13119_v56 = vpop.eup %10599  ;;  %10605 = vpow2.f32 %v5983_v6  ;;  %5918 = vmax.xlane.f32.xlu1 %v5917_v16 }
 0x484   : > { %v5865_v38 = vpop.xlane.xlu0 %5864  ;;  %v6043_v12 = vsel %vm4372_vm2, %v13119_v56, 0.0 }
 0x485   : > { %v13123_v15 = vpop.eup %10601  ;;  %v5947_v21 = vsub.f32 %v13001_v44, %v5865_v38  ;;  %6044 = vadd.xlane.f32.xlu0 %v6043_v12 }
 0x486   : > { %v5868_v53 = vpop.xlane.xlu1 %5867  ;;  %v6046_v36 = vsel %vm4372_vm2, %v13123_v15, 0.0 }
 0x487   : > { %v5985_v60 = vmul.f32 1.442695, %v5947_v21  ;;  %v5948_v37 = vsub.f32 %v13005_v43, %v5868_v53  ;;  %6047 = vadd.xlane.f32.xlu1 %v6046_v36  ;;  %v5929_v21 = vsel %vm4372_vm2, %v13077_v61, -inf  ;;  %v5932_v36 = vsel %vm4372_vm2, %v13079_v24, -inf }
 0x489   : > { %10607 = vpow2.f32 %v5985_v60  ;;  %v5987_v55 = vmul.f32 1.442695, %v5948_v37  ;;  %5924 = vmax.xlane.f32.xlu0 %v5923_v52 }
 0x48b   : > { %v13133_v8 = vpop.eup %10603  ;;  %10609 = vpow2.f32 %v5987_v55  ;;  %5927 = vmax.xlane.f32.xlu1 %v5926_v32 }
 0x48c   : > { %v6049_v14 = vsel %vm4372_vm2, %v13133_v8, 0.0 }
 0x48d   : > { %v5871_v44 = vpop.xlane.xlu0 %5870  ;;  %v13137_v1 = vpop.eup %10605  ;;  %6050 = vadd.xlane.f32.xlu0 %v6049_v14 }
 0x48e   : > { %v5949_v43 = vsub.f32 %v13009_v40, %v5871_v44  ;;  %v6052_v16 = vsel %vm4372_vm2, %v13137_v1, 0.0 }
 0x48f   : > { %v5874_v6 = vpop.xlane.xlu1 %5873  ;;  %6053 = vadd.xlane.f32.xlu1 %v6052_v16  ;;  %v5938_v16 = vsel %vm4372_vm2, %v13083_v62, -inf }
 0x490   : > { %v5989_v38 = vmul.f32 1.442695, %v5949_v43  ;;  %v5950_v12 = vsub.f32 %v13013_v4, %v5874_v6  ;;  %v5935_v43 = vsel %vm4372_vm2, %v13081_v5, -inf }
 0x491   : > { %5930 = vmax.xlane.f32.xlu0 %v5929_v21 }
 0x492   : > { %10611 = vpow2.f32 %v5989_v38  ;;  %v5991_v53 = vmul.f32 1.442695, %v5950_v12 }
 0x493   : > { %v13147_v60 = vpop.eup %10607  ;;  %5933 = vmax.xlane.f32.xlu1 %v5932_v36 }
 0x494   : > { %15020 = vst [vmem:[#allocation29_spill] sm:$0xff] %v13147_v60  ;;  %10613 = vpow2.f32 %v5991_v53  ;;  %v6055_v37 = vsel %vm4372_vm2, %v13147_v60, 0.0 }
 0x495   : > { %v5877_v40 = vpop.xlane.xlu0 %5876  ;;  %v13151_v52 = vpop.eup %10609  ;;  %6056 = vadd.xlane.f32.xlu0 %v6055_v37 }
 0x496   : > { %15021 = vst [vmem:[#allocation30_spill] sm:$0xff] %v13151_v52  ;;  %v5951_v4 = vsub.f32 %v13017_v33, %v5877_v40  ;;  %v6058_v32 = vsel %vm4372_vm2, %v13151_v52, 0.0 }
 0x497   : > { %v5880_v55 = vpop.xlane.xlu1 %5879  ;;  %6059 = vadd.xlane.f32.xlu1 %v6058_v32 }
 0x498   : > { %v5993_v44 = vmul.f32 1.442695, %v5951_v4  ;;  %v5952_v14 = vsub.f32 %v13021_v49, %v5880_v55 }
 0x499   : > { %5936 = vmax.xlane.f32.xlu0 %v5935_v43 }
 0x49a   : > { %10615 = vpow2.f32 %v5993_v44  ;;  %v5995_v6 = vmul.f32 1.442695, %v5952_v14 }
 0x49b   : > { %5939 = vmax.xlane.f32.xlu1 %v5938_v16 }
 0x49c   : > { %v13161_v38 = vpop.eup %10611  ;;  %10617 = vpow2.f32 %v5995_v6 }
 0x49d   : > { %15022 = vst [vmem:[#allocation39_spill] sm:$0xff] %v13161_v38  ;;  %v5883_v33 = vpop.xlane.xlu0 %5882  ;;  %v6061_v12 = vsel %vm4372_vm2, %v13161_v38, 0.0 }
 0x49e   : > { %v13165_v21 = vpop.eup %10613  ;;  %v5953_v49 = vsub.f32 %v13025_v51, %v5883_v33  ;;  %6062 = vadd.xlane.f32.xlu0 %v6061_v12  ;;  %v3510_v33 = vcombine.low %v12476_v45, %v12527_v9 }
 0x49f   : > { %15023 = vst [vmem:[#allocation33_spill] sm:$0xff] %v13165_v21  ;;  %v5886_v53 = vpop.xlane.xlu1 %5885  ;;  %v6064_v36 = vsel %vm4372_vm2, %v13165_v21, 0.0 }
 0x4a0   : > { %v5997_v40 = vmul.f32 1.442695, %v5953_v49  ;;  %v5954_v37 = vsub.f32 %v13029_v30, %v5886_v53  ;;  %6065 = vadd.xlane.f32.xlu1 %v6064_v36  ;;  %v3526_v53 = vcombine.low %v12506_v41, %v12534_v0 }
 0x4a2   : > { %10619 = vpow2.f32 %v5997_v40  ;;  %v5999_v4 = vmul.f32 1.442695, %v5954_v37  ;;  %v15028_v40 = vld [vmem:[#allocation34_spill] sm:$0xff] }
 0x4a3   : > { %v3576_v37 = vcombine.low %v15028_v40, %v12538_v7 }
 0x4a4   : > { %v13171_v55 = vpop.eup %10615  ;;  %10621 = vpow2.f32 %v5999_v4 }
 0x4a5   : > { %15024 = vst [vmem:[#allocation31_spill] sm:$0xff] %v13171_v55  ;;  %v5889_v32 = vpop.xlane.xlu0 %5888  ;;  %v6067_v44 = vsel %vm4372_vm2, %v13171_v55, 0.0  ;;  %v13212_v55 = vrot.slane %v3526_v53, %v11350_v34  ;;  %v3394_v53 = vcombine.low %v12610_v3, %v12616_v11 }
 0x4a6   : > { %v13175_v14 = vpop.eup %10617  ;;  %v5955_v51 = vsub.f32 %v13033_v29, %v5889_v32  ;;  %6068 = vadd.xlane.f32.xlu0 %v6067_v44  ;;  %v15027_v29 = vld [vmem:[#allocation38_spill] sm:$0xff]  ;;  %v15030_v44 = vld [vmem:[#allocation45_spill] sm:$0xff] }
 0x4a7   : > { %15025 = vst [vmem:[#allocation48_spill] sm:$0xff] %v13175_v14  ;;  %v5892_v43 = vpop.xlane.xlu1 %5891  ;;  %v6070_v6 = vsel %vm4372_vm2, %v13175_v14, 0.0  ;;  %v3336_v36 = vshrl.u32 %v15027_v29, 16  ;;  %v3321_v14 = vshrl.u32 %v13093_v2, 16 }
 0x4a8   : > { %v6001_v30 = vmul.f32 1.442695, %v5955_v51  ;;  %v5956_v16 = vsub.f32 %v13037_v42, %v5892_v43  ;;  %6071 = vadd.xlane.f32.xlu1 %v6070_v6  ;;  %v3320_v51 = vshrl.u32 %v15030_v44, 16  ;;  %v13196_v43 = vrot.slane %v3510_v33, %v11350_v34 }
 0x4a9   : > { %v3337_v6 = vshrl.u32 %v13095_v35, 16 }
 0x4aa   : > { %10623 = vpow2.f32 %v6001_v30  ;;  %v6003_v12 = vmul.f32 1.442695, %v5956_v16  ;;  %v15031_v16 = vcombine.high %v12476_v45, %v12527_v9  ;;  %v15032_v9 = vcombine.high %v12506_v41, %v12534_v0 }
 0x4ab   : > { %v3460_v41 = vcombine.low %v12630_v19, %v12627_v57  ;;  %v3338_v0 = vpack.i.b16 %v3337_v6, %v3336_v36 }
 0x4ac   : > { %v13183_v49 = vpop.eup %10619  ;;  %10625 = vpow2.f32 %v6003_v12  ;;  %v13204_v12 = vrot.slane %v15031_v16, %v11350_v34  ;;  %v13225_v16 = vrot.slane %v3576_v37, %v11350_v34 }
 0x4ad   : > { %15026 = vst [vmem:[#allocation44_spill] sm:$0xff] %v13183_v49  ;;  %v5895_v4 = vpop.xlane.xlu0 %5894  ;;  %v6073_v42 = vsel %vm4372_vm2, %v13183_v49, 0.0  ;;  %v3592_v49 = vcombine.low %v12557_v58, %v12553_v48 }
 0x4ae   : > { %v13192_v32 = vpop.eup %10621  ;;  %v5957_v30 = vsub.f32 %v13041_v59, %v5895_v4  ;;  %6074 = vadd.xlane.f32.xlu0 %v6073_v42  ;;  %v3378_v59 = vcombine.low %v12575_v47, %v12602_v28  ;;  %v3444_v4 = vcombine.low %v12613_v54, %v12606_v20  ;;  %v13222_v42 = vrot.slane %v15032_v9, %v11350_v34 }
 0x4af   : > { %15029 = vst [vmem:[#allocation50_spill] sm:$0xff] %v13192_v32  ;;  %v6076_v33 = vsel %vm4372_vm2, %v13192_v32, 0.0  ;;  %v3334_v32 = vpack.i.b16 %v13095_v35, %v15027_v29  ;;  %v5898_v21 = vpop.xlane.xlu1 %5897  ;;  %v13240_v37 = vrot.slane %v3592_v49, %v11350_v34  ;;  %v15034_v9 = vcombine.high %v12557_v58, %v12553_v48 }
 0x4b0   : > { %v6005_v45 = vmul.f32 1.442695, %v5957_v30  ;;  %6077 = vadd.xlane.f32.xlu1 %v6076_v33  ;;  %v15033_v30 = vcombine.high %v15028_v40, %v12538_v7  ;;  %v3318_v29 = vpack.i.b16 %v13093_v2, %v15030_v44  ;;  %v3322_v7 = vpack.i.b16 %v3321_v14, %v3320_v51  ;;  %v15038_v44 = vld [vmem:[#allocation19_spill] sm:$0xff] }
 0x4b1   : > { %v13246_v35 = vrot.slane %v15034_v9, %v11350_v34  ;;  %v15036_v49 = vcombine.high %v12575_v47, %v12602_v28  ;;  %v13262_v6 = vrot.slane %v3444_v4, %v11350_v34  ;;  %v5958_v48 = vsub.f32 %v13045_v31, %v5898_v21 }
 0x4b2   : > { %v13235_v33 = vrot.slane %v15033_v30, %v11350_v34  ;;  %10627 = vpow2.f32 %v6005_v45  ;;  %v13253_v30 = vrot.slane %v3378_v59, %v11350_v34  ;;  %v13266_v58 = vrot.slane %v3394_v53, %v11350_v34 }
 0x4b3   : > { %v13259_v36 = vrot.slane %v15036_v49, %v11350_v34  ;;  %v15037_v2 = vcombine.high %v12610_v3, %v12616_v11  ;;  %v3744_v51 = vcombine.high %v3334_v32, %v15038_v44  ;;  %v15040_v31 = vcombine.high %v12613_v54, %v12606_v20 }
 0x4b4   : > { %v13250_v40 = vpop.eup %10623  ;;  %v13286_v4 = vrot.slane %v3460_v41, %v11350_v34  ;;  %v3810_v3 = vcombine.high %v3338_v0, %v15038_v44  ;;  %v15041_v45 = vcombine.high %v12630_v19, %v12627_v57  ;;  %v3612_v9 = vcombine.high %v3318_v29, %v15038_v44 }
 0x4b5   : > { %15035 = vst [vmem:[#allocation49_spill] sm:$0xff] %v13250_v40  ;;  %v13272_v14 = vrot.slane %v15037_v2, %v11350_v34  ;;  %v5901_v59 = vpop.xlane.xlu0 %5900  ;;  %v6079_v47 = vsel %vm4372_vm2, %v13250_v40, 0.0  ;;  %v13283_v21 = vrot.slane %v15040_v31, %v11350_v34  ;;  %v3678_v20 = vcombine.high %v3322_v7, %v15038_v44 }
 0x4b6   : > { %v13277_v28 = vpop.eup %10625  ;;  %v5959_v11 = vsub.f32 %v13049_v23, %v5901_v59  ;;  %6080 = vadd.xlane.f32.xlu0 %v6079_v47  ;;  %v13294_v53 = vrot.slane %v15041_v45, %v11350_v34  ;;  %v3751_v49 = vrot.slane %v3334_v32, %v11333_v17  ;;  %v3344_v2 = vshrl.u32 %v13099_v25, 16 }
 0x4b7   : > { %15039 = vst [vmem:[#allocation25_spill] sm:$0xff] %v13277_v28  ;;  %v5904_v54 = vpop.xlane.xlu1 %5903  ;;  %v6082_v41 = vsel %vm4372_vm2, %v13277_v28, 0.0  ;;  %v6007_v23 = vmul.f32 1.442695, %v5958_v48  ;;  %v3758_v57 = vrot.slane %v3744_v51, %v11333_v17  ;;  %v3817_v19 = vrot.slane %v3338_v0, %v11333_v17 }
 0x4b8   : > { %v5960_v59 = vsub.f32 %v13053_v63, %v5904_v54  ;;  %6083 = vadd.xlane.f32.xlu1 %v6082_v41  ;;  %v3328_v47 = vshrl.u32 %v13097_v18, 16  ;;  %v6009_v31 = vmul.f32 1.442695, %v5959_v11  ;;  %v3824_v40 = vrot.slane %v3810_v3, %v11333_v17 }
 0x4b9   : > { %v3283_v45 = vpop.permute.xlu0 %3282  ;;  %v13308_v28 = vrot.slane %v3318_v29, %v11333_v17  ;;  %v13312_v48 = vrot.slane %v3612_v9, %v11333_v17  ;;  %v13315_v63 = vrot.slane %v3322_v7, %v11333_v17  ;;  %v13318_v0 = vrot.slane %v3678_v20, %v11333_v17 }
 0x4ba   : > { %v3342_v32 = vpack.i.b16 %v3283_v45, %v13099_v25  ;;  %v3345_v38 = vshrl.u32 %v3283_v45, 16  ;;  %v6011_v51 = vmul.f32 1.442695, %v5960_v59  ;;  %10629 = vpow2.f32 %v6007_v23 }
 0x4bb   : > { %v3281_v11 = vpop.permute.xlu1 %3280  ;;  %10631 = vpow2.f32 %v6009_v31 }
 0x4bc   : > { %v13320_v54 = vpop.eup %10627  ;;  %v3346_v3 = vpack.i.b16 %v3345_v38, %v3344_v2  ;;  %v3759_v29 = vcombine.high %v3342_v32, %v15038_v44  ;;  %v3766_v25 = vrot.slane %v3342_v32, %v11333_v17  ;;  %v3326_v9 = vpack.i.b16 %v3281_v11, %v13097_v18 }
 0x4bd   : > { %15042 = vst [vmem:[#allocation18_spill] sm:$0xff] %v13320_v54  ;;  %v3329_v41 = vshrl.u32 %v3281_v11, 16  ;;  %v6085_v7 = vsel %vm4372_vm2, %v13320_v54, 0.0  ;;  %10633 = vpow2.f32 %v6011_v51 }
 0x4be   : > { %v3773_v20 = vrot.slane %v3759_v29, %v11333_v17  ;;  %v3774_v45 = vcombine.low %v3751_v49, %v3766_v25  ;;  %v3775_v59 = vcombine.high %v3751_v49, %v3766_v25  ;;  %v3825_v52 = vcombine.high %v3346_v3, %v15038_v44  ;;  %6086 = vadd.xlane.f32.xlu0 %v6085_v7 }
 0x4bf   : > { %v3832_v38 = vrot.slane %v3346_v3, %v11333_v17  ;;  %v13330_v2 = vpack.i.b16 %v3329_v41, %v3328_v47  ;;  %v3627_v23 = vcombine.high %v3326_v9, %v15038_v44  ;;  %v3634_v11 = vrot.slane %v3326_v9, %v11333_v17 }
 0x4c0   : > { %v3782_v18 = vrot.slane %v3774_v45, %v11350_v34  ;;  %v3790_v31 = vcombine.low %v3758_v57, %v3773_v20  ;;  %v3791_v32 = vcombine.high %v3758_v57, %v3773_v20  ;;  %v3789_v29 = vrot.slane %v3775_v59, %v11350_v34 }
 0x4c1   : > { %v3839_v49 = vrot.slane %v3825_v52, %v11333_v17  ;;  %v3840_v25 = vcombine.low %v3817_v19, %v3832_v38  ;;  %v3841_v54 = vcombine.high %v3817_v19, %v3832_v38  ;;  %v3641_v9 = vrot.slane %v3627_v23, %v11333_v17 }
 0x4c2   : > { %v3798_v51 = vrot.slane %v3790_v31, %v11350_v34  ;;  %v3805_v3 = vrot.slane %v3791_v32, %v11350_v34  ;;  %v3884_v47 = vcombine.low %v13196_v43, %v3782_v18  ;;  %v9745_v41 = vcombine.high %v13196_v43, %v3782_v18 }
 0x4c3   : > { %v3848_v7 = vrot.slane %v3840_v25, %v11350_v34  ;;  %v3856_v45 = vcombine.low %v3824_v40, %v3839_v49  ;;  %v3857_v57 = vcombine.high %v3824_v40, %v3839_v49  ;;  %v3855_v20 = vrot.slane %v3841_v54, %v11350_v34 }
 0x4c4   : > { %v13345_v52 = vrot.slane %v3884_v47, %v11333_v17  ;;  %v3909_v19 = vcombine.low %v13212_v55, %v3798_v51  ;;  %v9747_v59 = vcombine.high %v13212_v55, %v3798_v51  ;;  %v13357_v23 = vpop.eup %10629  ;;  %v13363_v31 = vrot.slane %v9745_v41, %v11333_v17 }
 0x4c5   : > { %v13350_v38 = vrot.slane %v3856_v45, %v11350_v34  ;;  %v13353_v43 = vrot.slane %v3857_v57, %v11350_v34  ;;  %v3934_v18 = vcombine.low %v13225_v16, %v3848_v7  ;;  %v9749_v40 = vcombine.high %v13225_v16, %v3848_v7  ;;  %15043 = vst [vmem:[#allocation26_spill] sm:$0xff] %v13357_v23  ;;  %v13367_v49 = vpop.eup %10631 }
 0x4c6   : > { %v13360_v54 = vrot.slane %v3909_v19, %v11333_v17  ;;  %v4084_v55 = vcombine.low %v13204_v12, %v3789_v29  ;;  %v4109_v32 = vcombine.low %v13222_v42, %v3805_v3  ;;  %15044 = vst [vmem:[#allocation21_spill] sm:$0xff] %v13367_v49  ;;  %v13375_v51 = vrot.slane %v9747_v59, %v11333_v17 }
 0x4c7   : > { %v13370_v25 = vrot.slane %v3934_v18, %v11333_v17  ;;  %v13378_v47 = vrot.slane %v9749_v40, %v11333_v17  ;;  %v4134_v45 = vcombine.low %v13235_v33, %v3855_v20  ;;  %v13388_v19 = vpop.eup %10633  ;;  %v9753_v18 = vcombine.high %v13204_v12, %v3789_v29 }
 0x4c8   : > { %v13383_v7 = vrot.slane %v4084_v55, %v11333_v17  ;;  %15045 = vst [vmem:[#allocation46_spill] sm:$0xff] %v13388_v19  ;;  %v9755_v59 = vcombine.high %v13222_v42, %v3805_v3  ;;  %v9757_v40 = vcombine.high %v13235_v33, %v3855_v20  ;;  %v9759_v16 = vcombine.high %v13246_v35, %v13353_v43 }
 0x4c9   : > { %v13396_v41 = vrot.slane %v4109_v32, %v11333_v17  ;;  %v3642_v55 = vcombine.low %v13308_v28, %v3634_v11  ;;  %v3643_v60 = vcombine.high %v13308_v28, %v3634_v11  ;;  %v3658_v57 = vcombine.low %v13312_v48, %v3641_v9 }
 0x4ca   : > { %v13402_v62 = vrot.slane %v4134_v45, %v11333_v17  ;;  %v13405_v12 = vrot.slane %v9753_v18, %v11333_v17  ;;  %v13408_v42 = vrot.slane %v9755_v59, %v11333_v17  ;;  %v13411_v33 = vrot.slane %v9757_v40, %v11333_v17 }
 0x4cb   : > { %v3650_v29 = vrot.slane %v3642_v55, %v11350_v34  ;;  %v3657_v3 = vrot.slane %v3643_v60, %v11350_v34  ;;  %v3659_v28 = vcombine.high %v13312_v48, %v3641_v9  ;;  %v3666_v11 = vrot.slane %v3658_v57, %v11350_v34 }
 0x4cc   : > { %v3693_v20 = vcombine.high %v13330_v2, %v15038_v44  ;;  %v3700_v32 = vrot.slane %v13330_v2, %v11333_v17  ;;  %v6088_v45 = vsel %vm4372_vm2, %v13357_v23, 0.0  ;;  %v6091_v18 = vsel %vm4372_vm2, %v13367_v49, 0.0 }
 0x4cd   : > { %v3673_v59 = vrot.slane %v3659_v28, %v11350_v34  ;;  %v3876_v60 = vcombine.low %v13253_v30, %v3650_v29  ;;  %v3901_v48 = vcombine.low %v13266_v58, %v3666_v11  ;;  %v9744_v9 = vcombine.high %v13253_v30, %v3650_v29  ;;  %6089 = vadd.xlane.f32.xlu1 %v6088_v45 }
 0x4ce   : > { %v3707_v44 = vrot.slane %v3693_v20, %v11333_v17  ;;  %v3708_v57 = vcombine.low %v13315_v63, %v3700_v32  ;;  %v3709_v2 = vcombine.high %v13315_v63, %v3700_v32  ;;  %v9746_v40 = vcombine.high %v13266_v58, %v3666_v11  ;;  %6092 = vadd.xlane.f32.xlu0 %v6091_v18 }
 0x4cf   : > { %v13434_v55 = vrot.slane %v9759_v16, %v11333_v17  ;;  %v3883_v28 = vrot.slane %v3876_v60, %v11333_v17  ;;  %v3908_v49 = vrot.slane %v3901_v48, %v11333_v17  ;;  %v4076_v23 = vcombine.low %v13259_v36, %v3657_v3 }
 0x4d0   : > { %v3716_v30 = vrot.slane %v3708_v57, %v11350_v34  ;;  %v3723_v29 = vrot.slane %v3709_v2, %v11350_v34  ;;  %v3724_v20 = vcombine.low %v13318_v0, %v3707_v44  ;;  %v3725_v63 = vcombine.high %v13318_v0, %v3707_v44 }
 0x4d1   : > { %v3983_v58 = vrot.slane %v9744_v9, %v11333_v17  ;;  %v4008_v11 = vrot.slane %v9746_v40, %v11333_v17  ;;  %v4101_v16 = vcombine.low %v13272_v14, %v3673_v59  ;;  %v9752_v32 = vcombine.high %v13259_v36, %v3657_v3 }
 0x4d2   : > { %v13448_v45 = vrot.slane %v3724_v20, %v11350_v34  ;;  %v13451_v18 = vrot.slane %v3725_v63, %v11350_v34  ;;  %v3926_v60 = vcombine.low %v13262_v6, %v3716_v30  ;;  %v9748_v48 = vcombine.high %v13262_v6, %v3716_v30 }
 0x4d3   : > { %v13456_v0 = vrot.slane %v4076_v23, %v11333_v17  ;;  %v13459_v9 = vrot.slane %v4101_v16, %v11333_v17  ;;  %v4126_v44 = vcombine.low %v13283_v21, %v3723_v29  ;;  %v9754_v36 = vcombine.high %v13272_v14, %v3673_v59 }
 0x4d4   : > { %v3933_v3 = vrot.slane %v3926_v60, %v11333_v17  ;;  %v3951_v57 = vcombine.low %v13286_v4, %v13448_v45  ;;  %v13467_v2 = vrot.slane %v9748_v48, %v11333_v17  ;;  %v13470_v6 = vrot.slane %v9752_v32, %v11333_v17 }
 0x4d5   : > { %v13475_v40 = vrot.slane %v4126_v44, %v11333_v17  ;;  %v9756_v59 = vcombine.high %v13283_v21, %v3723_v29  ;;  %v9758_v30 = vcombine.high %v13294_v53, %v13451_v18  ;;  %v6094_v20 = vsel %vm4372_vm2, %v13388_v19, 0.0 }
 0x4d6   : > { %v3892_v63 = vcombine.low %v3883_v28, %v13345_v52  ;;  %v3917_v16 = vcombine.low %v3908_v49, %v13360_v54  ;;  %v13487_v32 = vrot.slane %v9754_v36, %v11333_v17  ;;  %6095 = vadd.xlane.f32.xlu1 %v6094_v20  ;;  %v3942_v60 = vcombine.low %v3933_v3, %v13370_v25 }
 0x4d7   : > { %v3958_v48 = vrot.slane %v3951_v57, %v11333_v17  ;;  %v15046_v21 = vcombine.low %v13240_v37, %v13350_v38  ;;  %v13496_v44 = vrot.slane %v9756_v59, %v11333_v17  ;;  %v3992_v49 = vcombine.low %v3983_v58, %v13363_v31 }
 0x4d8   : > { %v3899_v52 = vrot.slane %v3892_v63, %v11350_v34  ;;  %v3924_v54 = vrot.slane %v3917_v16, %v11350_v34  ;;  %v3949_v28 = vrot.slane %v3942_v60, %v11350_v34  ;;  %v4017_v25 = vcombine.low %v4008_v11, %v13375_v51 }
 0x4d9   : > { %v3966_v29 = vrot.slane %v15046_v21, %v11333_v17  ;;  %v4042_v3 = vcombine.low %v13467_v2, %v13378_v47  ;;  %v3999_v47 = vrot.slane %v3992_v49, %v11350_v34 }
 0x4da   : > { %v4278_v57 = vpack.i.b16 %v3924_v54, %v3899_v52  ;;  %v4279_v20 = vshrl.u32 %v3899_v52, 16  ;;  %v4280_v21 = vshrl.u32 %v3924_v54, 16  ;;  %v13506_v59 = vcombine.high %v3899_v52, %v14918_v50 }
 0x4db   : > { %v3967_v36 = vcombine.low %v3958_v48, %v3966_v29  ;;  %v13509_v63 = vcombine.high %v3924_v54, %v14918_v50  ;;  %v4291_v31 = vshrl.u32 %v3949_v28, 16  ;;  %v3950_v58 = vcombine.high %v3949_v28, %v14918_v50 }
 0x4dc   : > { %v6234_v60 = vsel %vm6232_vm3, %v4278_v57, 0  ;;  %v4281_v51 = vpack.i.b16 %v4280_v21, %v4279_v20  ;;  %v4285_v11 = vshrl.u32 %v13506_v59, 16  ;;  %v13520_v54 = vrot.slane %v9758_v30, %v11333_v17 }
 0x4dd   : > { %v3974_v16 = vrot.slane %v3967_v36, %v11350_v34  ;;  %10270 = vmatpush3.bf16.msra.mxu0 %v6234_v60  ;;  %v4286_v48 = vshrl.u32 %v13509_v63, 16  ;;  %v4024_v20 = vrot.slane %v4017_v25, %v11350_v34  ;;  %v4297_v2 = vshrl.u32 %v3950_v58, 16 }
 0x4de   : > { %v6280_v36 = vsel %vm6232_vm3, %v4281_v51, 0  ;;  %10281 = vmatprep.subr.bf16.mxu0 %v14921_v26  ;;  %v4303_v23 = vshrl.u32 %v3999_v47, 16 }
 0x4df   : > { %v4290_v29 = vpack.i.b16 %v3974_v16, %v3949_v28  ;;  %v4292_v52 = vshrl.u32 %v3974_v16, 16  ;;  %v3975_v57 = vcombine.high %v3974_v16, %v14918_v50  ;;  %10276 = vmatpush3.bf16.msra.mxu1 %v6280_v36  ;;  %v4287_v49 = vpack.i.b16 %v4286_v48, %v4285_v11 }
 0x4e0   : > { %10287 = vmatprep.subr.bf16.mxu1 %v14921_v26  ;;  %v4302_v14 = vpack.i.b16 %v4024_v20, %v3999_v47  ;;  %v4304_v25 = vshrl.u32 %v4024_v20, 16  ;;  %v4000_v11 = vcombine.high %v3999_v47, %v14918_v50 }
 0x4e1   : > { %v13527_v21 = vsel %vm6232_vm3, %v4290_v29, 0  ;;  %v4293_v60 = vpack.i.b16 %v4292_v52, %v4291_v31  ;;  %v4296_v28 = vpack.i.b16 %v3975_v57, %v3950_v58  ;;  %v4298_v30 = vshrl.u32 %v3975_v57, 16 }
 0x4e2   : > { %v13531_v51 = vsel %vm6232_vm3, %v4287_v49, 0  ;;  %v13541_v29 = vsel %vm6232_vm3, %v4302_v14, 0  ;;  %v4025_v58 = vcombine.high %v4024_v20, %v14918_v50  ;;  %v4305_v52 = vpack.i.b16 %v4304_v25, %v4303_v23 }
 0x4e3   : > { %v13534_v16 = vsel %vm6232_vm3, %v4293_v60, 0  ;;  %v13538_v48 = vsel %vm6232_vm3, %v4296_v28, 0  ;;  %v4299_v31 = vpack.i.b16 %v4298_v30, %v4297_v2  ;;  %v4309_v36 = vshrl.u32 %v4000_v11, 16 }
 0x4e4   : > { %v4049_v57 = vrot.slane %v4042_v3, %v11350_v34  ;;  %v15047_v49 = vcombine.high %v13286_v4, %v13448_v45  ;;  %v4308_v28 = vpack.i.b16 %v4025_v58, %v4000_v11  ;;  %v4310_v19 = vshrl.u32 %v4025_v58, 16 }
 0x4e5   : > { %v13550_v47 = vsel %vm6232_vm3, %v4299_v31, 0  ;;  %v15048_v14 = vcombine.high %v13240_v37, %v13350_v38  ;;  %v13557_v23 = vsel %vm6232_vm3, %v4305_v52, 0  ;;  %v4092_v4 = vcombine.low %v13456_v0, %v13383_v7 }
 0x4e6   : > { %v4058_v60 = vrot.slane %v15047_v49, %v11333_v17  ;;  %v4315_v20 = vshrl.u32 %v4049_v57, 16  ;;  %v4050_v3 = vcombine.high %v4049_v57, %v14918_v50  ;;  %v13563_v45 = vsel %vm6232_vm3, %v4308_v28, 0 }
 0x4e7   : > { %v4066_v2 = vrot.slane %v15048_v14, %v11333_v17  ;;  %v4311_v30 = vpack.i.b16 %v4310_v19, %v4309_v36  ;;  %v4117_v11 = vcombine.low %v13459_v9, %v13396_v41  ;;  %v4099_v37 = vrot.slane %v4092_v4, %v11350_v34 }
 0x4e8   : > { %v4321_v31 = vshrl.u32 %v4050_v3, 16  ;;  %v4142_v38 = vcombine.low %v13475_v40, %v13402_v62  ;;  %v15049_v58 = vcombine.low %v13294_v53, %v13451_v18  ;;  %v15051_v41 = vcombine.low %v13246_v35, %v13353_v43  ;;  %v15052_v18 = vld [vmem:[#allocation35_spill] sm:$0xff] }
 0x4e9   : > { %v4067_v25 = vcombine.low %v4058_v60, %v4066_v2  ;;  %v13575_v7 = vsel %vm6232_vm3, %v4311_v30, 0  ;;  %v4124_v0 = vrot.slane %v4117_v11, %v11350_v34  ;;  %v4327_v49 = vshrl.u32 %v4099_v37, 16 }
 0x4ea   : > { %v4158_v52 = vrot.slane %v15049_v58, %v11333_v17  ;;  %15050 = vst [vmem:[#allocation40_spill] sm:$0xff] %v13575_v7  ;;  %v4166_v9 = vrot.slane %v15051_v41, %v11333_v17  ;;  %v5907_v36 = vpop.xlane.xlu0 %5906  ;;  %v4100_v62 = vcombine.high %v4099_v37, %v14918_v50  ;;  %v4149_v40 = vrot.slane %v4142_v38, %v11350_v34  ;;  %v15053_v58 = vld [vmem:[#allocation28_spill] sm:$0xff] }
 0x4eb   : > { %v4074_v19 = vrot.slane %v4067_v25, %v11350_v34  ;;  %v4192_v53 = vcombine.low %v13470_v6, %v13405_v12  ;;  %v5961_v60 = vsub.f32 %v15052_v18, %v5907_v36  ;;  %v4326_v30 = vpack.i.b16 %v4124_v0, %v4099_v37  ;;  %v15054_v18 = vld [vmem:[#allocation27_spill] sm:$0xff] }
 0x4ec   : > { %v5910_v4 = vpop.xlane.xlu1 %5909  ;;  %v4328_v25 = vshrl.u32 %v4124_v0, 16  ;;  %v4125_v35 = vcombine.high %v4124_v0, %v14918_v50  ;;  %v4333_v43 = vshrl.u32 %v4100_v62, 16 }
 0x4ed   : > { %v4314_v28 = vpack.i.b16 %v4074_v19, %v4049_v57  ;;  %v4316_v14 = vshrl.u32 %v4074_v19, 16  ;;  %v4075_v2 = vcombine.high %v4074_v19, %v14918_v50  ;;  %v6013_v11 = vmul.f32 1.442695, %v5961_v60 }
 0x4ee   : > { %v5962_v41 = vsub.f32 %v15053_v58, %v5910_v4  ;;  %v5913_v12 = vpop.xlane.xlu0 %5912  ;;  %v13595_v57 = vsel %vm6232_vm3, %v4326_v30, 0  ;;  %v4329_v19 = vpack.i.b16 %v4328_v25, %v4327_v49  ;;  %v4334_v30 = vshrl.u32 %v4125_v35, 16 }
 0x4ef   : > { %v13592_v38 = vsel %vm6232_vm3, %v4314_v28, 0  ;;  %v4317_v17 = vpack.i.b16 %v4316_v14, %v4315_v20  ;;  %v4320_v6 = vpack.i.b16 %v4075_v2, %v4050_v3  ;;  %v4322_v36 = vshrl.u32 %v4075_v2, 16  ;;  %v15055_v2 = vld [vmem:[#allocation37_spill] sm:$0xff] }
 0x4f0   : > { %10635 = vpow2.f32 %v6013_v11  ;;  %v6015_v37 = vmul.f32 1.442695, %v5962_v41  ;;  %v5963_v7 = vsub.f32 %v15054_v18, %v5913_v12  ;;  %v5916_v60 = vpop.xlane.xlu1 %5915  ;;  %v13605_v20 = vsel %vm6232_vm3, %v4329_v19, 0 }
 0x4f1   : > { %v13599_v0 = vsel %vm6232_vm3, %v4317_v17, 0  ;;  %v13602_v4 = vsel %vm6232_vm3, %v4320_v6, 0  ;;  %v4323_v28 = vpack.i.b16 %v4322_v36, %v4321_v31  ;;  %v4332_v3 = vpack.i.b16 %v4125_v35, %v4100_v62 }
 0x4f2   : > { %10637 = vpow2.f32 %v6015_v37  ;;  %v6017_v14 = vmul.f32 1.442695, %v5963_v7  ;;  %v5964_v49 = vsub.f32 %v15055_v2, %v5916_v60  ;;  %v4167_v11 = vcombine.low %v4158_v52, %v4166_v9 }
 0x4f3   : > { %v13609_v25 = vsel %vm6232_vm3, %v4323_v28, 0  ;;  %v13612_v17 = vsel %vm6232_vm3, %v4332_v3, 0  ;;  %v4339_v58 = vshrl.u32 %v4149_v40, 16  ;;  %v4335_v31 = vpack.i.b16 %v4334_v30, %v4333_v43 }
 0x4f4   : > { %10639 = vpow2.f32 %v6017_v14  ;;  %v6019_v41 = vmul.f32 1.442695, %v5964_v49  ;;  %v4150_v12 = vcombine.high %v4149_v40, %v14918_v50  ;;  %v4174_v62 = vrot.slane %v4167_v11, %v11350_v34 }
 0x4f5   : > { %v4199_v7 = vrot.slane %v4192_v53, %v11350_v34  ;;  %v4217_v35 = vcombine.low %v13487_v32, %v13408_v42  ;;  %v4242_v6 = vcombine.low %v13496_v44, %v13411_v33  ;;  %v13622_v36 = vsel %vm6232_vm3, %v4335_v31, 0 }
 0x4f6   : > { %10641 = vpow2.f32 %v6019_v41  ;;  %v4345_v52 = vshrl.u32 %v4150_v12, 16  ;;  %v4267_v9 = vcombine.low %v13520_v54, %v13434_v55  ;;  %v4338_v43 = vpack.i.b16 %v4174_v62, %v4149_v40 }
 0x4f7   : > { %v4340_v19 = vshrl.u32 %v4174_v62, 16  ;;  %v4175_v37 = vcombine.high %v4174_v62, %v14918_v50  ;;  %v4224_v53 = vrot.slane %v4217_v35, %v11350_v34  ;;  %v4351_v18 = vshrl.u32 %v4199_v7, 16 }
 0x4f8   : > { %v4200_v42 = vcombine.high %v4199_v7, %v14918_v50  ;;  %v4249_v32 = vrot.slane %v4242_v6, %v11350_v34  ;;  %v4274_v33 = vrot.slane %v4267_v9, %v11350_v34  ;;  %v13632_v44 = vsel %vm6232_vm3, %v4338_v43, 0 }
 0x4f9   : > { %v4341_v60 = vpack.i.b16 %v4340_v19, %v4339_v58  ;;  %v4344_v28 = vpack.i.b16 %v4175_v37, %v4150_v12  ;;  %v4346_v3 = vshrl.u32 %v4175_v37, 16  ;;  %v4350_v54 = vpack.i.b16 %v4224_v53, %v4199_v7 }
 0x4fa   : > { %v13634_v55 = vpop.eup %10635  ;;  %v4352_v40 = vshrl.u32 %v4224_v53, 16  ;;  %v4225_v14 = vcombine.high %v4224_v53, %v14918_v50  ;;  %v4357_v2 = vshrl.u32 %v4200_v42, 16  ;;  %v4363_v9 = vshrl.u32 %v4249_v32, 16 }
 0x4fb   : > { %v6097_v49 = vsel %vm4372_vm2, %v13634_v55, 0.0  ;;  %v13640_v30 = vsel %vm6232_vm3, %v4341_v60, 0  ;;  %v13643_v11 = vsel %vm6232_vm3, %v4344_v28, 0  ;;  %v4347_v41 = vpack.i.b16 %v4346_v3, %v4345_v52 }
 0x4fc   : > { %v13645_v58 = vpop.eup %10637  ;;  %6098 = vadd.xlane.f32.xlu0 %v6097_v49  ;;  %v13648_v31 = vsel %vm6232_vm3, %v4350_v54, 0  ;;  %v4353_v12 = vpack.i.b16 %v4352_v40, %v4351_v18  ;;  %v4358_v62 = vshrl.u32 %v4225_v14, 16  ;;  %v4356_v7 = vpack.i.b16 %v4225_v14, %v4200_v42 }
 0x4fd   : > { %v6100_v35 = vsel %vm4372_vm2, %v13645_v58, 0.0  ;;  %v13653_v6 = vsel %vm6232_vm3, %v4347_v41, 0  ;;  %v4364_v43 = vshrl.u32 %v4274_v33, 16  ;;  %v4362_v18 = vpack.i.b16 %v4274_v33, %v4249_v32 }
 0x4fe   : > { %v13655_v19 = vpop.eup %10639  ;;  %6101 = vadd.xlane.f32.xlu1 %v6100_v35  ;;  %v13658_v52 = vsel %vm6232_vm3, %v4353_v12, 0  ;;  %v4359_v37 = vpack.i.b16 %v4358_v62, %v4357_v2  ;;  %v13661_v53 = vsel %vm6232_vm3, %v4356_v7, 0  ;;  %v4250_v28 = vcombine.high %v4249_v32, %v14918_v50 }
 0x4ff   : > { %v6103_v42 = vsel %vm4372_vm2, %v13655_v19, 0.0  ;;  %v4365_v60 = vpack.i.b16 %v4364_v43, %v4363_v9  ;;  %v4275_v3 = vcombine.high %v4274_v33, %v14918_v50  ;;  %v13673_v14 = vsel %vm6232_vm3, %v4362_v18, 0 }
 0x500   : > { %v13667_v54 = vpop.eup %10641  ;;  %6104 = vadd.xlane.f32.xlu0 %v6103_v42  ;;  %v13670_v40 = vsel %vm6232_vm3, %v4359_v37, 0  ;;  %v4369_v32 = vshrl.u32 %v4250_v28, 16 }
 0x501   : > { %v6106_v2 = vsel %vm4372_vm2, %v13667_v54, 0.0  ;;  %v13678_v49 = vsel %vm6232_vm3, %v4365_v60, 0  ;;  %v4368_v41 = vpack.i.b16 %v4275_v3, %v4250_v28  ;;  %v4370_v12 = vshrl.u32 %v4275_v3, 16 }
 0x502   : > { %6107 = vadd.xlane.f32.xlu1 %v6106_v2 }
 0x503   : > { %v13681_v33 = vsel %vm6232_vm3, %v4368_v41, 0  ;;  %v4371_v62 = vpack.i.b16 %v4370_v12, %v4369_v32 }
 0x505   : > { %v13684_v7 = vsel %vm6232_vm3, %v4371_v62, 0 }
 0x50a   : > { %v6039_v35 = vpop.xlane.xlu0 %6038 }
 0x50b   : > { %10643 = vrcp.f32 %v6039_v35 }
 0x50c   : > { %v6042_v9 = vpop.xlane.xlu1 %6041 }
 0x50d   : > { %10645 = vrcp.f32 %v6042_v9 }
 0x50e   : > { %v5922_v43 = vpop.xlane.xlu0 %5921 }
 0x50f   : > { %v5966_v37 = vsub.f32 %v13071_v46, %v5922_v43 }
 0x510   : > { %v5919_v18 = vpop.xlane.xlu1 %5918 }
 0x511   : > { %v6023_v42 = vmul.f32 1.442695, %v5966_v37  ;;  %v5965_v60 = vsub.f32 %v13069_v13, %v5919_v18  ;;  %v15056_v18 = vpack.i.b16 %v13509_v63, %v13506_v59 }
 0x512   : > { %v6045_v28 = vpop.xlane.xlu0 %6044 }
 0x513   : > { %10647 = vpow2.f32 %v6023_v42  ;;  %v6021_v3 = vmul.f32 1.442695, %v5965_v60  ;;  %v6326_v42 = vsel %vm6232_vm3, %v15056_v18, 0 }
 0x514   : > { %10649 = vrcp.f32 %v6045_v28  ;;  %v6048_v2 = vpop.xlane.xlu1 %6047 }
 0x515   : > { %v10644_v41 = vpop.eup %10643  ;;  %10651 = vpow2.f32 %v6021_v3 }
 0x516   : > { %v6165_v32 = vmul.f32 %v10644_v41, %v13105_v39  ;;  %10653 = vrcp.f32 %v6048_v2  ;;  %v5925_v12 = vpop.xlane.xlu0 %5924 }
 0x517   : > { %v10646_v62 = vpop.eup %10645  ;;  %v5967_v35 = vsub.f32 %v13073_v22, %v5925_v12 }
 0x518   : > { %v6166_v46 = vmul.f32 %v10646_v62, %v13109_v10  ;;  %v5928_v9 = vpop.xlane.xlu1 %5927  ;;  %v6197_v43 = vpack.c.bf16 %v6165_v32, %v6165_v32 }
 0x519   : > { %v6025_v37 = vmul.f32 1.442695, %v5967_v35  ;;  %v5968_v13 = vsub.f32 %v13075_v27, %v5928_v9 }
 0x51a   : > { %10272 = vmatmul.mubr.msk.bf16.vlgmr.msra.gmra.mrb[72].mxu0 %vm4372_vm2, %v6197_v43  ;;  %v6051_v39 = vpop.xlane.xlu0 %6050  ;;  %v6198_v60 = vpack.c.bf16 %v6166_v46, %v6166_v46 }
 0x51b   : > { %10655 = vpow2.f32 %v6025_v37  ;;  %v6027_v28 = vmul.f32 1.442695, %v5968_v13  ;;  %10282 = vmatpush3.bf16.msra.mxu0 %v6326_v42  ;;  %10283 = vmatprep.mubr.msk.bf16.mxu0 %vm10905_vm1, %v14921_v26 }
 0x51c   : > { %10657 = vrcp.f32 %v6051_v39  ;;  %10278 = vmatmul.mubr.msk.bf16.vlgmr.msra.gmra.mrb[88].mxu1 %vm4372_vm2, %v6198_v60  ;;  %v6054_v22 = vpop.xlane.xlu1 %6053  ;;  %10293 = vmatprep.subr.bf16.mxu0 %v14921_v26 }
 0x51d   : > { %v13701_v27 = vpop.eup %10647  ;;  %10659 = vpow2.f32 %v6027_v28  ;;  %10288 = vmatpush3.bf16.msra.mxu1 %v13531_v51  ;;  %10289 = vmatprep.mubr.msk.bf16.mxu1 %vm10905_vm1, %v14921_v26 }
 0x51e   : > { %v10650_v10 = vpop.eup %10649  ;;  %10661 = vrcp.f32 %v6054_v22  ;;  %v5931_v59 = vpop.xlane.xlu0 %5930  ;;  %v6112_v63 = vsel %vm4372_vm2, %v13701_v27, 0.0  ;;  %10299 = vmatprep.subr.bf16.mxu1 %v14921_v26 }
 0x51f   : > { %v13709_v3 = vpop.eup %10651  ;;  %v6167_v2 = vmul.f32 %v10650_v10, %v13119_v56  ;;  %v5969_v41 = vsub.f32 %v13077_v61, %v5931_v59  ;;  %6113 = vadd.xlane.f32.xlu1 %v6112_v63  ;;  %v15057_v59 = vld [vmem:[#allocation36_spill] sm:$0xff] }
 0x520   : > { %v10654_v32 = vpop.eup %10653  ;;  %v5934_v51 = vpop.xlane.xlu1 %5933  ;;  %v6109_v12 = vsel %vm4372_vm2, %v13709_v3, 0.0 }
 0x521   : > { %v6168_v62 = vmul.f32 %v10654_v32, %v13123_v15  ;;  %v6029_v35 = vmul.f32 1.442695, %v5969_v41  ;;  %v5970_v46 = vsub.f32 %v13079_v24, %v5934_v51  ;;  %6110 = vadd.xlane.f32.xlu0 %v6109_v12  ;;  %v6199_v9 = vpack.c.bf16 %v6167_v2, %v6167_v2 }
 0x522   : > { %v6057_v43 = vpop.xlane.xlu0 %6056 }
 0x523   : > { %10663 = vpow2.f32 %v6029_v35  ;;  %v6031_v37 = vmul.f32 1.442695, %v5970_v46  ;;  %10284 = vmatmul.mubr.msk.bf16.vlgmr.msra.gmra.mrb[76].mxu0 %vm4372_vm2, %v6199_v9  ;;  %v6200_v56 = vpack.c.bf16 %v6168_v62, %v6168_v62  ;;  %v15058_v62 = vld [vmem:[#allocation29_spill] sm:$0xff] }
 0x524   : > { %10294 = vmatpush3.bf16.msra.mxu0 %v13527_v21  ;;  %10665 = vrcp.f32 %v6057_v43  ;;  %v6060_v61 = vpop.xlane.xlu1 %6059  ;;  %10295 = vmatprep.mubr.msk.bf16.mxu0 %vm10905_vm1, %v14921_v26  ;;  %v15059_v43 = vld [vmem:[#allocation30_spill] sm:$0xff] }
 0x525   : > { %v13721_v13 = vpop.eup %10655  ;;  %10667 = vpow2.f32 %v6031_v37  ;;  %10290 = vmatmul.mubr.msk.bf16.vlgmr.msra.gmra.mrb[92].mxu1 %vm4372_vm2, %v6200_v56  ;;  %10305 = vmatprep.subr.bf16.mxu0 %v14921_v26 }
 0x526   : > { %v10658_v24 = vpop.eup %10657  ;;  %10300 = vmatpush3.bf16.msra.mxu1 %v13534_v16  ;;  %10669 = vrcp.f32 %v6060_v61  ;;  %v5937_v15 = vpop.xlane.xlu0 %5936  ;;  %v6115_v21 = vsel %vm4372_vm2, %v13721_v13, 0.0  ;;  %10301 = vmatprep.mubr.msk.bf16.mxu1 %vm10905_vm1, %v14921_v26 }
 0x527   : > { %v13730_v18 = vpop.eup %10659  ;;  %v6169_v42 = vmul.f32 %v10658_v24, %v13133_v8  ;;  %v5971_v39 = vsub.f32 %v13081_v5, %v5937_v15  ;;  %6116 = vadd.xlane.f32.xlu0 %v6115_v21  ;;  %10311 = vmatprep.subr.bf16.mxu1 %v14921_v26 }
 0x528   : > { %v10662_v60 = vpop.eup %10661  ;;  %v5940_v28 = vpop.xlane.xlu1 %5939  ;;  %v6118_v16 = vsel %vm4372_vm2, %v13730_v18, 0.0 }
 0x529   : > { %v6170_v22 = vmul.f32 %v10662_v60, %v13137_v1  ;;  %v6033_v10 = vmul.f32 1.442695, %v5971_v39  ;;  %v5972_v63 = vsub.f32 %v15057_v59, %v5940_v28  ;;  %6119 = vadd.xlane.f32.xlu1 %v6118_v16  ;;  %v6201_v2 = vpack.c.bf16 %v6169_v42, %v6169_v42  ;;  %v15060_v39 = vld [vmem:[#allocation39_spill] sm:$0xff] }
 0x52b   : > { %v6063_v41 = vpop.xlane.xlu0 %6062  ;;  %10671 = vpow2.f32 %v6033_v10  ;;  %v6035_v8 = vmul.f32 1.442695, %v5972_v63  ;;  %10296 = vmatmul.mubr.msk.bf16.vlgmr.msra.gmra.mrb[80].mxu0 %vm4372_vm2, %v6201_v2  ;;  %v6202_v5 = vpack.c.bf16 %v6170_v22, %v6170_v22  ;;  %v15061_v22 = vld [vmem:[#allocation33_spill] sm:$0xff] }
 0x52c   : > { %10306 = vmatpush3.bf16.msra.mxu0 %v13538_v48  ;;  %10673 = vrcp.f32 %v6063_v41  ;;  %10307 = vmatprep.mubr.msk.bf16.mxu0 %vm10905_vm1, %v14921_v26 }
 0x52d   : > { %v6066_v32 = vpop.xlane.xlu1 %6065  ;;  %v13743_v51 = vpop.eup %10663  ;;  %10675 = vpow2.f32 %v6035_v8  ;;  %10302 = vmatmul.mubr.msk.bf16.vlgmr.msra.gmra.mrb[96].mxu1 %vm4372_vm2, %v6202_v5  ;;  %10317 = vmatprep.subr.bf16.mxu0 %v14921_v26  ;;  %v15062_v8 = vld [vmem:[#allocation31_spill] sm:$0xff] }
 0x52e   : > { %v10666_v1 = vpop.eup %10665  ;;  %10312 = vmatpush3.bf16.msra.mxu1 %v13550_v47  ;;  %10677 = vrcp.f32 %v6066_v32  ;;  %v6121_v12 = vsel %vm4372_vm2, %v13743_v51, 0.0  ;;  %10313 = vmatprep.mubr.msk.bf16.mxu1 %vm10905_vm1, %v14921_v26  ;;  %v15063_v32 = vld [vmem:[#allocation40_spill] sm:$0xff] }
 0x52f   : > { %v13752_v48 = vpop.eup %10667  ;;  %v6171_v35 = vmul.f32 %v10666_v1, %v15058_v62  ;;  %6122 = vadd.xlane.f32.xlu0 %v6121_v12  ;;  %10323 = vmatprep.subr.bf16.mxu1 %v14921_v26 }
 0x530   : > { %v10670_v46 = vpop.eup %10669  ;;  %v6124_v9 = vsel %vm4372_vm2, %v13752_v48, 0.0 }
 0x531   : > { %v6172_v47 = vmul.f32 %v10670_v46, %v15059_v43  ;;  %6125 = vadd.xlane.f32.xlu1 %v6124_v9  ;;  %v6203_v37 = vpack.c.bf16 %v6171_v35, %v6171_v35 }
 0x533   : > { %v6069_v56 = vpop.xlane.xlu0 %6068  ;;  %10308 = vmatmul.mubr.msk.bf16.vlgmr.msra.gmra.mrb[84].mxu0 %vm4372_vm2, %v6203_v37  ;;  %v6204_v61 = vpack.c.bf16 %v6172_v47, %v6172_v47  ;;  %v15065_v47 = vld [vmem:[#allocation44_spill] sm:$0xff] }
 0x534   : > { %10679 = vrcp.f32 %v6069_v56  ;;  %10318 = vmatpush3.bf16.msra.mxu0 %v13541_v29  ;;  %10319 = vmatprep.mubr.msk.bf16.mxu0 %vm10905_vm1, %v14921_v26 }
 0x535   : > { %v6072_v24 = vpop.xlane.xlu1 %6071  ;;  %v13763_v15 = vpop.eup %10671  ;;  %10314 = vmatmul.mubr.msk.bf16.vlgmr.msra.gmra.mrb[100].mxu1 %vm4372_vm2, %v6204_v61  ;;  %10329 = vmatprep.subr.bf16.mxu0 %v14921_v26 }
 0x536   : > { %10681 = vrcp.f32 %v6072_v24  ;;  %v10674_v21 = vpop.eup %10673  ;;  %10324 = vmatpush3.bf16.msra.mxu1 %v13557_v23  ;;  %v6127_v42 = vsel %vm4372_vm2, %v13763_v15, 0.0  ;;  %10325 = vmatprep.mubr.msk.bf16.mxu1 %vm10905_vm1, %v14921_v26 }
 0x537   : > { %v13772_v29 = vpop.eup %10675  ;;  %v6173_v60 = vmul.f32 %v10674_v21, %v15060_v39  ;;  %6128 = vadd.xlane.f32.xlu0 %v6127_v42  ;;  %10335 = vmatprep.subr.bf16.mxu1 %v14921_v26  ;;  %v15067_v39 = vld [vmem:[#allocation49_spill] sm:$0xff] }
 0x538   : > { %v10678_v28 = vpop.eup %10677  ;;  %v6130_v16 = vsel %vm4372_vm2, %v13772_v29, 0.0 }
 0x539   : > { %v6174_v10 = vmul.f32 %v10678_v28, %v15061_v22  ;;  %6131 = vadd.xlane.f32.xlu1 %v6130_v16  ;;  %v6205_v23 = vpack.c.bf16 %v6173_v60, %v6173_v60  ;;  %v15068_v16 = vld [vmem:[#allocation25_spill] sm:$0xff] }
 0x53b   : > { %v6075_v59 = vpop.xlane.xlu0 %6074  ;;  %10320 = vmatmul.mubr.msk.bf16.vlgmr.msra.gmra.mrb[88].mxu0 %vm4372_vm2, %v6205_v23  ;;  %v6206_v63 = vpack.c.bf16 %v6174_v10, %v6174_v10 }
 0x53c   : > { %10683 = vrcp.f32 %v6075_v59  ;;  %10330 = vmatpush3.bf16.msra.mxu0 %v13563_v45  ;;  %10331 = vmatprep.mubr.msk.bf16.mxu0 %vm10905_vm1, %v14921_v26  ;;  %v15064_v45 = vld [vmem:[#allocation48_spill] sm:$0xff] }
 0x53d   : > { %v6078_v2 = vpop.xlane.xlu1 %6077  ;;  %10326 = vmatmul.mubr.msk.bf16.vlgmr.msra.gmra.mrb[104].mxu1 %vm4372_vm2, %v6206_v63  ;;  %10341 = vmatprep.subr.bf16.mxu0 %v14921_v26 }
 0x53e   : > { %v10680_v41 = vpop.eup %10679  ;;  %10685 = vrcp.f32 %v6078_v2  ;;  %10336 = vmatpush3.bf16.msra.mxu1 %v15063_v32  ;;  %10337 = vmatprep.mubr.msk.bf16.mxu1 %vm10905_vm1, %v14921_v26 }
 0x53f   : > { %v6175_v5 = vmul.f32 %v10680_v41, %v15062_v8  ;;  %10347 = vmatprep.subr.bf16.mxu1 %v14921_v26 }
 0x540   : > { %v10682_v1 = vpop.eup %10681 }
 0x541   : > { %v6176_v12 = vmul.f32 %v10682_v1, %v15064_v45  ;;  %v6207_v62 = vpack.c.bf16 %v6175_v5, %v6175_v5  ;;  %v15070_v5 = vld [vmem:[#allocation26_spill] sm:$0xff]  ;;  %v15071_v1 = vld [vmem:[#allocation21_spill] sm:$0xff] }
 0x543   : > { %v6081_v35 = vpop.xlane.xlu0 %6080  ;;  %v6208_v46 = vpack.c.bf16 %v6176_v12, %v6176_v12  ;;  %10332 = vmatmul.mubr.msk.bf16.vlgmr.msra.gmra.mrb[92].mxu0 %vm4372_vm2, %v6207_v62 }
 0x544   : > { %10687 = vrcp.f32 %v6081_v35  ;;  %10342 = vmatpush3.bf16.msra.mxu0 %v13592_v38  ;;  %10343 = vmatprep.mubr.msk.bf16.mxu0 %vm10905_vm1, %v14921_v26  ;;  %v15066_v38 = vld [vmem:[#allocation50_spill] sm:$0xff] }
 0x545   : > { %v6084_v9 = vpop.xlane.xlu1 %6083  ;;  %10338 = vmatmul.mubr.msk.bf16.vlgmr.msra.gmra.mrb[108].mxu1 %vm4372_vm2, %v6208_v46  ;;  %10353 = vmatprep.subr.bf16.mxu0 %v14921_v26  ;;  %v15072_v35 = vld [vmem:[#allocation46_spill] sm:$0xff] }
 0x546   : > { %v10684_v43 = vpop.eup %10683  ;;  %10689 = vrcp.f32 %v6084_v9  ;;  %10348 = vmatpush3.bf16.msra.mxu1 %v13599_v0  ;;  %10349 = vmatprep.mubr.msk.bf16.mxu1 %vm10905_vm1, %v14921_v26 }
 0x547   : > { %v6177_v37 = vmul.f32 %v10684_v43, %v15065_v47  ;;  %10359 = vmatprep.subr.bf16.mxu1 %v14921_v26 }
 0x548   : > { %v10686_v56 = vpop.eup %10685 }
 0x549   : > { %v6178_v61 = vmul.f32 %v10686_v56, %v15066_v38  ;;  %v6209_v24 = vpack.c.bf16 %v6177_v37, %v6177_v37 }
 0x54b   : > { %v6087_v21 = vpop.xlane.xlu0 %6086  ;;  %v6210_v42 = vpack.c.bf16 %v6178_v61, %v6178_v61  ;;  %10344 = vmatmul.mubr.msk.bf16.vlgmr.msra.gmra.mrb[96].mxu0 %vm4372_vm2, %v6209_v24 }
 0x54c   : > { %10691 = vrcp.f32 %v6087_v21  ;;  %10354 = vmatpush3.bf16.msra.mxu0 %v13602_v4  ;;  %10355 = vmatprep.mubr.msk.bf16.mxu0 %vm10905_vm1, %v14921_v26 }
 0x54d   : > { %10350 = vmatmul.mubr.msk.bf16.vlgmr.msra.gmra.mrb[112].mxu1 %vm4372_vm2, %v6210_v42  ;;  %10365 = vmatprep.subr.bf16.mxu0 %v14921_v26 }
 0x54e   : > { %v10688_v0 = vpop.eup %10687  ;;  %10360 = vmatpush3.bf16.msra.mxu1 %v13609_v25  ;;  %10361 = vmatprep.mubr.msk.bf16.mxu1 %vm10905_vm1, %v14921_v26  ;;  %v15069_v25 = vld [vmem:[#allocation18_spill] sm:$0xff] }
 0x54f   : > { %v6179_v60 = vmul.f32 %v10688_v0, %v15067_v39  ;;  %10371 = vmatprep.subr.bf16.mxu1 %v14921_v26 }
 0x550   : > { %v10690_v28 = vpop.eup %10689 }
 0x551   : > { %v6180_v4 = vmul.f32 %v10690_v28, %v15068_v16  ;;  %v6211_v22 = vpack.c.bf16 %v6179_v60, %v6179_v60 }
 0x553   : > { %v6212_v10 = vpack.c.bf16 %v6180_v4, %v6180_v4  ;;  %10356 = vmatmul.mubr.msk.bf16.vlgmr.msra.gmra.mrb[100].mxu0 %vm4372_vm2, %v6211_v22 }
 0x554   : > { %10366 = vmatpush3.bf16.msra.mxu0 %v13595_v57  ;;  %10367 = vmatprep.mubr.msk.bf16.mxu0 %vm10905_vm1, %v14921_v26 }
 0x555   : > { %10362 = vmatmul.mubr.msk.bf16.vlgmr.msra.gmra.mrb[116].mxu1 %vm4372_vm2, %v6212_v10  ;;  %10377 = vmatprep.subr.bf16.mxu0 %v14921_v26 }
 0x556   : > { %v10692_v23 = vpop.eup %10691  ;;  %10372 = vmatpush3.bf16.msra.mxu1 %v13605_v20  ;;  %10373 = vmatprep.mubr.msk.bf16.mxu1 %vm10905_vm1, %v14921_v26 }
 0x557   : > { %v6181_v59 = vmul.f32 %v10692_v23, %v15069_v25  ;;  %10383 = vmatprep.subr.bf16.mxu1 %v14921_v26 }
 0x559   : > { %v6213_v63 = vpack.c.bf16 %v6181_v59, %v6181_v59 }
 0x55a   : > { %v6090_v2 = vpop.xlane.xlu1 %6089 }
 0x55b   : > { %10693 = vrcp.f32 %v6090_v2  ;;  %v6093_v57 = vpop.xlane.xlu0 %6092  ;;  %10368 = vmatmul.mubr.msk.bf16.vlgmr.msra.gmra.mrb[104].mxu0 %vm4372_vm2, %v6213_v63 }
 0x55c   : > { %10695 = vrcp.f32 %v6093_v57  ;;  %10378 = vmatpush3.bf16.msra.mxu0 %v13612_v17  ;;  %10379 = vmatprep.mubr.msk.bf16.mxu0 %vm10905_vm1, %v14921_v26 }
 0x55d   : > { %10389 = vmatprep.subr.bf16.mxu0 %v14921_v26 }
 0x563   : > { %v6096_v20 = vpop.xlane.xlu1 %6095 }
 0x564   : > { %10697 = vrcp.f32 %v6096_v20 }
 0x565   : > { %v10694_v41 = vpop.eup %10693 }
 0x566   : > { %v10696_v8 = vpop.eup %10695  ;;  %v6182_v32 = vmul.f32 %v10694_v41, %v15070_v5 }
 0x567   : > { %v6183_v45 = vmul.f32 %v10696_v8, %v15071_v1 }
 0x568   : > { %v6214_v12 = vpack.c.bf16 %v6182_v32, %v6182_v32 }
 0x569   : > { %v6215_v62 = vpack.c.bf16 %v6183_v45, %v6183_v45 }
 0x56a   : > { %10374 = vmatmul.mubr.msk.bf16.vlgmr.msra.gmra.mrb[120].mxu1 %vm4372_vm2, %v6214_v12 }
 0x56b   : > { %10384 = vmatpush3.bf16.msra.mxu1 %v13622_v36  ;;  %10380 = vmatmul.mubr.msk.bf16.vlgmr.msra.gmra.mrb[108].mxu0 %vm4372_vm2, %v6215_v62 }
 0x56c   : > { %10390 = vmatpush3.bf16.msra.mxu0 %v13632_v44  ;;  %10385 = vmatprep.mubr.msk.bf16.mxu1 %vm10905_vm1, %v14921_v26 }
 0x56d   : > { %10395 = vmatprep.subr.bf16.mxu1 %v14921_v26  ;;  %10391 = vmatprep.mubr.msk.bf16.mxu0 %vm10905_vm1, %v14921_v26 }
 0x56e   : > { %10401 = vmatprep.subr.bf16.mxu0 %v14921_v26  ;;  %v10698_v17 = vpop.eup %10697 }
 0x56f   : > { %v6184_v46 = vmul.f32 %v10698_v17, %v15072_v35 }
 0x571   : > { %v6216_v9 = vpack.c.bf16 %v6184_v46, %v6184_v46 }
 0x573   : > { %10386 = vmatmul.mubr.msk.bf16.vlgmr.msra.gmra.mrb[124].mxu1 %vm4372_vm2, %v6216_v9 }
 0x574   : > { %10396 = vmatpush3.bf16.msra.mxu1 %v13640_v30  ;;  %10397 = vmatprep.mubr.msk.bf16.mxu1 %vm10905_vm1, %v14921_v26 }
 0x575   : > { %10407 = vmatprep.subr.bf16.mxu1 %v14921_v26 }
 0x589   : > { %v6099_v36 = vpop.xlane.xlu0 %6098 }
 0x58a   : > { %10699 = vrcp.f32 %v6099_v36 }
 0x58b   : > { %v6102_v44 = vpop.xlane.xlu1 %6101 }
 0x58c   : > { %10701 = vrcp.f32 %v6102_v44  ;;  %v15073_v44 = vld [vmem:[#allocation20_spill] sm:$0xff] }
 0x58d   : > { %v6105_v43 = vpop.xlane.xlu0 %6104 }
 0x58e   : > { %10703 = vrcp.f32 %v6105_v43 }
 0x58f   : > { %v6108_v47 = vpop.xlane.xlu1 %6107 }
 0x590   : > { %10705 = vrcp.f32 %v6108_v47 }
 0x594   : > { %v10700_v37 = vpop.eup %10699 }
 0x595   : > { %v6185_v56 = vmul.f32 %v10700_v37, %v13634_v55 }
 0x596   : > { %v10702_v38 = vpop.eup %10701 }
 0x597   : > { %v6186_v61 = vmul.f32 %v10702_v38, %v13645_v58  ;;  %v6217_v30 = vpack.c.bf16 %v6185_v56, %v6185_v56 }
 0x598   : > { %v10704_v24 = vpop.eup %10703 }
 0x599   : > { %10392 = vmatmul.mubr.msk.bf16.vlgmr.msra.gmra.mrb[112].mxu0 %vm4372_vm2, %v6217_v30  ;;  %v6218_v21 = vpack.c.bf16 %v6186_v61, %v6186_v61  ;;  %v6187_v0 = vmul.f32 %v10704_v24, %v13655_v19 }
 0x59a   : > { %v10706_v42 = vpop.eup %10705  ;;  %10402 = vmatpush3.bf16.msra.mxu0 %v13643_v11  ;;  %10403 = vmatprep.mubr.msk.bf16.mxu0 %vm10905_vm1, %v14921_v26 }
 0x59b   : > { %10398 = vmatmul.mubr.msk.bf16.vlgmr.msra.gmra.mrb[128].mxu1 %vm4372_vm2, %v6218_v21  ;;  %10413 = vmatprep.subr.bf16.mxu0 %v14921_v26  ;;  %v6188_v55 = vmul.f32 %v10706_v42, %v13667_v54  ;;  %v6219_v58 = vpack.c.bf16 %v6187_v0, %v6187_v0 }
 0x59c   : > { %10408 = vmatpush3.bf16.msra.mxu1 %v13653_v6  ;;  %10409 = vmatprep.mubr.msk.bf16.mxu1 %vm10905_vm1, %v14921_v26 }
 0x59d   : > { %10419 = vmatprep.subr.bf16.mxu1 %v14921_v26  ;;  %v6220_v11 = vpack.c.bf16 %v6188_v55, %v6188_v55 }
 0x5a1   : > { %10404 = vmatmul.mubr.msk.bf16.vlgmr.msra.gmra.mrb[116].mxu0 %vm4372_vm2, %v6219_v58 }
 0x5a2   : > { %10414 = vmatpush3.bf16.msra.mxu0 %v13648_v31  ;;  %10415 = vmatprep.mubr.msk.bf16.mxu0 %vm10905_vm1, %v14921_v26 }
 0x5a3   : > { %10410 = vmatmul.mubr.msk.bf16.vlgmr.msra.gmra.mrb[132].mxu1 %vm4372_vm2, %v6220_v11  ;;  %10425 = vmatprep.subr.bf16.mxu0 %v14921_v26 }
 0x5a4   : > { %10420 = vmatpush3.bf16.msra.mxu1 %v13658_v52  ;;  %10421 = vmatprep.mubr.msk.bf16.mxu1 %vm10905_vm1, %v14921_v26 }
 0x5a5   : > { %10431 = vmatprep.subr.bf16.mxu1 %v14921_v26 }
 0x5ac   : > { %v6114_v6 = vpop.xlane.xlu1 %6113 }
 0x5ad   : > { %10707 = vrcp.f32 %v6114_v6 }
 0x5ae   : > { %v6111_v19 = vpop.xlane.xlu0 %6110 }
 0x5af   : > { %10709 = vrcp.f32 %v6111_v19 }
 0x5b4   : > { %v6117_v54 = vpop.xlane.xlu0 %6116 }
 0x5b5   : > { %10711 = vrcp.f32 %v6117_v54 }
 0x5b6   : > { %v6120_v31 = vpop.xlane.xlu1 %6119 }
 0x5b7   : > { %v10708_v39 = vpop.eup %10707  ;;  %10713 = vrcp.f32 %v6120_v31 }
 0x5b8   : > { %v6190_v60 = vmul.f32 %v10708_v39, %v13701_v27 }
 0x5b9   : > { %v10710_v28 = vpop.eup %10709 }
 0x5ba   : > { %v6189_v16 = vmul.f32 %v10710_v28, %v13709_v3  ;;  %v6222_v52 = vpack.c.bf16 %v6190_v60, %v6190_v60 }
 0x5bc   : > { %10422 = vmatmul.mubr.msk.bf16.vlgmr.msra.gmra.mrb[136].mxu1 %vm4372_vm2, %v6222_v52  ;;  %v6123_v4 = vpop.xlane.xlu0 %6122  ;;  %v6221_v22 = vpack.c.bf16 %v6189_v16, %v6189_v16 }
 0x5bd   : > { %10432 = vmatpush3.bf16.msra.mxu1 %v13670_v40  ;;  %10715 = vrcp.f32 %v6123_v4  ;;  %10433 = vmatprep.mubr.msk.bf16.mxu1 %vm10905_vm1, %v14921_v26 }
 0x5be   : > { %v6126_v10 = vpop.xlane.xlu1 %6125  ;;  %10416 = vmatmul.mubr.msk.bf16.vlgmr.msra.gmra.mrb[120].mxu0 %vm4372_vm2, %v6221_v22  ;;  %10443 = vmatprep.subr.bf16.mxu1 %v14921_v26 }
 0x5bf   : > { %v10712_v27 = vpop.eup %10711  ;;  %10717 = vrcp.f32 %v6126_v10  ;;  %10426 = vmatpush3.bf16.msra.mxu0 %v13661_v53  ;;  %10427 = vmatprep.mubr.msk.bf16.mxu0 %vm10905_vm1, %v14921_v26 }
 0x5c0   : > { %v6191_v3 = vmul.f32 %v10712_v27, %v13721_v13  ;;  %10437 = vmatprep.subr.bf16.mxu0 %v14921_v26 }
 0x5c1   : > { %v10714_v40 = vpop.eup %10713 }
 0x5c2   : > { %v6192_v23 = vmul.f32 %v10714_v40, %v13730_v18  ;;  %v6223_v63 = vpack.c.bf16 %v6191_v3, %v6191_v3 }
 0x5c4   : > { %v6129_v25 = vpop.xlane.xlu0 %6128  ;;  %v6224_v59 = vpack.c.bf16 %v6192_v23, %v6192_v23 }
 0x5c5   : > { %10719 = vrcp.f32 %v6129_v25 }
 0x5c6   : > { %10434 = vmatmul.mubr.msk.bf16.vlgmr.msra.gmra.mrb[140].mxu1 %vm4372_vm2, %v6224_v59  ;;  %v6132_v2 = vpop.xlane.xlu1 %6131  ;;  %10428 = vmatmul.mubr.msk.bf16.vlgmr.msra.gmra.mrb[124].mxu0 %vm4372_vm2, %v6223_v63 }
 0x5c7   : > { %v10716_v53 = vpop.eup %10715  ;;  %10444 = vmatpush3.bf16.msra.mxu1 %v13678_v49  ;;  %10721 = vrcp.f32 %v6132_v2  ;;  %10438 = vmatpush3.bf16.msra.mxu0 %v13673_v14 }
 0x5c8   : > { %v6193_v13 = vmul.f32 %v10716_v53, %v13743_v51  ;;  %10439 = vmatprep.mubr.msk.bf16.mxu0 %vm10905_vm1, %v14921_v26  ;;  %10445 = vmatprep.mubr.msk.bf16.mxu1 %vm10905_vm1, %v14921_v26 }
 0x5c9   : > { %v10718_v18 = vpop.eup %10717  ;;  %10449 = vmatprep.subr.bf16.mxu0 %v14921_v26  ;;  %10455 = vmatprep.subr.bf16.mxu1 %v14921_v26 }
 0x5ca   : > { %v6194_v57 = vmul.f32 %v10718_v18, %v13752_v48  ;;  %v6225_v20 = vpack.c.bf16 %v6193_v13, %v6193_v13 }
 0x5cc   : > { %v6226_v49 = vpack.c.bf16 %v6194_v57, %v6194_v57 }
 0x5ce   : > { %10440 = vmatmul.mubr.msk.bf16.vlgmr.msra.gmra.mrb[128].mxu0 %vm4372_vm2, %v6225_v20  ;;  %10446 = vmatmul.mubr.msk.bf16.vlgmr.msra.gmra.mrb[144].mxu1 %vm4372_vm2, %v6226_v49 }
 0x5cf   : > { %v10720_v14 = vpop.eup %10719  ;;  %10450 = vmatpush3.bf16.msra.mxu0 %v13681_v33  ;;  %10456 = vmatpush3.bf16.msra.mxu1 %v13684_v7 }
 0x5d0   : > { %v6195_v51 = vmul.f32 %v10720_v14, %v13763_v15  ;;  %10451 = vmatprep.mubr.msk.bf16.mxu0 %vm10905_vm1, %v14921_v26  ;;  %10457 = vmatprep.mubr.msk.bf16.mxu1 %vm10905_vm1, %v14921_v26 }
 0x5d1   : > { %v10722_v48 = vpop.eup %10721 }
 0x5d2   : > { %v6196_v41 = vmul.f32 %v10722_v48, %v13772_v29  ;;  %v6227_v8 = vpack.c.bf16 %v6195_v51, %v6195_v51 }
 0x5d4   : > { %v6228_v5 = vpack.c.bf16 %v6196_v41, %v6196_v41 }
 0x5d6   : > { %10452 = vmatmul.mubr.msk.bf16.vlgmr.msra.gmra.mrb[132].mxu0 %vm4372_vm2, %v6227_v8  ;;  %10458 = vmatmul.mubr.msk.bf16.vlgmr.msra.gmra.mrb[148].mxu1 %vm4372_vm2, %v6228_v5 }
 0x5ed   : > { %v6270_v33 = vpop.f32.mrb[72].mxu0 }
 0x5ee   : > { %v10273_v32 = vpop.f32.mrb[73].mxu0  ;;  %v7702_v17 = vpack.c.bf16 %v6270_v33, %v6270_v33 }
 0x5ef   : > { %v6273_v7 = vpop.f32.mrb[74].mxu0  ;;  %v6316_v1 = vpop.f32.mrb[88].mxu1 }
 0x5f0   : > { %v10274_v15 = vpop.f32.mrb[75].mxu0  ;;  %v10279_v45 = vpop.f32.mrb[89].mxu1  ;;  %v7736_v26 = vpack.c.bf16 %v6316_v1, %v6316_v1  ;;  %v7709_v43 = vrot.slane %v7702_v17, %v15073_v44 }
 0x5f1   : > { %v6319_v12 = vpop.f32.mrb[90].mxu1 }
 0x5f2   : > { %v10280_v62 = vpop.f32.mrb[91].mxu1  ;;  %v7743_v30 = vrot.slane %v7736_v26, %v15073_v44 }
 0x5f6   : > { %v6362_v35 = vpop.f32.mrb[76].mxu0 }
 0x5f7   : > { %v7710_v46 = vpack.c.bf16 %v6362_v35, %v6362_v35  ;;  %v10285_v9 = vpop.f32.mrb[77].mxu0 }
 0x5f8   : > { %v6365_v29 = vpop.f32.mrb[78].mxu0  ;;  %v6408_v36 = vpop.f32.mrb[92].mxu1 }
 0x5f9   : > { %v7717_v47 = vrot.slane %v7710_v46, %v15073_v44  ;;  %v7744_v37 = vpack.c.bf16 %v6408_v36, %v6408_v36  ;;  %v10286_v56 = vpop.f32.mrb[79].mxu0  ;;  %v10291_v38 = vpop.f32.mrb[93].mxu1 }
 0x5fa   : > { %v6411_v61 = vpop.f32.mrb[94].mxu1 }
 0x5fb   : > { %v7718_v24 = vcombine.low %v7709_v43, %v7717_v47  ;;  %v7719_v21 = vcombine.high %v7709_v43, %v7717_v47  ;;  %v7751_v42 = vrot.slane %v7744_v37, %v15073_v44  ;;  %v10292_v0 = vpop.f32.mrb[95].mxu1 }
 0x5fd   : > { %v13916_v55 = vrot.slane %v7718_v24, %v11350_v34  ;;  %v13919_v58 = vrot.slane %v7719_v21, %v11350_v34  ;;  %v7752_v11 = vcombine.low %v7743_v30, %v7751_v42  ;;  %v7753_v6 = vcombine.high %v7743_v30, %v7751_v42 }
 0x5fe   : > { %v6454_v19 = vpop.f32.mrb[80].mxu0 }
 0x5ff   : > { %v13923_v54 = vcombine.high %v13916_v55, %v14918_v50  ;;  %v10297_v31 = vpop.f32.mrb[81].mxu0  ;;  %v13926_v39 = vrot.slane %v7752_v11, %v11350_v34  ;;  %v13929_v60 = vrot.slane %v7753_v6, %v11350_v34  ;;  %v13933_v52 = vcombine.high %v13919_v58, %v14918_v50 }
 0x600   : > { %v6457_v28 = vpop.f32.mrb[82].mxu0  ;;  %v6500_v16 = vpop.f32.mrb[96].mxu1  ;;  %v8250_v4 = vshrl.u32 %v13916_v55, 16  ;;  %v8266_v63 = vshrl.u32 %v13919_v58, 16  ;;  %v7770_v41 = vpack.c.bf16 %v6454_v19, %v6454_v19 }
 0x601   : > { %v10298_v22 = vpop.f32.mrb[83].mxu0  ;;  %v10303_v10 = vpop.f32.mrb[97].mxu1  ;;  %v13938_v27 = vcombine.high %v13926_v39, %v14918_v50  ;;  %v13942_v3 = vcombine.high %v13929_v60, %v14918_v50  ;;  %v8251_v23 = vshrl.u32 %v13926_v39, 16  ;;  %v8258_v59 = vshrl.u32 %v13923_v54, 16 }
 0x602   : > { %v6503_v25 = vpop.f32.mrb[98].mxu1  ;;  %v8267_v53 = vshrl.u32 %v13929_v60, 16  ;;  %v8274_v14 = vshrl.u32 %v13933_v52, 16  ;;  %v7804_v32 = vpack.c.bf16 %v6500_v16, %v6500_v16  ;;  %v7777_v12 = vrot.slane %v7770_v41, %v15073_v44 }
 0x603   : > { %v10304_v13 = vpop.f32.mrb[99].mxu1  ;;  %v13952_v18 = vpack.i.b16 %v8251_v23, %v8250_v4  ;;  %v8259_v20 = vshrl.u32 %v13938_v27, 16  ;;  %v8275_v48 = vshrl.u32 %v13942_v3, 16 }
 0x604   : > { %v13960_v51 = vpack.i.b16 %v8267_v53, %v8266_v63  ;;  %v7811_v9 = vrot.slane %v7804_v32, %v15073_v44 }
 0x605   : > { %v13963_v8 = vpack.i.b16 %v8259_v20, %v8258_v59  ;;  %v13965_v33 = vpack.i.b16 %v8275_v48, %v8274_v14 }
 0x606   : > { %v6546_v5 = vpop.f32.mrb[84].mxu0 }
 0x607   : > { %v7778_v7 = vpack.c.bf16 %v6546_v5, %v6546_v5  ;;  %v10309_v1 = vpop.f32.mrb[85].mxu0 }
 0x608   : > { %v6549_v15 = vpop.f32.mrb[86].mxu0  ;;  %v6592_v45 = vpop.f32.mrb[100].mxu1 }
 0x609   : > { %v7785_v62 = vrot.slane %v7778_v7, %v15073_v44  ;;  %v7812_v17 = vpack.c.bf16 %v6592_v45, %v6592_v45  ;;  %v10310_v35 = vpop.f32.mrb[87].mxu0  ;;  %v10315_v26 = vpop.f32.mrb[101].mxu1 }
 0x60a   : > { %v6595_v46 = vpop.f32.mrb[102].mxu1 }
 0x60b   : > { %v7786_v29 = vcombine.low %v7777_v12, %v7785_v62  ;;  %v7787_v36 = vcombine.high %v7777_v12, %v7785_v62  ;;  %v7819_v43 = vrot.slane %v7812_v17, %v15073_v44  ;;  %v10316_v47 = vpop.f32.mrb[103].mxu1 }
 0x60d   : > { %v13972_v37 = vrot.slane %v7786_v29, %v11350_v34  ;;  %v13975_v56 = vrot.slane %v7787_v36, %v11350_v34  ;;  %v7820_v38 = vcombine.low %v7811_v9, %v7819_v43  ;;  %v7821_v61 = vcombine.high %v7811_v9, %v7819_v43 }
 0x60e   : > { %v6638_v30 = vpop.f32.mrb[88].mxu0 }
 0x60f   : > { %v13979_v24 = vcombine.high %v13972_v37, %v14918_v50  ;;  %v10321_v21 = vpop.f32.mrb[89].mxu0  ;;  %v13982_v42 = vrot.slane %v7820_v38, %v11350_v34  ;;  %v13985_v0 = vrot.slane %v7821_v61, %v11350_v34  ;;  %v13989_v19 = vcombine.high %v13975_v56, %v14918_v50 }
 0x610   : > { %v6641_v11 = vpop.f32.mrb[90].mxu0  ;;  %v6684_v6 = vpop.f32.mrb[104].mxu1  ;;  %v8282_v31 = vshrl.u32 %v13972_v37, 16  ;;  %v8298_v63 = vshrl.u32 %v13975_v56, 16  ;;  %v7838_v15 = vpack.c.bf16 %v6638_v30, %v6638_v30 }
 0x611   : > { %v10322_v28 = vpop.f32.mrb[91].mxu0  ;;  %v10327_v16 = vpop.f32.mrb[105].mxu1  ;;  %v13994_v4 = vcombine.high %v13982_v42, %v14918_v50  ;;  %v13998_v22 = vcombine.high %v13985_v0, %v14918_v50  ;;  %v8283_v23 = vshrl.u32 %v13982_v42, 16  ;;  %v8290_v59 = vshrl.u32 %v13979_v24, 16 }
 0x612   : > { %v6687_v25 = vpop.f32.mrb[106].mxu1  ;;  %v8299_v13 = vshrl.u32 %v13985_v0, 16  ;;  %v8306_v32 = vshrl.u32 %v13989_v19, 16  ;;  %v7872_v17 = vpack.c.bf16 %v6684_v6, %v6684_v6  ;;  %v7845_v29 = vrot.slane %v7838_v15, %v15073_v44 }
 0x613   : > { %v10328_v20 = vpop.f32.mrb[107].mxu1  ;;  %v14008_v14 = vpack.i.b16 %v8283_v23, %v8282_v31  ;;  %v8291_v41 = vshrl.u32 %v13994_v4, 16  ;;  %v8307_v1 = vshrl.u32 %v13998_v22, 16 }
 0x614   : > { %v14016_v7 = vpack.i.b16 %v8299_v13, %v8298_v63  ;;  %v7879_v30 = vrot.slane %v7872_v17, %v15073_v44 }
 0x615   : > { %v14019_v45 = vpack.i.b16 %v8291_v41, %v8290_v59  ;;  %v14021_v62 = vpack.i.b16 %v8307_v1, %v8306_v32 }
 0x616   : > { %v6730_v12 = vpop.f32.mrb[92].mxu0 }
 0x617   : > { %v7846_v35 = vpack.c.bf16 %v6730_v12, %v6730_v12  ;;  %v10333_v26 = vpop.f32.mrb[93].mxu0 }
 0x618   : > { %v6733_v46 = vpop.f32.mrb[94].mxu0  ;;  %v6776_v9 = vpop.f32.mrb[108].mxu1 }
 0x619   : > { %v7853_v36 = vrot.slane %v7846_v35, %v15073_v44  ;;  %v7880_v43 = vpack.c.bf16 %v6776_v9, %v6776_v9  ;;  %v10334_v47 = vpop.f32.mrb[95].mxu0  ;;  %v10339_v38 = vpop.f32.mrb[109].mxu1 }
 0x61a   : > { %v6779_v61 = vpop.f32.mrb[110].mxu1 }
 0x61b   : > { %v7854_v21 = vcombine.low %v7845_v29, %v7853_v36  ;;  %v7855_v11 = vcombine.high %v7845_v29, %v7853_v36  ;;  %v7887_v31 = vrot.slane %v7880_v43, %v15073_v44  ;;  %v10340_v28 = vpop.f32.mrb[111].mxu1 }
 0x61d   : > { %v14028_v6 = vrot.slane %v7854_v21, %v11350_v34  ;;  %v14031_v16 = vrot.slane %v7855_v11, %v11350_v34  ;;  %v7888_v23 = vcombine.low %v7879_v30, %v7887_v31  ;;  %v7889_v25 = vcombine.high %v7879_v30, %v7887_v31 }
 0x61e   : > { %v6822_v59 = vpop.f32.mrb[96].mxu0 }
 0x61f   : > { %v14035_v63 = vcombine.high %v14028_v6, %v14918_v50  ;;  %v10345_v13 = vpop.f32.mrb[97].mxu0  ;;  %v14038_v20 = vrot.slane %v7888_v23, %v11350_v34  ;;  %v14041_v41 = vrot.slane %v7889_v25, %v11350_v34  ;;  %v14045_v15 = vcombine.high %v14031_v16, %v14918_v50 }
 0x620   : > { %v6825_v32 = vpop.f32.mrb[98].mxu0  ;;  %v6868_v1 = vpop.f32.mrb[112].mxu1  ;;  %v8314_v12 = vshrl.u32 %v14028_v6, 16  ;;  %v8330_v47 = vshrl.u32 %v14031_v16, 16 }
 0x621   : > { %v10346_v17 = vpop.f32.mrb[99].mxu0  ;;  %v10351_v35 = vpop.f32.mrb[113].mxu1  ;;  %v14050_v26 = vcombine.high %v14038_v20, %v14918_v50  ;;  %v14054_v46 = vcombine.high %v14041_v41, %v14918_v50  ;;  %v8315_v29 = vshrl.u32 %v14038_v20, 16  ;;  %v8322_v43 = vshrl.u32 %v14035_v63, 16 }
 0x622   : > { %v6871_v36 = vpop.f32.mrb[114].mxu1  ;;  %v8331_v61 = vshrl.u32 %v14041_v41, 16  ;;  %v8338_v23 = vshrl.u32 %v14045_v15, 16  ;;  %v7906_v32 = vpack.c.bf16 %v6822_v59, %v6822_v59 }
 0x623   : > { %v10352_v30 = vpop.f32.mrb[115].mxu1  ;;  %v14064_v21 = vpack.i.b16 %v8315_v29, %v8314_v12  ;;  %v8323_v31 = vshrl.u32 %v14050_v26, 16  ;;  %v8339_v13 = vshrl.u32 %v14054_v46, 16  ;;  %v7940_v29 = vpack.c.bf16 %v6868_v1, %v6868_v1 }
 0x624   : > { %v14072_v25 = vpack.i.b16 %v8331_v61, %v8330_v47  ;;  %v7913_v9 = vrot.slane %v7906_v32, %v15073_v44 }
 0x625   : > { %v14075_v17 = vpack.i.b16 %v8323_v31, %v8322_v43  ;;  %v14077_v12 = vpack.i.b16 %v8339_v13, %v8338_v23  ;;  %v7947_v59 = vrot.slane %v7940_v29, %v15073_v44 }
 0x626   : > { %v6914_v35 = vpop.f32.mrb[100].mxu0 }
 0x627   : > { %v7914_v36 = vpack.c.bf16 %v6914_v35, %v6914_v35  ;;  %v10357_v30 = vpop.f32.mrb[101].mxu0 }
 0x628   : > { %v6917_v11 = vpop.f32.mrb[102].mxu0  ;;  %v6960_v38 = vpop.f32.mrb[116].mxu1 }
 0x629   : > { %v7921_v28 = vrot.slane %v7914_v36, %v15073_v44  ;;  %v7948_v5 = vpack.c.bf16 %v6960_v38, %v6960_v38  ;;  %v10358_v47 = vpop.f32.mrb[103].mxu0  ;;  %v10363_v61 = vpop.f32.mrb[117].mxu1 }
 0x62a   : > { %v6963_v48 = vpop.f32.mrb[118].mxu1 }
 0x62b   : > { %v7922_v43 = vcombine.low %v7913_v9, %v7921_v28  ;;  %v7923_v31 = vcombine.high %v7913_v9, %v7921_v28  ;;  %v7955_v23 = vrot.slane %v7948_v5, %v15073_v44  ;;  %v10364_v13 = vpop.f32.mrb[119].mxu1 }
 0x62d   : > { %v14084_v1 = vrot.slane %v7922_v43, %v11350_v34  ;;  %v14087_v11 = vrot.slane %v7923_v31, %v11350_v34  ;;  %v7956_v32 = vcombine.low %v7947_v59, %v7955_v23  ;;  %v7957_v35 = vcombine.high %v7947_v59, %v7955_v23 }
 0x62e   : > { %v7006_v36 = vpop.f32.mrb[104].mxu0 }
 0x62f   : > { %15074 = vst [vmem:[#allocation43_spill] sm:$0xff] %v14084_v1  ;;  %15075 = vst [vmem:[#allocation32_spill] sm:$0xff] %v14087_v11  ;;  %v14091_v38 = vcombine.high %v14084_v1, %v14918_v50  ;;  %v10369_v48 = vpop.f32.mrb[105].mxu0  ;;  %v14094_v29 = vrot.slane %v7956_v32, %v11350_v34  ;;  %v14097_v5 = vrot.slane %v7957_v35, %v11350_v34  ;;  %v8346_v30 = vshrl.u32 %v14084_v1, 16 }
 0x630   : > { %v7009_v9 = vpop.f32.mrb[106].mxu0  ;;  %v14101_v28 = vcombine.high %v14087_v11, %v14918_v50  ;;  %v8362_v13 = vshrl.u32 %v14087_v11, 16 }
 0x631   : > { %15076 = vst [vmem:[#allocation47_spill] sm:$0xff] %v14091_v38  ;;  %15077 = vst [vmem:[#allocation41_spill] sm:$0xff] %v14094_v29  ;;  %v10370_v47 = vpop.f32.mrb[107].mxu0  ;;  %v14106_v61 = vcombine.high %v14094_v29, %v14918_v50  ;;  %v14110_v59 = vcombine.high %v14097_v5, %v14918_v50  ;;  %v8347_v31 = vshrl.u32 %v14094_v29, 16  ;;  %v8354_v23 = vshrl.u32 %v14091_v38, 16 }
 0x632   : > { %15078 = vst [vmem:[#allocation42_spill] sm:$0xff] %v14097_v5  ;;  %15079 = vst [vmem:[#allocation51_spill] sm:$0xff] %v14101_v28  ;;  %v8363_v35 = vshrl.u32 %v14097_v5, 16  ;;  %v8370_v53 = vshrl.u32 %v14101_v28, 16  ;;  %v15086_v5 = vpack.i.b16 %v13926_v39, %v13916_v55  ;;  %v15089_v55 = vpack.i.b16 %v13942_v3, %v13933_v52 }
 0x633   : > { %15080 = vst [vmem:[#allocation24_spill] sm:$0xff] %v14106_v61  ;;  %15081 = vst [vmem:[#allocation23_spill] sm:$0xff] %v14110_v59  ;;  %v14120_v48 = vpack.i.b16 %v8347_v31, %v8346_v30  ;;  %v8355_v47 = vshrl.u32 %v14106_v61, 16  ;;  %v8371_v49 = vshrl.u32 %v14110_v59, 16  ;;  %v7974_v30 = vpack.c.bf16 %v7006_v36, %v7006_v36 }
 0x634   : > { %v14128_v10 = vpack.i.b16 %v8363_v35, %v8362_v13  ;;  %v15091_v29 = vpack.i.b16 %v13985_v0, %v13975_v56 }
 0x635   : > { %15082 = vst [vmem:[#allocation22_spill] sm:$0xff] %v14120_v48  ;;  %v14131_v57 = vpack.i.b16 %v8355_v47, %v8354_v23  ;;  %v14133_v32 = vpack.i.b16 %v8371_v49, %v8370_v53  ;;  %v7981_v43 = vrot.slane %v7974_v30, %v15073_v44 }
 0x636   : > { %15083 = vst [vmem:[#allocation38_spill] sm:$0xff] %v14128_v10 }
 0x637   : > { %15084 = vst [vmem:[#allocation34_spill] sm:$0xff] %v14131_v57  ;;  %15085 = vst [vmem:[#allocation45_spill] sm:$0xff] %v14133_v32 }
 0x63d   : > { %v7052_v31 = vpop.f32.mrb[120].mxu1 }
 0x63e   : > { %v10375_v2 = vpop.f32.mrb[121].mxu1  ;;  %v7098_v40 = vpop.f32.mrb[108].mxu0  ;;  %v8008_v23 = vpack.c.bf16 %v7052_v31, %v7052_v31 }
 0x63f   : > { %v7055_v9 = vpop.f32.mrb[122].mxu1  ;;  %v7982_v38 = vpack.c.bf16 %v7098_v40, %v7098_v40  ;;  %v10381_v61 = vpop.f32.mrb[109].mxu0 }
 0x640   : > { %v10376_v48 = vpop.f32.mrb[123].mxu1  ;;  %v7101_v11 = vpop.f32.mrb[110].mxu0  ;;  %v8015_v40 = vrot.slane %v8008_v23, %v15073_v44 }
 0x641   : > { %v7989_v13 = vrot.slane %v7982_v38, %v15073_v44  ;;  %v10382_v35 = vpop.f32.mrb[111].mxu0 }
 0x643   : > { %v7990_v10 = vcombine.low %v7981_v43, %v7989_v13  ;;  %v7991_v28 = vcombine.high %v7981_v43, %v7989_v13 }
 0x645   : > { %v7998_v36 = vrot.slane %v7990_v10, %v11350_v34  ;;  %v8005_v2 = vrot.slane %v7991_v28, %v11350_v34 }
 0x646   : > { %v7144_v47 = vpop.f32.mrb[124].mxu1 }
 0x647   : > { %v8016_v49 = vpack.c.bf16 %v7144_v47, %v7144_v47  ;;  %v10387_v53 = vpop.f32.mrb[125].mxu1  ;;  %v8006_v38 = vcombine.high %v7998_v36, %v14918_v50  ;;  %v8007_v43 = vcombine.high %v8005_v2, %v14918_v50  ;;  %v8378_v35 = vshrl.u32 %v7998_v36, 16 }
 0x648   : > { %v7147_v9 = vpop.f32.mrb[126].mxu1  ;;  %v8394_v10 = vshrl.u32 %v8005_v2, 16 }
 0x649   : > { %v8023_v11 = vrot.slane %v8016_v49, %v15073_v44  ;;  %v10388_v61 = vpop.f32.mrb[127].mxu1  ;;  %v8386_v49 = vshrl.u32 %v8006_v38, 16  ;;  %v8402_v9 = vshrl.u32 %v8007_v43, 16 }
 0x64b   : > { %v8024_v48 = vcombine.low %v8015_v40, %v8023_v11  ;;  %v8025_v30 = vcombine.high %v8015_v40, %v8023_v11 }
 0x64d   : > { %v8032_v31 = vrot.slane %v8024_v48, %v11350_v34  ;;  %v8039_v13 = vrot.slane %v8025_v30, %v11350_v34 }
 0x64f   : > { %v8040_v28 = vcombine.high %v8032_v31, %v14918_v50  ;;  %v8041_v47 = vcombine.high %v8039_v13, %v14918_v50  ;;  %v8376_v23 = vpack.i.b16 %v8032_v31, %v7998_v36  ;;  %v8379_v53 = vshrl.u32 %v8032_v31, 16 }
 0x650   : > { %v8392_v61 = vpack.i.b16 %v8039_v13, %v8005_v2  ;;  %v8395_v40 = vshrl.u32 %v8039_v13, 16  ;;  %v15087_v36 = vpack.i.b16 %v13929_v60, %v13919_v58 }
 0x651   : > { %v14147_v11 = vpack.i.b16 %v8379_v53, %v8378_v35  ;;  %v8384_v32 = vpack.i.b16 %v8040_v28, %v8006_v38  ;;  %v8387_v57 = vshrl.u32 %v8040_v28, 16  ;;  %v8400_v59 = vpack.i.b16 %v8041_v47, %v8007_v43 }
 0x652   : > { %v14149_v48 = vpack.i.b16 %v8395_v40, %v8394_v10  ;;  %v8403_v30 = vshrl.u32 %v8041_v47, 16  ;;  %v14154_v1 = vcombine.low %v15086_v5, %v8376_v23  ;;  %v14159_v31 = vcombine.low %v15087_v36, %v8392_v61 }
 0x653   : > { %v14161_v2 = vpack.i.b16 %v8387_v57, %v8386_v49  ;;  %v15088_v43 = vpack.i.b16 %v13938_v27, %v13923_v54  ;;  %v14173_v39 = vcombine.low %v15089_v55, %v8400_v59 }
 0x654   : > { %v14175_v5 = vpack.i.b16 %v8403_v30, %v8402_v9 }
 0x655   : > { %v14168_v13 = vcombine.low %v15088_v43, %v8384_v32 }
 0x66c   : > { %v7190_v35 = vpop.f32.mrb[112].mxu0 }
 0x66d   : > { %v10393_v54 = vpop.f32.mrb[113].mxu0  ;;  %v8042_v59 = vpack.c.bf16 %v7190_v35, %v7190_v35 }
 0x66e   : > { %v7193_v27 = vpop.f32.mrb[114].mxu0  ;;  %v7236_v32 = vpop.f32.mrb[128].mxu1 }
 0x66f   : > { %v10394_v10 = vpop.f32.mrb[115].mxu0  ;;  %v10399_v28 = vpop.f32.mrb[129].mxu1  ;;  %v8076_v23 = vpack.c.bf16 %v7236_v32, %v7236_v32  ;;  %v8049_v40 = vrot.slane %v8042_v59, %v15073_v44 }
 0x670   : > { %v7239_v52 = vpop.f32.mrb[130].mxu1 }
 0x671   : > { %v10400_v3 = vpop.f32.mrb[131].mxu1  ;;  %v8083_v27 = vrot.slane %v8076_v23, %v15073_v44 }
 0x674   : > { %v7282_v47 = vpop.f32.mrb[116].mxu0 }
 0x675   : > { %v8050_v53 = vpack.c.bf16 %v7282_v47, %v7282_v47  ;;  %v10405_v49 = vpop.f32.mrb[117].mxu0 }
 0x676   : > { %v7285_v9 = vpop.f32.mrb[118].mxu0  ;;  %v7328_v61 = vpop.f32.mrb[132].mxu1 }
 0x677   : > { %v8057_v30 = vrot.slane %v8050_v53, %v15073_v44  ;;  %v8084_v36 = vpack.c.bf16 %v7328_v61, %v7328_v61  ;;  %v10406_v43 = vpop.f32.mrb[119].mxu0  ;;  %v10411_v55 = vpop.f32.mrb[133].mxu1 }
 0x678   : > { %v7331_v54 = vpop.f32.mrb[134].mxu1 }
 0x679   : > { %v8058_v10 = vcombine.low %v8049_v40, %v8057_v30  ;;  %v8059_v28 = vcombine.high %v8049_v40, %v8057_v30  ;;  %v8091_v35 = vrot.slane %v8084_v36, %v15073_v44  ;;  %v10412_v52 = vpop.f32.mrb[135].mxu1 }
 0x67b   : > { %v8066_v32 = vrot.slane %v8058_v10, %v11350_v34  ;;  %v8073_v3 = vrot.slane %v8059_v28, %v11350_v34  ;;  %v8092_v47 = vcombine.low %v8083_v27, %v8091_v35  ;;  %v8093_v49 = vcombine.high %v8083_v27, %v8091_v35 }
 0x67d   : > { %v8074_v59 = vcombine.high %v8066_v32, %v14918_v50  ;;  %v8075_v53 = vcombine.high %v8073_v3, %v14918_v50  ;;  %v8100_v9 = vrot.slane %v8092_v47, %v11350_v34  ;;  %v8107_v61 = vrot.slane %v8093_v49, %v11350_v34 }
 0x67e   : > { %v8410_v23 = vshrl.u32 %v8066_v32, 16  ;;  %v8426_v43 = vshrl.u32 %v8073_v3, 16  ;;  %v15090_v49 = vpack.i.b16 %v13982_v42, %v13972_v37 }
 0x67f   : > { %v8108_v40 = vcombine.high %v8100_v9, %v14918_v50  ;;  %v8109_v30 = vcombine.high %v8107_v61, %v14918_v50  ;;  %v8408_v36 = vpack.i.b16 %v8100_v9, %v8066_v32  ;;  %v8411_v55 = vshrl.u32 %v8100_v9, 16 }
 0x680   : > { %v8418_v54 = vshrl.u32 %v8074_v59, 16  ;;  %v8434_v10 = vshrl.u32 %v8075_v53, 16  ;;  %v8424_v28 = vpack.i.b16 %v8107_v61, %v8073_v3  ;;  %v8427_v27 = vshrl.u32 %v8107_v61, 16 }
 0x681   : > { %v8412_v35 = vpack.i.b16 %v8411_v55, %v8410_v23  ;;  %v8416_v52 = vpack.i.b16 %v8108_v40, %v8074_v59  ;;  %v8419_v57 = vshrl.u32 %v8108_v40, 16  ;;  %v8432_v60 = vpack.i.b16 %v8109_v30, %v8075_v53 }
 0x682   : > { %v8428_v58 = vpack.i.b16 %v8427_v27, %v8426_v43  ;;  %v8435_v47 = vshrl.u32 %v8109_v30, 16  ;;  %v14198_v38 = vcombine.low %v15090_v49, %v8408_v36  ;;  %v14203_v32 = vcombine.low %v15091_v29, %v8424_v28 }
 0x683   : > { %v8420_v9 = vpack.i.b16 %v8419_v57, %v8418_v54  ;;  %v8568_v3 = vcombine.low %v14008_v14, %v8412_v35  ;;  %v15092_v59 = vpack.i.b16 %v13994_v4, %v13979_v24  ;;  %v15093_v53 = vpack.i.b16 %v13998_v22, %v13989_v19 }
 0x684   : > { %v8436_v37 = vpack.i.b16 %v8435_v47, %v8434_v10  ;;  %v8768_v42 = vcombine.low %v14016_v7, %v8428_v58  ;;  %v15094_v27 = vcombine.low %v13952_v18, %v14147_v11  ;;  %v15096_v11 = vcombine.low %v13963_v8, %v14161_v2 }
 0x685   : > { %v14209_v61 = vcombine.low %v15092_v59, %v8416_v52  ;;  %v14214_v23 = vcombine.low %v15093_v53, %v8432_v60  ;;  %v8668_v56 = vcombine.low %v14019_v45, %v8420_v9  ;;  %v8509_v45 = vrot.slane %v14154_v1, %v15073_v44 }
 0x686   : > { %v8868_v0 = vcombine.low %v14021_v62, %v8436_v37  ;;  %v14227_v35 = vrot.slane %v15094_v27, %v15073_v44  ;;  %v8609_v52 = vrot.slane %v14168_v13, %v15073_v44  ;;  %v14260_v2 = vrot.slane %v8568_v3, %v15073_v44 }
 0x68f   : > { %v7420_v29 = vpop.f32.mrb[136].mxu1 }
 0x690   : > { %v10423_v57 = vpop.f32.mrb[137].mxu1  ;;  %v8144_v36 = vpack.c.bf16 %v7420_v29, %v7420_v29  ;;  %v15095_v29 = vcombine.low %v13960_v51, %v14149_v48 }
 0x691   : > { %v7374_v14 = vpop.f32.mrb[120].mxu0  ;;  %v7423_v43 = vpop.f32.mrb[138].mxu1  ;;  %v14245_v57 = vrot.slane %v15096_v11, %v15073_v44 }
 0x692   : > { %v10417_v40 = vpop.f32.mrb[121].mxu0  ;;  %v10424_v24 = vpop.f32.mrb[139].mxu1  ;;  %v8110_v55 = vpack.c.bf16 %v7374_v14, %v7374_v14  ;;  %v8151_v47 = vrot.slane %v8144_v36, %v15073_v44  ;;  %v14239_v18 = vrot.slane %v15095_v29, %v15073_v44  ;;  %v15097_v43 = vcombine.low %v13965_v33, %v14175_v5 }
 0x693   : > { %v7377_v4 = vpop.f32.mrb[122].mxu0  ;;  %v15098_v14 = vpack.i.b16 %v14038_v20, %v14028_v6 }
 0x694   : > { %v10418_v30 = vpop.f32.mrb[123].mxu0  ;;  %v8117_v49 = vrot.slane %v8110_v55, %v15073_v44  ;;  %v14253_v40 = vrot.slane %v15097_v43, %v15073_v44 }
 0x695   : > { %v8559_v30 = vrot.slane %v14198_v38, %v15073_v44 }
 0x699   : > { %v7466_v19 = vpop.f32.mrb[124].mxu0  ;;  %v7512_v22 = vpop.f32.mrb[140].mxu1 }
 0x69a   : > { %v8118_v60 = vpack.c.bf16 %v7466_v19, %v7466_v19  ;;  %v8152_v54 = vpack.c.bf16 %v7512_v22, %v7512_v22  ;;  %v10429_v10 = vpop.f32.mrb[125].mxu0  ;;  %v10435_v7 = vpop.f32.mrb[141].mxu1  ;;  %v14269_v22 = vrot.slane %v8768_v42, %v15073_v44 }
 0x69b   : > { %v7469_v58 = vpop.f32.mrb[126].mxu0  ;;  %v7515_v28 = vpop.f32.mrb[142].mxu1  ;;  %v14272_v10 = vrot.slane %v8668_v56, %v15073_v44  ;;  %v14277_v7 = vrot.slane %v8868_v0, %v15073_v44 }
 0x69c   : > { %v8125_v9 = vrot.slane %v8118_v60, %v15073_v44  ;;  %v8159_v59 = vrot.slane %v8152_v54, %v15073_v44  ;;  %v10430_v53 = vpop.f32.mrb[127].mxu0  ;;  %v10436_v37 = vpop.f32.mrb[143].mxu1 }
 0x69e   : > { %v8126_v24 = vcombine.low %v8117_v49, %v8125_v9  ;;  %v8127_v4 = vcombine.high %v8117_v49, %v8125_v9  ;;  %v8160_v51 = vcombine.low %v8151_v47, %v8159_v59  ;;  %v8161_v48 = vcombine.high %v8151_v47, %v8159_v59 }
 0x6a0   : > { %v8134_v33 = vrot.slane %v8126_v24, %v11350_v34  ;;  %v8141_v5 = vrot.slane %v8127_v4, %v11350_v34  ;;  %v8168_v55 = vrot.slane %v8160_v51, %v11350_v34  ;;  %v8175_v19 = vrot.slane %v8161_v48, %v11350_v34 }
 0x6a1   : > { %v7558_v60 = vpop.f32.mrb[128].mxu0  ;;  %v7604_v54 = vpop.f32.mrb[144].mxu1 }
 0x6a2   : > { %v8142_v58 = vcombine.high %v8134_v33, %v14918_v50  ;;  %v8143_v28 = vcombine.high %v8141_v5, %v14918_v50  ;;  %v8442_v27 = vshrl.u32 %v8134_v33, 16  ;;  %v8458_v47 = vshrl.u32 %v8141_v5, 16  ;;  %v10441_v49 = vpop.f32.mrb[129].mxu0  ;;  %v10447_v42 = vpop.f32.mrb[145].mxu1 }
 0x6a3   : > { %v8176_v9 = vcombine.high %v8168_v55, %v14918_v50  ;;  %v8177_v59 = vcombine.high %v8175_v19, %v14918_v50  ;;  %v8440_v56 = vpack.i.b16 %v8168_v55, %v8134_v33  ;;  %v8443_v53 = vshrl.u32 %v8168_v55, 16  ;;  %v7561_v37 = vpop.f32.mrb[130].mxu0  ;;  %v7607_v29 = vpop.f32.mrb[146].mxu1 }
 0x6a4   : > { %v8450_v11 = vshrl.u32 %v8142_v58, 16  ;;  %v8466_v43 = vshrl.u32 %v8143_v28, 16  ;;  %v8456_v0 = vpack.i.b16 %v8175_v19, %v8141_v5  ;;  %v8459_v24 = vshrl.u32 %v8175_v19, 16  ;;  %v10442_v4 = vpop.f32.mrb[131].mxu0  ;;  %v10448_v51 = vpop.f32.mrb[147].mxu1 }
 0x6a5   : > { %v8444_v48 = vpack.i.b16 %v8443_v53, %v8442_v27  ;;  %v8448_v8 = vpack.i.b16 %v8176_v9, %v8142_v58  ;;  %v8451_v62 = vshrl.u32 %v8176_v9, 16  ;;  %v8464_v3 = vpack.i.b16 %v8177_v59, %v8143_v28 }
 0x6a6   : > { %v8460_v49 = vpack.i.b16 %v8459_v24, %v8458_v47  ;;  %v8467_v42 = vshrl.u32 %v8177_v59, 16  ;;  %v8510_v36 = vcombine.low %v15098_v14, %v8440_v56  ;;  %v15099_v33 = vpack.i.b16 %v14041_v41, %v14031_v16 }
 0x6a7   : > { %v8452_v37 = vpack.i.b16 %v8451_v62, %v8450_v11  ;;  %v8526_v5 = vcombine.low %v14064_v21, %v8444_v48  ;;  %v15100_v19 = vpack.i.b16 %v14050_v26, %v14035_v63  ;;  %v15101_v28 = vpack.i.b16 %v14054_v46, %v14045_v15 }
 0x6a8   : > { %v14289_v55 = vcombine.low %v15099_v33, %v8456_v0  ;;  %v8468_v47 = vpack.i.b16 %v8467_v42, %v8466_v43  ;;  %v8517_v6 = vrot.slane %v8510_v36, %v15073_v44  ;;  %v8726_v20 = vcombine.low %v14072_v25, %v8460_v49 }
 0x6a9   : > { %v8610_v58 = vcombine.low %v15100_v19, %v8448_v8  ;;  %v14298_v27 = vcombine.low %v15101_v28, %v8464_v3  ;;  %v8626_v41 = vcombine.low %v14075_v17, %v8452_v37  ;;  %v8178_v21 = vpack.c.bf16 %v7558_v60, %v7558_v60  ;;  %v7650_v14 = vpop.f32.mrb[132].mxu0  ;;  %v7696_v63 = vpop.f32.mrb[148].mxu1 }
 0x6aa   : > { %v8717_v16 = vrot.slane %v14289_v55, %v15073_v44  ;;  %v8212_v62 = vpack.c.bf16 %v7604_v54, %v7604_v54  ;;  %v8533_v26 = vrot.slane %v8526_v5, %v15073_v44  ;;  %v14307_v15 = vrot.slane %v8726_v20, %v15073_v44  ;;  %v10453_v3 = vpop.f32.mrb[133].mxu0  ;;  %v10459_v9 = vpop.f32.mrb[149].mxu1 }
 0x6ab   : > { %v8826_v46 = vcombine.low %v14077_v12, %v8468_v47  ;;  %v8186_v8 = vpack.c.bf16 %v7650_v14, %v7650_v14  ;;  %v8220_v36 = vpack.c.bf16 %v7696_v63, %v7696_v63  ;;  %v8185_v59 = vrot.slane %v8178_v21, %v15073_v44  ;;  %v7653_v17 = vpop.f32.mrb[134].mxu0  ;;  %v7699_v60 = vpop.f32.mrb[150].mxu1 }
 0x6ac   : > { %v8219_v25 = vrot.slane %v8212_v62, %v15073_v44  ;;  %v8534_v54 = vcombine.low %v8509_v45, %v8517_v6  ;;  %v8542_v56 = vcombine.low %v14227_v35, %v8533_v26  ;;  %v10454_v29 = vpop.f32.mrb[135].mxu0  ;;  %v10460_v11 = vpop.f32.mrb[151].mxu1  ;;  %v8617_v43 = vrot.slane %v8610_v58, %v15073_v44 }
 0x6ad   : > { %v8193_v53 = vrot.slane %v8186_v8, %v15073_v44  ;;  %v8227_v12 = vrot.slane %v8220_v36, %v15073_v44  ;;  %v8633_v0 = vrot.slane %v8626_v41, %v15073_v44  ;;  %v8817_v1 = vrot.slane %v14298_v27, %v15073_v44  ;;  %v15105_v11 = vld [vmem:[#allocation42_spill] sm:$0xff] }
 0x6ae   : > { %v8541_v24 = vrot.slane %v8534_v54, %v11350_v34  ;;  %v8549_v4 = vrot.slane %v8542_v56, %v11350_v34  ;;  %v14325_v45 = vrot.slane %v8826_v46, %v15073_v44  ;;  %v8634_v37 = vcombine.low %v8609_v52, %v8617_v43  ;;  %v15102_v56 = vld [vmem:[#allocation41_spill] sm:$0xff]  ;;  %v15106_v43 = vld [vmem:[#allocation32_spill] sm:$0xff] }
 0x6af   : > { %v8194_v35 = vcombine.low %v8185_v59, %v8193_v53  ;;  %v8195_v51 = vcombine.high %v8185_v59, %v8193_v53  ;;  %v8228_v48 = vcombine.low %v8219_v25, %v8227_v12  ;;  %v8229_v49 = vcombine.high %v8219_v25, %v8227_v12  ;;  %v15103_v53 = vld [vmem:[#allocation43_spill] sm:$0xff] }
 0x6b0   : > { %v14327_v42 = vcombine.high %v8541_v24, %v8549_v4  ;;  %v14329_v33 = vcombine.low %v8541_v24, %v8549_v4  ;;  %v8642_v5 = vcombine.low %v14245_v57, %v8633_v0  ;;  %v8641_v20 = vrot.slane %v8634_v37, %v11350_v34  ;;  %v15108_v4 = vld [vmem:[#allocation22_spill] sm:$0xff] }
 0x6b1   : > { %v8202_v19 = vrot.slane %v8194_v35, %v11350_v34  ;;  %v8209_v58 = vrot.slane %v8195_v51, %v11350_v34  ;;  %v8236_v28 = vrot.slane %v8228_v48, %v11350_v34  ;;  %v8243_v27 = vrot.slane %v8229_v49, %v11350_v34  ;;  %v15109_v51 = vld [vmem:[#allocation24_spill] sm:$0xff]  ;;  %v15110_v48 = vld [vmem:[#allocation47_spill] sm:$0xff] }
 0x6b2   : > { %v8905_v47 = vshrl.u32 %v14329_v33, 16  ;;  %v8911_v6 = vshrl.u32 %v14327_v42, 16  ;;  %v8649_v41 = vrot.slane %v8642_v5, %v11350_v34  ;;  %v15104_v12 = vpack.i.b16 %v15102_v56, %v15103_v53  ;;  %v15112_v5 = vld [vmem:[#allocation23_spill] sm:$0xff] }
 0x6b3   : > { %v8210_v13 = vcombine.high %v8202_v19, %v14918_v50  ;;  %v8211_v52 = vcombine.high %v8209_v58, %v14918_v50  ;;  %v8474_v57 = vshrl.u32 %v8202_v19, 16  ;;  %v8490_v21 = vshrl.u32 %v8209_v58, 16 }
 0x6b4   : > { %v8244_v62 = vcombine.high %v8236_v28, %v14918_v50  ;;  %v8245_v14 = vcombine.high %v8243_v27, %v14918_v50  ;;  %v8472_v63 = vpack.i.b16 %v8236_v28, %v8202_v19  ;;  %v8475_v26 = vshrl.u32 %v8236_v28, 16  ;;  %v15113_v19 = vld [vmem:[#allocation51_spill] sm:$0xff] }
 0x6b5   : > { %v8482_v46 = vshrl.u32 %v8210_v13, 16  ;;  %v8498_v8 = vshrl.u32 %v8211_v52, 16  ;;  %v8488_v36 = vpack.i.b16 %v8243_v27, %v8209_v58  ;;  %v8491_v3 = vshrl.u32 %v8243_v27, 16 }
 0x6b6   : > { %v8476_v9 = vpack.i.b16 %v8475_v26, %v8474_v57  ;;  %v8480_v59 = vpack.i.b16 %v8244_v62, %v8210_v13  ;;  %v8483_v25 = vshrl.u32 %v8244_v62, 16  ;;  %v8496_v17 = vpack.i.b16 %v8245_v14, %v8211_v52  ;;  %v15115_v57 = vld [vmem:[#allocation38_spill] sm:$0xff] }
 0x6b7   : > { %v8492_v60 = vpack.i.b16 %v8491_v3, %v8490_v21  ;;  %v8499_v54 = vshrl.u32 %v8245_v14, 16  ;;  %v8560_v29 = vcombine.low %v15104_v12, %v8472_v63  ;;  %v15107_v0 = vpack.i.b16 %v15105_v11, %v15106_v43  ;;  %v15116_v62 = vld [vmem:[#allocation34_spill] sm:$0xff]  ;;  %v15117_v3 = vld [vmem:[#allocation45_spill] sm:$0xff] }
 0x6b8   : > { %v8484_v24 = vpack.i.b16 %v8483_v25, %v8482_v46  ;;  %v8576_v35 = vcombine.low %v15108_v4, %v8476_v9  ;;  %v15111_v49 = vpack.i.b16 %v15109_v51, %v15110_v48  ;;  %v15114_v58 = vpack.i.b16 %v15112_v5, %v15113_v19  ;;  %v10583_v12 = vld [vmem:[%s14702_s8] sm:$0xff]  }
 0x6b9   : > { %v8760_v50 = vcombine.low %v15107_v0, %v8488_v36  ;;  %v8500_v27 = vpack.i.b16 %v8499_v54, %v8498_v8  ;;  %v8567_v13 = vrot.slane %v8560_v29, %v15073_v44  ;;  %v8776_v21 = vcombine.low %v15115_v57, %v8492_v60  ;;  %10461 = vmatprep.subr.bf16.mxu0 %v10583_v12 }
 0x6ba   : > { %v8660_v37 = vcombine.low %v15111_v49, %v8480_v59  ;;  %v8860_v28 = vcombine.low %v15114_v58, %v8496_v17  ;;  %v8676_v14 = vcombine.low %v15116_v62, %v8484_v24  ;;  %v8583_v63 = vrot.slane %v8576_v35, %v15073_v44  ;;  %10462 = vmatpush3.bf16.msra.mxu0 %v10583_v12 }
 0x6bb   : > { %v8767_v52 = vrot.slane %v8760_v50, %v15073_v44  ;;  %v14365_v26 = vcombine.high %v8641_v20, %v8649_v41  ;;  %v8783_v36 = vrot.slane %v8776_v21, %v15073_v44  ;;  %v8876_v9 = vcombine.low %v15117_v3, %v8500_v27 }
 0x6bc   : > { %v8667_v46 = vrot.slane %v8660_v37, %v15073_v44  ;;  %v8584_v8 = vcombine.low %v8559_v30, %v8567_v13  ;;  %v14373_v59 = vcombine.low %v8641_v20, %v8649_v41  ;;  %v8592_v25 = vcombine.low %v14260_v2, %v8583_v63 }
 0x6bd   : > { %v8683_v17 = vrot.slane %v8676_v14, %v15073_v44  ;;  %v15118_v60 = vrot.slane %v14209_v61, %v15073_v44  ;;  %v15119_v56 = vrot.slane %v14173_v39, %v15073_v44  ;;  %v8842_v2 = vcombine.low %v14253_v40, %v14325_v45 }
 0x6be   : > { %v8591_v38 = vrot.slane %v8584_v8, %v11350_v34  ;;  %v8917_v30 = vshrl.u32 %v14373_v59, 16  ;;  %v8867_v20 = vrot.slane %v8860_v28, %v15073_v44  ;;  %v8599_v61 = vrot.slane %v8592_v25, %v11350_v34 }
 0x6bf   : > { %v8684_v54 = vcombine.low %v15118_v60, %v8667_v46  ;;  %v8834_v53 = vcombine.low %v15119_v56, %v8817_v1  ;;  %v8692_v39 = vcombine.low %v14272_v10, %v8683_v17  ;;  %v8849_v29 = vrot.slane %v8842_v2, %v11350_v34 }
 0x6c0   : > { %v8883_v11 = vrot.slane %v8876_v9, %v15073_v44  ;;  %v15120_v43 = vrot.slane %v14214_v23, %v15073_v44  ;;  %v15121_v40 = vrot.slane %v14159_v31, %v15073_v44  ;;  %v8601_v10 = vcombine.high %v8591_v38, %v8599_v61  ;;  %v10584_v23 = vld [vmem:[%s14702_s8 + $0x8] sm:$0xff]  }
 0x6c1   : > { %v8691_v41 = vrot.slane %v8684_v54, %v11350_v34  ;;  %v8841_v1 = vrot.slane %v8834_v53, %v11350_v34  ;;  %v14406_v50 = vcombine.low %v8591_v38, %v8599_v61  ;;  %v8699_v24 = vrot.slane %v8692_v39, %v11350_v34  ;;  %10463 = vmatprep.subr.bf16.mxu0 %v10584_v23 }
 0x6c2   : > { %v8884_v0 = vcombine.low %v15120_v43, %v8867_v20  ;;  %v8734_v45 = vcombine.low %v15121_v40, %v8717_v16  ;;  %v8742_v4 = vcombine.low %v14239_v18, %v14307_v15  ;;  %v8892_v51 = vcombine.low %v14277_v7, %v8883_v11  ;;  %10464 = vmatpush3.bf16.msra.mxu0 %v10584_v23 }
 0x6c3   : > { %v8851_v35 = vcombine.high %v8841_v1, %v8849_v29  ;;  %v8910_v16 = vpack.i.b16 %v8601_v10, %v14327_v42  ;;  %v8906_v48 = vshrl.u32 %v14406_v50, 16  ;;  %v8912_v49 = vshrl.u32 %v8601_v10, 16 }
 0x6c4   : > { %v8891_v55 = vrot.slane %v8884_v0, %v11350_v34  ;;  %v8741_v31 = vrot.slane %v8734_v45, %v11350_v34  ;;  %v8701_v37 = vcombine.high %v8691_v41, %v8699_v24  ;;  %v14419_v5 = vcombine.low %v8691_v41, %v8699_v24 }
 0x6c5   : > { %v8899_v18 = vrot.slane %v8892_v51, %v11350_v34  ;;  %v8749_v15 = vrot.slane %v8742_v4, %v11350_v34  ;;  %v15122_v19 = vrot.slane %v14203_v32, %v15073_v44  ;;  %8958 = vrot.lane.b32.xlu1 %v8910_v16, %s10909_s13  ;;  %v8907_v7 = vpack.i.b16 %v8906_v48, %v8905_v47 }
 0x6c6   : > { %v8913_v28 = vpack.i.b16 %v8912_v49, %v8911_v6  ;;  %v8922_v27 = vpack.i.b16 %v8701_v37, %v14365_v26  ;;  %v8792_v13 = vcombine.low %v14269_v22, %v8783_v36  ;;  %v8918_v57 = vshrl.u32 %v14419_v5, 16 }
 0x6c7   : > { %v8784_v58 = vcombine.low %v15122_v19, %v8767_v52  ;;  %v8901_v21 = vcombine.high %v8891_v55, %v8899_v18  ;;  %v14434_v62 = vcombine.low %v8741_v31, %v8749_v15  ;;  %8950 = vrot.lane.b32.xlu0 %v8907_v7, %s10910_s25  ;;  %v8923_v47 = vshrl.u32 %v14365_v26, 16 }
 0x6c8   : > { %v8799_v32 = vrot.slane %v8792_v13, %v11350_v34  ;;  %v8924_v42 = vshrl.u32 %v8701_v37, 16  ;;  %v8751_v6 = vcombine.high %v8741_v31, %v8749_v15  ;;  %v8919_v52 = vpack.i.b16 %v8918_v57, %v8917_v30  ;;  %v10586_v15 = vld [vmem:[%s14704_s10 + $0x8] sm:$0xff]  }
 0x6c9   : > { %v8791_v44 = vrot.slane %v8784_v58, %v11350_v34  ;;  %v8946_v14 = vpack.i.b16 %v8901_v21, %v8851_v35  ;;  %v8929_v22 = vshrl.u32 %v14434_v62, 16  ;;  %v8850_v63 = vcombine.low %v8841_v1, %v8849_v29  ;;  %8966 = vrot.lane.b32.xlu1 %v8913_v28, %s10911_s27  ;;  %v9824_v58 = vld [vmem:[%s14703_s9] ss:$0 sm:$0xff] }
 0x6ca   : > { %v8925_v36 = vpack.i.b16 %v8924_v42, %v8923_v47  ;;  %v8900_v9 = vcombine.low %v8891_v55, %v8899_v18  ;;  %v8935_v25 = vshrl.u32 %v8751_v6, 16  ;;  %v8947_v17 = vshrl.u32 %v8851_v35, 16  ;;  %v10585_v18 = vld [vmem:[%s14704_s10] sm:$0xff]  }
 0x6cb   : > { %v8800_v46 = vcombine.low %v8791_v44, %v8799_v32  ;;  %v8801_v3 = vcombine.high %v8791_v44, %v8799_v32  ;;  %v8941_v8 = vshrl.u32 %v8850_v63, 16  ;;  %v8948_v60 = vshrl.u32 %v8901_v21, 16  ;;  %8960 = vrot.lane.b32.xlu0 %v8922_v27, %s10909_s13  ;;  %10473 = vmatprep.subr.bf16.mxu1 %v10585_v18 }
 0x6cc   : > { %v8942_v54 = vshrl.u32 %v8900_v9, 16  ;;  %v8904_v12 = vpack.i.b16 %v14406_v50, %v14329_v33  ;;  %v8916_v20 = vpack.i.b16 %v14419_v5, %v14373_v59  ;;  %v8940_v41 = vpack.i.b16 %v8900_v9, %v8850_v63  ;;  %10474 = vmatpush3.bf16.msra.mxu1 %v10585_v18  ;;  %v10587_v9 = vld [vmem:[%s14706_s12] sm:$0xff]  }
 0x6cd   : > { %v8930_v34 = vshrl.u32 %v8800_v46, 16  ;;  %v8934_v26 = vpack.i.b16 %v8801_v3, %v8751_v6  ;;  %v8936_v56 = vshrl.u32 %v8801_v3, 16  ;;  %v8949_v53 = vpack.i.b16 %v8948_v60, %v8947_v17  ;;  %8952 = vrot.lane.b32.xlu1 %v8919_v52, %s10910_s25  ;;  %10475 = vmatprep.subr.bf16.mxu1 %v10586_v15  ;;  %v10590_v17 = vld [vmem:[%s14706_s12 + $0x18] sm:$0xff]   ;;  %v10591_v60 = vld [vmem:[%s14706_s12 + $0x20] sm:$0xff]  }
 0x6ce   : > { %v8943_v30 = vpack.i.b16 %v8942_v54, %v8941_v8  ;;  %v8928_v61 = vpack.i.b16 %v8800_v46, %v14434_v62  ;;  %v10588_v8 = vld [vmem:[%s14706_s12 + $0x8] sm:$0xff]   ;;  %10485 = vmatprep.subr.bf16.mxu0 %v10587_v9  ;;  %v10594_v54 = vld [vmem:[%s14706_s12 + $0x38] sm:$0xff]  }
 0x6cf   : > { %v8931_v38 = vpack.i.b16 %v8930_v34, %v8929_v22  ;;  %v8937_v2 = vpack.i.b16 %v8936_v56, %v8935_v25  ;;  %8964 = vrot.lane.b32.xlu0 %v8946_v14, %s10909_s13  ;;  %v10589_v25 = vld [vmem:[%s14706_s12 + $0x10] sm:$0xff]   ;;  %v10592_v34 = vld [vmem:[%s14706_s12 + $0x28] sm:$0xff]   ;;  %v9831_v56 = vld [vmem:[%s14705_s11] ss:$0 sm:$0xff] }
 0x6d0   : > { %10476 = vmatpush3.bf16.msra.mxu1 %v10586_v15 }
 0x6d1   : > { %8954 = vrot.lane.b32.xlu1 %v8931_v38, %s10910_s25 }
 0x6d3   : > { %8968 = vrot.lane.b32.xlu0 %v8925_v36, %s10911_s27 }
 0x6d5   : > { %8962 = vrot.lane.b32.xlu1 %v8934_v26, %s10909_s13  ;;  %v10593_v26 = vld [vmem:[%s14706_s12 + $0x30] sm:$0xff]  }
 0x6d7   : > { %8956 = vrot.lane.b32.xlu0 %v8943_v30, %s10910_s25 }
 0x6d9   : > { %8970 = vrot.lane.b32.xlu1 %v8937_v2, %s10911_s27 }
 0x6db   : > { %8972 = vrot.lane.b32.xlu0 %v8949_v53, %s10911_s27  ;;  %s15128_s27 = sld [smem:[#allocation56_spill]] }
 0x737   : > { %v8959_v33 = vpop.permute.xlu1 %8958 }
 0x739   : > { %v8951_v39 = vpop.permute.xlu0 %8950 }
 0x73a   : > { %v8976_v59 = vsel %vm4372_vm2, %v8904_v12, %v8951_v39 }
 0x73b   : > { %v8967_v1 = vpop.permute.xlu1 %8966  ;;  %v8988_v29 = vsel %vm8986_vm4, %v8976_v59, %v8959_v33 }
 0x73c   : > { %v8997_v11 = vsel %vm8995_vm5, %v8988_v29, %v8967_v1 }
 0x73d   : > { %10465 = vmatprep.mubr.msk.bf16.mxu0 %vm622_vm0, %v8997_v11  ;;  %v8961_v43 = vpop.permute.xlu0 %8960 }
 0x73f   : > { %v8953_v0 = vpop.permute.xlu1 %8952 }
 0x740   : > { %v8979_v45 = vsel %vm4372_vm2, %v8916_v20, %v8953_v0 }
 0x741   : > { %v8965_v40 = vpop.permute.xlu0 %8964  ;;  %v8990_v24 = vsel %vm8986_vm4, %v8979_v45, %v8961_v43 }
 0x743   : > { %v8955_v10 = vpop.permute.xlu1 %8954 }
 0x744   : > { %v8982_v55 = vsel %vm4372_vm2, %v8928_v61, %v8955_v10 }
 0x745   : > { %v8969_v50 = vpop.permute.xlu0 %8968 }
 0x746   : > { %v8999_v4 = vsel %vm8995_vm5, %v8990_v24, %v8969_v50 }
 0x747   : > { %v8963_v23 = vpop.permute.xlu1 %8962  ;;  %10466 = vmatmul.mubr.msk.bf16.vlgmr.msra.gmra.mrb[136].mxu0 %vm622_vm0, %v8999_v4 }
 0x748   : > { %v8992_v31 = vsel %vm8986_vm4, %v8982_v55, %v8963_v23  ;;  %10486 = vmatpush3.bf16.msra.mxu0 %v10587_v9 }
 0x749   : > { %v8957_v35 = vpop.permute.xlu0 %8956  ;;  %10487 = vmatprep.subr.bf16.mxu0 %v10588_v8 }
 0x74a   : > { %v8985_v51 = vsel %vm4372_vm2, %v8940_v41, %v8957_v35 }
 0x74b   : > { %v8971_v16 = vpop.permute.xlu1 %8970  ;;  %v8994_v49 = vsel %vm8986_vm4, %v8985_v51, %v8965_v40 }
 0x74c   : > { %v9001_v48 = vsel %vm8995_vm5, %v8992_v31, %v8971_v16  ;;  %10488 = vmatpush3.bf16.msra.mxu0 %v10588_v8 }
 0x74d   : > { %v8973_v37 = vpop.permute.xlu0 %8972  ;;  %10469 = vmatprep.mubr.msk.bf16.mxu0 %vm622_vm0, %v9001_v48  ;;  %10489 = vmatprep.subr.bf16.mxu0 %v10589_v25 }
 0x74e   : > { %v9003_v5 = vsel %vm8995_vm5, %v8994_v49, %v8973_v37 }
 0x74f   : > { %10470 = vmatmul.mubr.msk.bf16.gmra.mrb[140].mxu0 %vm622_vm0, %v9003_v5 }
 0x750   : > { %10490 = vmatpush3.bf16.msra.mxu0 %v10589_v25 }
 0x751   : > { %10491 = vmatprep.subr.bf16.mxu0 %v10590_v17 }
 0x754   : > { %10492 = vmatpush3.bf16.msra.mxu0 %v10590_v17 }
 0x755   : > { %10493 = vmatprep.subr.bf16.mxu0 %v10591_v60 }
 0x758   : > { %10494 = vmatpush3.bf16.msra.mxu0 %v10591_v60 }
 0x759   : > { %10495 = vmatprep.subr.bf16.mxu0 %v10592_v34 }
 0x75c   : > { %10496 = vmatpush3.bf16.msra.mxu0 %v10592_v34 }
 0x75d   : > { %10497 = vmatprep.subr.bf16.mxu0 %v10593_v26 }
 0x760   : > { %10498 = vmatpush3.bf16.msra.mxu0 %v10593_v26 }
 0x761   : > { %10499 = vmatprep.subr.bf16.mxu0 %v10594_v54 }
 0x764   : > { %10500 = vmatpush3.bf16.msra.mxu0 %v10594_v54 }
 0x81a   : > { %v10467_v19 = vpop.f32.mrb[136].mxu0 }
 0x81b   : > { %v9069_v7 = vpop.f32.mrb[137].mxu0  ;;  %v9078_v27 = vadd.f32 %v10467_v19, %v9824_v58 }
 0x81c   : > { %v10468_v28 = vpop.f32.mrb[138].mxu0  ;;  %v9070_v21 = vadd.f32 %v9824_v58, %v9069_v7 }
 0x81d   : > { %v9081_v13 = vadd.f32 %v10468_v28, %v9824_v58  ;;  %v9072_v57 = vpop.f32.mrb[139].mxu0 }
 0x81e   : > { %v9073_v62 = vadd.f32 %v9824_v58, %v9072_v57 }
 0x81f   : > { %v9105_v44 = vpack.c.bf16 %v9081_v13, %v9078_v27 }
 0x820   : > { %v9104_v32 = vpack.c.bf16 %v9073_v62, %v9070_v21 }
 0x822   : > { %v10471_v47 = vpop.f32.mrb[140].mxu0  ;;  %10477 = vmatprep.mubr.msk.bf16.mxu1 %vm622_vm0, %v9104_v32 }
 0x823   : > { %v9085_v42 = vpop.f32.mrb[141].mxu0  ;;  %10478 = vmatmul.mubr.msk.bf16.vlgmr.msra.gmra.mrb[152].mxu1 %vm622_vm0, %v9105_v44  ;;  %v9094_v52 = vadd.f32 %v10471_v47, %v9824_v58 }
 0x824   : > { %v10472_v6 = vpop.f32.mrb[142].mxu0  ;;  %v9086_v63 = vadd.f32 %v9824_v58, %v9085_v42 }
 0x825   : > { %v9097_v14 = vadd.f32 %v10472_v6, %v9824_v58  ;;  %v9088_v22 = vpop.f32.mrb[143].mxu0 }
 0x826   : > { %v9089_v46 = vadd.f32 %v9824_v58, %v9088_v22 }
 0x827   : > { %v9107_v36 = vpack.c.bf16 %v9097_v14, %v9094_v52 }
 0x828   : > { %v9106_v3 = vpack.c.bf16 %v9089_v46, %v9086_v63 }
 0x82a   : > { %10481 = vmatprep.mubr.msk.bf16.mxu1 %vm622_vm0, %v9106_v3 }
 0x82b   : > { %10482 = vmatmul.mubr.msk.bf16.gmra.mrb[156].mxu1 %vm622_vm0, %v9107_v36 }
 0x8f6   : > { %v10479_v53 = vpop.f32.mrb[152].mxu1 }
 0x8f7   : > { %v14508_v12 = vadd.f32 %v10479_v53, %v9831_v56  ;;  %v9173_v38 = vpop.f32.mrb[153].mxu1 }
 0x8f8   : > { %v14510_v30 = vadd.f32 %v9831_v56, %v9173_v38  ;;  %v10480_v2 = vpop.f32.mrb[154].mxu1 }
 0x8f9   : > { %v9214_v20 = vmul.f32 0.044715, %v14508_v12  ;;  %v14513_v61 = vadd.f32 %v10480_v2, %v9831_v56  ;;  %v9176_v41 = vpop.f32.mrb[155].mxu1  ;;  %v9206_v54 = vmul.f32 0.5, %v14508_v12 }
 0x8fa   : > { %v9212_v33 = vmul.f32 0.044715, %v14510_v30  ;;  %v14516_v39 = vadd.f32 %v9831_v56, %v9176_v41  ;;  %v9204_v38 = vmul.f32 0.5, %v14510_v30 }
 0x8fb   : > { %v9222_v59 = vmul.f32 %v9214_v20, %v14508_v12  ;;  %v9215_v1 = vmul.f32 0.044715, %v14513_v61 }
 0x8fc   : > { %v9220_v29 = vmul.f32 %v9212_v33, %v14510_v30  ;;  %v9213_v11 = vmul.f32 0.044715, %v14516_v39  ;;  %v9205_v2 = vmul.f32 0.5, %v14516_v39 }
 0x8fd   : > { %v9230_v43 = vmul.f32 %v9222_v59, %v14508_v12  ;;  %v9223_v0 = vmul.f32 %v9215_v1, %v14513_v61 }
 0x8fe   : > { %v9228_v40 = vmul.f32 %v9220_v29, %v14510_v30  ;;  %v9221_v45 = vmul.f32 %v9213_v11, %v14516_v39  ;;  %v10483_v10 = vpop.f32.mrb[156].mxu1 }
 0x8ff   : > { %v9238_v50 = vadd.f32 %v9230_v43, %v14508_v12  ;;  %v9231_v24 = vmul.f32 %v9223_v0, %v14513_v61  ;;  %v14528_v4 = vadd.f32 %v10483_v10, %v9831_v56  ;;  %v9189_v23 = vpop.f32.mrb[157].mxu1 }
 0x900   : > { %v9229_v35 = vmul.f32 %v9221_v45, %v14516_v39  ;;  %v14531_v55 = vadd.f32 %v9831_v56, %v9189_v23  ;;  %v10484_v51 = vpop.f32.mrb[158].mxu1  ;;  %v9236_v31 = vadd.f32 %v9228_v40, %v14510_v30 }
 0x901   : > { %v9246_v16 = vmul.f32 0.7978846, %v9238_v50  ;;  %v9239_v48 = vadd.f32 %v9231_v24, %v14513_v61  ;;  %v9218_v49 = vmul.f32 0.044715, %v14528_v4  ;;  %v9201_v37 = vadd.f32 %v10484_v51, %v9831_v56  ;;  %v9192_v5 = vpop.f32.mrb[159].mxu1 }
 0x902   : > { %v9216_v18 = vmul.f32 0.044715, %v14531_v55  ;;  %v9193_v15 = vadd.f32 %v9831_v56, %v9192_v5  ;;  %v9237_v19 = vadd.f32 %v9229_v35, %v14516_v39  ;;  %v9244_v58 = vmul.f32 0.7978846, %v9236_v31 }
 0x903   : > { %10723 = vtanh.f32 %v9246_v16  ;;  %v9247_v7 = vmul.f32 0.7978846, %v9239_v48  ;;  %v9226_v28 = vmul.f32 %v9218_v49, %v14528_v4  ;;  %v9219_v27 = vmul.f32 0.044715, %v9201_v37 }
 0x904   : > { %v9224_v13 = vmul.f32 %v9216_v18, %v14531_v55  ;;  %v9217_v57 = vmul.f32 0.044715, %v9193_v15  ;;  %v9245_v21 = vmul.f32 0.7978846, %v9237_v19  ;;  %10725 = vtanh.f32 %v9244_v58  ;;  %v10755_v19 = vld [vmem:[%s11169_s18 + $0x10] sm:$0xff] }
 0x905   : > { %10727 = vtanh.f32 %v9247_v7  ;;  %v9234_v62 = vmul.f32 %v9226_v28, %v14528_v4  ;;  %v9227_v44 = vmul.f32 %v9219_v27, %v9201_v37  ;;  %v9207_v56 = vmul.f32 0.5, %v14513_v61  ;;  %v10756_v27 = vld [vmem:[%s11169_s18] sm:$0xff] }
 0x906   : > { %v9232_v32 = vmul.f32 %v9224_v13, %v14531_v55  ;;  %v9225_v47 = vmul.f32 %v9217_v57, %v9193_v15  ;;  %10729 = vtanh.f32 %v9245_v21  ;;  %v9210_v61 = vmul.f32 0.5, %v14528_v4 }
 0x907   : > { %v9235_v42 = vmul.f32 %v9227_v44, %v9201_v37  ;;  %v9242_v6 = vadd.f32 %v9234_v62, %v14528_v4  ;;  %v9211_v30 = vmul.f32 0.5, %v9201_v37  ;;  %v9208_v39 = vmul.f32 0.5, %v14531_v55  ;;  %v9838_v4 = vld [vmem:[%s15123_s20] ss:$0 sm:$0xff]  ;;  %v10757_v62 = vld [vmem:[%s11169_s18 + $0x18] sm:$0xff]  ;;  %s14645_s20 = scalar_lea.hbm %s15128_s27, %s9850_s28 }
 0x908   : > { %v9233_v52 = vmul.f32 %v9225_v47, %v9193_v15  ;;  %v9240_v14 = vadd.f32 %v9232_v32, %v14531_v55  ;;  %v9209_v24 = vmul.f32 0.5, %v9193_v15  ;;  %v10758_v32 = vld [vmem:[%s11169_s18 + $0x8] sm:$0xff] }
 0x909   : > { %v9243_v22 = vadd.f32 %v9235_v42, %v9201_v37  ;;  %v9250_v63 = vmul.f32 0.7978846, %v9242_v6 }
 0x90a   : > { %v9241_v46 = vadd.f32 %v9233_v52, %v9193_v15  ;;  %v9248_v36 = vmul.f32 0.7978846, %v9240_v14 }
 0x90b   : > { %v9251_v3 = vmul.f32 0.7978846, %v9243_v22  ;;  %10731 = vtanh.f32 %v9250_v63 }
 0x90c   : > { %v9249_v9 = vmul.f32 0.7978846, %v9241_v46  ;;  %10733 = vtanh.f32 %v9248_v36 }
 0x90d   : > { %v10724_v8 = vpop.eup %10723  ;;  %10735 = vtanh.f32 %v9251_v3 }
 0x90e   : > { %v10726_v25 = vpop.eup %10725  ;;  %v9262_v17 = vadd.f32 1.0, %v10724_v8  ;;  %10737 = vtanh.f32 %v9249_v9  ;;  %v10759_v9 = vld [vmem:[%s11169_s18 + $0x20] sm:$0xff] }
 0x90f   : > { %v10728_v60 = vpop.eup %10727  ;;  %v9260_v34 = vadd.f32 1.0, %v10726_v25 }
 0x910   : > { %v10730_v26 = vpop.eup %10729  ;;  %v9263_v53 = vadd.f32 1.0, %v10728_v60  ;;  %v9270_v41 = vmul.f32 %v9262_v17, %v9206_v54  ;;  %v10760_v60 = vld [vmem:[%s11169_s18 + $0x30] sm:$0xff] }
 0x911   : > { %v9261_v20 = vadd.f32 1.0, %v10730_v26  ;;  %v9268_v59 = vmul.f32 %v9260_v34, %v9204_v38  ;;  %v10761_v26 = vld [vmem:[%s11169_s18 + $0x28] sm:$0xff] }
 0x912   : > { %v9271_v33 = vmul.f32 %v9263_v53, %v9207_v56  ;;  %v10762_v53 = vld [vmem:[%s11169_s18 + $0x38] sm:$0xff]  ;;  %s9568_s18 = scalar_lea.sflag [#allocation4], %s11162_s16 }
 0x913   : > { %v9269_v1 = vmul.f32 %v9261_v20, %v9205_v2 }
 0x914   : > { %v9293_v29 = vpack.c.bf16 %v9271_v33, %v9270_v41 }
 0x915   : > { %v10732_v11 = vpop.eup %10731  ;;  %v9292_v43 = vpack.c.bf16 %v9269_v1, %v9268_v59 }
 0x916   : > { %v10734_v0 = vpop.eup %10733  ;;  %v9266_v40 = vadd.f32 1.0, %v10732_v11 }
 0x917   : > { %v10736_v45 = vpop.eup %10735  ;;  %10501 = vmatprep.mubr.bf16.mxu0 %v9292_v43  ;;  %v9264_v12 = vadd.f32 1.0, %v10734_v0 }
 0x918   : > { %v10738_v10 = vpop.eup %10737  ;;  %10502 = vmatmul.mubr.bf16.vlgmr.msra.gmra.mrb[144].mxu0 %v9293_v29  ;;  %v9267_v50 = vadd.f32 1.0, %v10736_v45  ;;  %v9274_v35 = vmul.f32 %v9266_v40, %v9210_v61 }
 0x919   : > { %v9265_v23 = vadd.f32 1.0, %v10738_v10  ;;  %v9272_v31 = vmul.f32 %v9264_v12, %v9208_v39 }
 0x91a   : > { %v9275_v51 = vmul.f32 %v9267_v50, %v9211_v30 }
 0x91b   : > { %v9273_v16 = vmul.f32 %v9265_v23, %v9209_v24 }
 0x91c   : > { %v9295_v48 = vpack.c.bf16 %v9275_v51, %v9274_v35 }
 0x91d   : > { %v9294_v49 = vpack.c.bf16 %v9273_v16, %v9272_v31 }
 0x91f   : > { %10505 = vmatprep.mubr.bf16.mxu0 %v9294_v49 }
 0x920   : > { %10506 = vmatmul.mubr.bf16.gmra.mrb[148].mxu0 %v9295_v48 }
 0x9eb   : > { %v10503_v37 = vpop.f32.mrb[144].mxu0 }
 0x9ec   : > { %v9394_v55 = vadd.f32 %v10503_v37, %v9838_v4  ;;  %v9385_v5 = vpop.f32.mrb[145].mxu0 }
 0x9ed   : > { %v9386_v18 = vadd.f32 %v9838_v4, %v9385_v5  ;;  %v10504_v15 = vpop.f32.mrb[146].mxu0 }
 0x9ee   : > { %v9418_v58 = vadd.f32 %v10755_v19, %v9394_v55  ;;  %v9397_v7 = vadd.f32 %v10504_v15, %v9838_v4  ;;  %v9388_v28 = vpop.f32.mrb[147].mxu0 }
 0x9ef   : > { %v9416_v13 = vadd.f32 %v10756_v27, %v9386_v18  ;;  %v9389_v57 = vadd.f32 %v9838_v4, %v9388_v28 }
 0x9f0   : > { %v9430_v21 = vsel %vm622_vm0, %v9418_v58, 0.0  ;;  %v9419_v44 = vadd.f32 %v10757_v62, %v9397_v7 }
 0x9f1   : > { %v9417_v47 = vadd.f32 %v10758_v32, %v9389_v57  ;;  %9431 = vadd.xlane.f32.xlu0 %v9430_v21  ;;  %v9424_v42 = vsel %vm622_vm0, %v9416_v13, 0.0 }
 0x9f2   : > { %9425 = vadd.xlane.f32.xlu1 %v9424_v42  ;;  %v9433_v36 = vsel %vm622_vm0, %v9419_v44, 0.0 }
 0x9f3   : > { %v10507_v6 = vpop.f32.mrb[148].mxu0  ;;  %v9427_v52 = vsel %vm622_vm0, %v9417_v47, 0.0 }
 0x9f4   : > { %v9401_v14 = vpop.f32.mrb[149].mxu0  ;;  %v9410_v22 = vadd.f32 %v10507_v6, %v9838_v4 }
 0x9f5   : > { %v9402_v63 = vadd.f32 %v9838_v4, %v9401_v14  ;;  %v10508_v46 = vpop.f32.mrb[150].mxu0  ;;  %9428 = vadd.xlane.f32.xlu0 %v9427_v52 }
 0x9f6   : > { %v9404_v3 = vpop.f32.mrb[151].mxu0  ;;  %9434 = vadd.xlane.f32.xlu1 %v9433_v36  ;;  %v9413_v25 = vadd.f32 %v10508_v46, %v9838_v4  ;;  %v9422_v34 = vadd.f32 %v10760_v60, %v9410_v22 }
 0x9f7   : > { %v9420_v8 = vadd.f32 %v10759_v9, %v9402_v63  ;;  %v9405_v17 = vadd.f32 %v9838_v4, %v9404_v3 }
 0x9f8   : > { %v9423_v38 = vadd.f32 %v10762_v53, %v9413_v25  ;;  %v9442_v20 = vsel %vm622_vm0, %v9422_v34, 0.0 }
 0x9f9   : > { %v9421_v54 = vadd.f32 %v10761_v26, %v9405_v17  ;;  %v9436_v56 = vsel %vm622_vm0, %v9420_v8, 0.0 }
 0x9fa   : > { %9437 = vadd.xlane.f32.xlu0 %v9436_v56  ;;  %v9445_v41 = vsel %vm622_vm0, %v9423_v38, 0.0 }
 0x9fb   : > { %v9439_v2 = vsel %vm622_vm0, %v9421_v54, 0.0 }
 0x9fc   : > { %9440 = vadd.xlane.f32.xlu1 %v9439_v2 }
 0x9fe   : > { %9443 = vadd.xlane.f32.xlu0 %v9442_v20 }
 0xa00   : > { %9446 = vadd.xlane.f32.xlu1 %v9445_v41 }
 0xa7e   : > { %v9432_v33 = vpop.xlane.xlu0 %9431 }
 0xa7f   : > { %v9451_v59 = vmul.f32 0.03125, %v9432_v33  ;;  %v9426_v1 = vpop.xlane.xlu1 %9425  ;;  %v9848_v33 = vld [vmem:[%s15125_s14] ss:$0 sm:$0xff] }
 0xa80   : > { %v9449_v29 = vmul.f32 0.03125, %v9426_v1 }
 0xa81   : > { %v14569_v11 = vsub.f32 %v9418_v58, %v9451_v59 }
 0xa82   : > { %v14571_v43 = vsub.f32 %v9416_v13, %v9449_v29  ;;  %v9429_v0 = vpop.xlane.xlu0 %9428 }
 0xa83   : > { %v9450_v40 = vmul.f32 0.03125, %v9429_v0  ;;  %v9435_v45 = vpop.xlane.xlu1 %9434  ;;  %v9467_v12 = vmul.f32 %v14569_v11, %v14569_v11 }
 0xa84   : > { %v9452_v10 = vmul.f32 0.03125, %v9435_v45  ;;  %v9465_v50 = vmul.f32 %v14571_v43, %v14571_v43 }
 0xa85   : > { %v14575_v61 = vsub.f32 %v9417_v47, %v9450_v40  ;;  %v9479_v30 = vsel %vm622_vm0, %v9467_v12, 0.0 }
 0xa86   : > { %v14580_v39 = vsub.f32 %v9419_v44, %v9452_v10  ;;  %9480 = vadd.xlane.f32.xlu0 %v9479_v30  ;;  %v9473_v31 = vsel %vm622_vm0, %v9465_v50, 0.0 }
 0xa87   : > { %v9438_v24 = vpop.xlane.xlu0 %9437  ;;  %v9466_v16 = vmul.f32 %v14575_v61, %v14575_v61 }
 0xa88   : > { %v9453_v23 = vmul.f32 0.03125, %v9438_v24  ;;  %v9468_v35 = vmul.f32 %v14580_v39, %v14580_v39 }
 0xa89   : > { %v9441_v51 = vpop.xlane.xlu1 %9440  ;;  %v9476_v19 = vsel %vm622_vm0, %v9466_v16, 0.0 }
 0xa8a   : > { %v14587_v48 = vsub.f32 %v9420_v8, %v9453_v23  ;;  %v9454_v49 = vmul.f32 0.03125, %v9441_v51  ;;  %9474 = vadd.xlane.f32.xlu0 %v9473_v31  ;;  %v9482_v4 = vsel %vm622_vm0, %v9468_v35, 0.0 }
 0xa8b   : > { %v9444_v37 = vpop.xlane.xlu0 %9443  ;;  %9483 = vadd.xlane.f32.xlu1 %v9482_v4 }
 0xa8c   : > { %v14590_v55 = vsub.f32 %v9421_v54, %v9454_v49  ;;  %v9455_v5 = vmul.f32 0.03125, %v9444_v37  ;;  %v9469_v18 = vmul.f32 %v14587_v48, %v14587_v48 }
 0xa8d   : > { %v9447_v15 = vpop.xlane.xlu1 %9446 }
 0xa8e   : > { %v14595_v58 = vsub.f32 %v9422_v34, %v9455_v5  ;;  %v9456_v7 = vmul.f32 0.03125, %v9447_v15  ;;  %v9485_v28 = vsel %vm622_vm0, %v9469_v18, 0.0  ;;  %v9470_v27 = vmul.f32 %v14590_v55, %v14590_v55 }
 0xa8f   : > { %9486 = vadd.xlane.f32.xlu0 %v9485_v28  ;;  %9477 = vadd.xlane.f32.xlu1 %v9476_v19 }
 0xa90   : > { %v14600_v13 = vsub.f32 %v9423_v38, %v9456_v7  ;;  %v9471_v57 = vmul.f32 %v14595_v58, %v14595_v58  ;;  %v9488_v62 = vsel %vm622_vm0, %v9470_v27, 0.0  ;;  %v9847_v38 = vld [vmem:[%s15124_s26] ss:$0 sm:$0xff]  ;;  %s10912_s26 = smov [#allocation7]  }
 0xa91   : > { %s10827_s17 = sshll.u32 %s10912_s26, 4  ;;  %s10828_s17 = int_to_ptr.vmem [resolvable:$false] %s10827_s17 }
 0xa92   : > { %v9491_v21 = vsel %vm622_vm0, %v9471_v57, 0.0  ;;  %v9472_v44 = vmul.f32 %v14600_v13, %v14600_v13  ;;  %s10829_s21 = scalar_lea.vmem %s10828_s17, 2048  ;;  %p10830_p7 = scmp.lt.s32.totalorder %s14647_s19, %s10828_s17 }
 0xa93   : > { %9492 = vadd.xlane.f32.xlu0 %v9491_v21  ;;  %9489 = vadd.xlane.f32.xlu1 %v9488_v62  ;;  %p10831_p8 = scmp.lt.s32.totalorder %s10829_s21, %s10823_s29 }
 0xa94   : > { %v9494_v32 = vsel %vm622_vm0, %v9472_v44, 0.0 }
 0xa95   : > { %p10832_p9 = por %p10831_p8, %p10830_p7 }
 0xa97   : > { %9495 = vadd.xlane.f32.xlu1 %v9494_v32  ;;  %p10833_p11 = pnand %p10832_p9, %p10826_p10 }
 0xb13   : > { %v9481_v47 = vpop.xlane.xlu0 %9480 }
 0xb14   : > { %v9499_v42 = vmul.f32 0.03125, %v9481_v47 }
 0xb16   : > { %v9507_v6 = vadd.f32 1e-05, %v9499_v42 }
 0xb17   : > { %v9475_v52 = vpop.xlane.xlu0 %9474 }
 0xb18   : > { %10739 = vrsqrt.f32 %v9507_v6  ;;  %v9497_v14 = vmul.f32 0.03125, %v9475_v52  ;;  %v9484_v22 = vpop.xlane.xlu1 %9483 }
 0xb19   : > { %v9500_v63 = vmul.f32 0.03125, %v9484_v22 }
 0xb1a   : > { %v9505_v46 = vadd.f32 1e-05, %v9497_v14 }
 0xb1b   : > { %v9508_v36 = vadd.f32 1e-05, %v9500_v63 }
 0xb1c   : > { %10741 = vrsqrt.f32 %v9505_v46  ;;  %v9487_v3 = vpop.xlane.xlu0 %9486  ;;  %v9478_v9 = vpop.xlane.xlu1 %9477 }
 0xb1d   : > { %10743 = vrsqrt.f32 %v9508_v36  ;;  %v9501_v8 = vmul.f32 0.03125, %v9487_v3  ;;  %v9498_v25 = vmul.f32 0.03125, %v9478_v9 }
 0xb1f   : > { %v9509_v17 = vadd.f32 1e-05, %v9501_v8  ;;  %v9506_v60 = vadd.f32 1e-05, %v9498_v25 }
 0xb20   : > { %v9493_v34 = vpop.xlane.xlu0 %9492  ;;  %v9490_v26 = vpop.xlane.xlu1 %9489 }
 0xb21   : > { %10745 = vrsqrt.f32 %v9509_v17  ;;  %v9503_v54 = vmul.f32 0.03125, %v9493_v34  ;;  %v9502_v56 = vmul.f32 0.03125, %v9490_v26 }
 0xb22   : > { %v10740_v53 = vpop.eup %10739  ;;  %10747 = vrsqrt.f32 %v9506_v60 }
 0xb23   : > { %v9523_v2 = vmul.f32 %v10740_v53, %v14569_v11  ;;  %v9511_v20 = vadd.f32 1e-05, %v9503_v54  ;;  %v9510_v41 = vadd.f32 1e-05, %v9502_v56 }
 0xb24   : > { %v9496_v59 = vpop.xlane.xlu1 %9495 }
 0xb25   : > { %v9538_v1 = vmul.f32 %v9847_v38, %v9523_v2  ;;  %10749 = vrsqrt.f32 %v9511_v20  ;;  %v9504_v29 = vmul.f32 0.03125, %v9496_v59 }
 0xb26   : > { %v10742_v0 = vpop.eup %10741  ;;  %10751 = vrsqrt.f32 %v9510_v41 }
 0xb27   : > { %v10744_v40 = vpop.eup %10743  ;;  %v9553_v45 = vadd.f32 %v9848_v33, %v9538_v1  ;;  %v9521_v12 = vmul.f32 %v10742_v0, %v14571_v43  ;;  %v9512_v10 = vadd.f32 1e-05, %v9504_v29 }
 0xb28   : > { %v9524_v30 = vmul.f32 %v10744_v40, %v14580_v39 }
 0xb29   : > { %9561 = vst.msk [vmem:[%s14619_s15 + $0x10] sm:$0xff] %vm622_vm0, %v9553_v45  ;;  %v9536_v11 = vmul.f32 %v9847_v38, %v9521_v12  ;;  %10753 = vrsqrt.f32 %v9512_v10 }
 0xb2a   : > { %v9539_v50 = vmul.f32 %v9847_v38, %v9524_v30 }
 0xb2b   : > { %v10746_v24 = vpop.eup %10745  ;;  %v9551_v23 = vadd.f32 %v9848_v33, %v9536_v11 }
 0xb2c   : > { %v10748_v35 = vpop.eup %10747  ;;  %v9554_v51 = vadd.f32 %v9848_v33, %v9539_v50  ;;  %v9525_v43 = vmul.f32 %v10746_v24, %v14587_v48 }
 0xb2d   : > { %9559 = vst.msk [vmem:[%s14619_s15] sm:$0xff] %vm622_vm0, %v9551_v23  ;;  %v9522_v39 = vmul.f32 %v10748_v35, %v14575_v61 }
 0xb2e   : > { %9562 = vst.msk [vmem:[%s14619_s15 + $0x18] sm:$0xff] %vm622_vm0, %v9554_v51  ;;  %v9540_v31 = vmul.f32 %v9847_v38, %v9525_v43 }
 0xb2f   : > { %v10750_v16 = vpop.eup %10749  ;;  %v9537_v49 = vmul.f32 %v9847_v38, %v9522_v39 }
 0xb30   : > { %v10752_v4 = vpop.eup %10751  ;;  %v9555_v37 = vadd.f32 %v9848_v33, %v9540_v31  ;;  %v9527_v5 = vmul.f32 %v10750_v16, %v14595_v58 }
 0xb31   : > { %v9552_v18 = vadd.f32 %v9848_v33, %v9537_v49  ;;  %v9526_v48 = vmul.f32 %v10752_v4, %v14590_v55 }
 0xb32   : > { %9563 = vst.msk [vmem:[%s14619_s15 + $0x20] sm:$0xff] %vm622_vm0, %v9555_v37  ;;  %v9542_v61 = vmul.f32 %v9847_v38, %v9527_v5 }
 0xb33   : > { %v10754_v15 = vpop.eup %10753  ;;  %9560 = vst.msk [vmem:[%s14619_s15 + $0x8] sm:$0xff] %vm622_vm0, %v9552_v18  ;;  %v9541_v19 = vmul.f32 %v9847_v38, %v9526_v48 }
 0xb34   : > { %v9557_v7 = vadd.f32 %v9848_v33, %v9542_v61  ;;  %v9528_v28 = vmul.f32 %v10754_v15, %v14600_v13 }
 0xb35   : > { %v9556_v27 = vadd.f32 %v9848_v33, %v9541_v19 }
 0xb36   : > { %9565 = vst.msk [vmem:[%s14619_s15 + $0x30] sm:$0xff] %vm622_vm0, %v9557_v7  ;;  %v9543_v58 = vmul.f32 %v9847_v38, %v9528_v28 }
 0xb37   : > { %9564 = vst.msk [vmem:[%s14619_s15 + $0x28] sm:$0xff] %vm622_vm0, %v9556_v27 }
 0xb38   : > { %v9558_v55 = vadd.f32 %v9848_v33, %v9543_v58 }
 0xb3a   : > { %9566 = vst.msk [vmem:[%s14619_s15 + $0x38] sm:$0xff] %vm622_vm0, %v9558_v55 }
 0xb3b   : > { %10836 = shalt.err (!%p10833_p11)
}
 0xb3c   : > { %s10837_s14 = scalar_lea.hbm %s14645_s20, 1024  ;;  %s10841_s28 = scalar_lea.hbm %s15128_s27, 2048 }
 0xb3d   : > { %p10838_p0 = scmp.ne.s32.totalorder %s14645_s20, %s10837_s14  ;;  %p10842_p3 = scmp.lt.u32.totalorder %s14645_s20, %s15128_s27 }
 0xb3e   : > { %p10843_p5 = scmp.lt.u32.totalorder %s10841_s28, %s10837_s14  ;;  %p10845_p13 = scmp.lt.u32.totalorder %s10837_s14, %s14645_s20 }
 0xb3f   : > { %p10839_p4 = pnand %p10838_p0, %p15129_p2 }
 0xb40   : > { %p10844_p6 = por %p10843_p5, %p10842_p3 }
 0xb41   : > { %p10840_p1 = pneg %p10839_p4 }
 0xb42   : > { %p10846_p12 = por %p10845_p13, %p10844_p6 }
 0xb44   : > { %p10847_p10 = pnand %p10846_p12, %p10840_p1 }
 0xb46   : > { %10850 = shalt.err (!%p10847_p10)
}
 0xb47   : > { %s10913_s29 = smov 128   ;;  %s10914_s26 = smov 256  }
 0xb48   : > { %10513 = dma.vmem_to_hbm [thread:$0]  (%p15129_p2), %s14647_s19, 1024, %s14645_s20, %s9568_s18, %s10913_s29, %s10914_s26, %s10910_s25  }
 0xb49 PF: > { %s15130_s17 = sld [smem:[#allocation11_spill]]  ;;  %s15131_s21 = sld [smem:[#allocation17_spill]] }
 0xb4a   : > { %p15133_p8 = scmp.ge.s32.totalorder %s10893_s24, 2 }
 0xb4f   : > { %s9595_s15 = sand.u32 1, %s15130_s17   ;;  %p15132_p7 = scmp.ne.s32.totalorder %s15131_s21, 0 }
 0xb50   : > { %s9596_s14 = scalar_lea.sflag [#allocation4], %s9595_s15 }
 0xb51   : > { %p10523_p9 = pnand %p15133_p8, %p15132_p7 }
 0xb53   : > { %10876 = dma.done.wait (!%p10523_p9), %s9596_s14, 1024  }
 0xb54   : > { %10878 = vsyncadd (!%p10523_p9), %s9596_s14, 4294966272  ;;  %s15134_s24 = sld [smem:[#allocation14_spill]]  ;;  %s15135_s0 = sld [smem:[#allocation12_spill]] }
 0xb55   : > { %s15136_s23 = sld [smem:[#allocation15_spill]]  ;;  %s15137_s21 = smov %s10885_s22 }
 0xb5a   : > { %p32_p11 = scmp.ge.s32.totalorder %s15134_s24, 4   ;;  %s15138_s22 = smov %s15135_s0 }
 0xb5c   :  { %34 = sbr.rel (!%p32_p11) target bundleno = 13 (0xd), region = 142 }
 0xb63   :  { %9601 = vsyncpa [#allocation3], 1 }
 0xb64   :  { %9603 = vsyncpa [#allocation3 + $0x1], 1 }
 0xb65   :  { %9604 = vsyncpa [#allocation6], 1 }
 0xb66   :  { %9606 = vsyncpa [#allocation6 + $0x1], 1 }
 0xb67   :  { %9607 = vsyncpa [#allocation4], 1 }
 0xb68   :  { %9609 = vsyncpa [#allocation4 + $0x1], 1 }

</bundles_post_ra>
